<compile_context>
chip_gen: v6e
topology: v6e:2x2x1
jax: 0.10.0
libtpu: 0.0.40
codegen_flags: <defaults>
</compile_context>

<pallas_src>
import functools

import jax
import jax.numpy as jnp
from jax.experimental import pallas as pl
from jax.experimental.pallas import tpu as pltpu

# Set to jnp.bfloat16 on v6e / v7x for the fast MXU path (~2-3x matmul
# throughput, f32 accumulation). Kept f32 by default to match the PyTorch
# module's numerics (1e-3 check vs the f32 reference below).
MXU_INPUT_DTYPE = jnp.float32


def _round_up(x, m):
    return (x + m - 1) // m * m


# ---------------------------------------------------------------------------
# Kernel 1: conv-as-matmul, channels-first.  o = relu?(w @ p + b)
#   w: (Cout, K)   p: (K, TN)   b: (Cout, 1)   o: (Cout, TN)
# Grid tiles the (large) column axis -> lane-dense output stores.
# ---------------------------------------------------------------------------
def _conv_mm_kernel(w_ref, p_ref, b_ref, o_ref, *, relu):
    w = w_ref[...].astype(MXU_INPUT_DTYPE)
    p = p_ref[...].astype(MXU_INPUT_DTYPE)
    acc = jnp.dot(w, p, preferred_element_type=jnp.float32)
    acc = acc + b_ref[...]                       # (Cout,1) broadcasts over lanes
    if relu:
        acc = jnp.maximum(acc, 0.0)
    o_ref[...] = acc.astype(o_ref.dtype)


def conv_matmul(w, patches, b, *, relu, tn_cap=512):
    cout, K = w.shape
    K2, N = patches.shape
    assert K == K2
    tn = min(tn_cap, _round_up(N, 128))
    n_pad = _round_up(N, tn)
    if n_pad != N:
        patches = jnp.pad(patches, ((0, 0), (0, n_pad - N)))
    grid = (n_pad // tn,)
    cost = pl.CostEstimate(
        flops=2 * cout * K * n_pad,
        transcendentals=0,
        bytes_accessed=4 * (cout * K + K * n_pad + cout * n_pad),
    )
    out = pl.pallas_call(
        functools.partial(_conv_mm_kernel, relu=relu),
        out_shape=jax.ShapeDtypeStruct((cout, n_pad), jnp.float32),
        grid=grid,
        in_specs=[
            pl.BlockSpec((cout, K), lambda i: (0, 0)),   # weights resident
            pl.BlockSpec((K, tn), lambda i: (0, i)),     # streamed column tiles
            pl.BlockSpec((cout, 1), lambda i: (0, 0)),   # bias
        ],
        out_specs=pl.BlockSpec((cout, tn), lambda i: (0, i)),
        compiler_params=pltpu.CompilerParams(
            dimension_semantics=("parallel",),
            vmem_limit_bytes=32 * 1024 * 1024,
        ),
        cost_estimate=cost,
    )(w, patches, b.reshape(cout, 1))
    return out[:, :N]


# ---------------------------------------------------------------------------
# Kernel 2: fused fc1 + fc2 (no ReLU between them, per the reference forward)
#   o = (x @ w1 + b1) @ w2 + b2      with w2/b2 padded to 128 output lanes
# ---------------------------------------------------------------------------
def _fc_fused_kernel(x_ref, w1_ref, b1_ref, w2_ref, b2_ref, o_ref):
    x = x_ref[...].astype(MXU_INPUT_DTYPE)
    h = jnp.dot(x, w1_ref[...].astype(MXU_INPUT_DTYPE),
                preferred_element_type=jnp.float32) + b1_ref[...]
    out = jnp.dot(h.astype(MXU_INPUT_DTYPE), w2_ref[...].astype(MXU_INPUT_DTYPE),
                  preferred_element_type=jnp.float32) + b2_ref[...]
    o_ref[...] = out.astype(o_ref.dtype)


def fc_fused(flat, wf1, bf1, wf2, bf2, *, tm_cap=256):
    M, K1 = flat.shape
    K1b, N1 = wf1.shape
    N1b, N2 = wf2.shape
    assert K1 == K1b and N1 == N1b
    m_pad = _round_up(M, 8)
    tm = min(tm_cap, m_pad)
    m_pad = _round_up(m_pad, tm)
    if m_pad != M:
        flat = jnp.pad(flat, ((0, m_pad - M), (0, 0)))
    grid = (m_pad // tm,)
    cost = pl.CostEstimate(
        flops=2 * m_pad * (K1 * N1 + N1 * N2),
        transcendentals=0,
        bytes_accessed=4 * (m_pad * K1 + K1 * N1 + N1 * N2 + m_pad * N2),
    )
    out = pl.pallas_call(
        _fc_fused_kernel,
        out_shape=jax.ShapeDtypeStruct((m_pad, N2), jnp.float32),
        grid=grid,
        in_specs=[
            pl.BlockSpec((tm, K1), lambda i: (i, 0)),
            pl.BlockSpec((K1, N1), lambda i: (0, 0)),
            pl.BlockSpec((1, N1), lambda i: (0, 0)),
            pl.BlockSpec((N1, N2), lambda i: (0, 0)),
            pl.BlockSpec((1, N2), lambda i: (0, 0)),
        ],
        out_specs=pl.BlockSpec((tm, N2), lambda i: (i, 0)),
        compiler_params=pltpu.CompilerParams(
            dimension_semantics=("parallel",),
            vmem_limit_bytes=32 * 1024 * 1024,
        ),
        cost_estimate=cost,
    )(flat, wf1, bf1.reshape(1, N1), wf2, bf2.reshape(1, N2))
    return out[:M]


# ---------------------------------------------------------------------------
# JAX glue: channels-first im2col (pure data movement, rows ordered (i, j, c))
# ---------------------------------------------------------------------------
def im2col_cf(x_cf, kh, kw, stride):
    # x_cf: [C, B, H, W] -> patches [kh*kw*C, B*oh*ow]
    C, B, H, W = x_cf.shape
    oh = (H - kh) // stride + 1
    ow = (W - kw) // stride + 1
    rows = []
    for i in range(kh):
        for j in range(kw):
            rows.append(
                x_cf[:, :, i:i + stride * oh:stride, j:j + stride * ow:stride]
                .reshape(C, B * oh * ow)
            )
    return jnp.concatenate(rows, axis=0), oh, ow


# ---------------------------------------------------------------------------
# Parameters: PyTorch-layout init, then a ONE-TIME re-layout for the kernels.
# ---------------------------------------------------------------------------
def init_params(key, state_dims, action_dims):
    ks = jax.random.split(key, 8)

    def u(k, shape, fan_in):
        bound = 1.0 / jnp.sqrt(jnp.float32(fan_in))
        return jax.random.uniform(k, shape, jnp.float32, -bound, bound)

    p = {}
    p["w1"] = u(ks[0], (16, state_dims, 8, 8), state_dims * 8 * 8)   # [out,in,kh,kw]
    p["b1"] = u(ks[1], (16,), state_dims * 8 * 8)
    p["w2"] = u(ks[2], (32, 16, 4, 4), 16 * 4 * 4)
    p["b2"] = u(ks[3], (32,), 16 * 4 * 4)
    p["wf1"] = u(ks[4], (256, 32 * 9 * 9), 32 * 9 * 9)               # [out,in]
    p["bf1"] = u(ks[5], (256,), 32 * 9 * 9)
    p["wf2"] = u(ks[6], (action_dims, 256), 256)
    p["bf2"] = u(ks[7], (action_dims,), 256)
    return p


def prepare_params(params, action_dims):
    """One-time weight re-layout so forward() does no per-step transposes."""
    C = params["w1"].shape[1]
    kp = {}
    # conv weights -> (Cout, kh*kw*Cin), row order (i, j, c) to match im2col_cf
    kp["w1"] = jnp.transpose(params["w1"], (0, 2, 3, 1)).reshape(16, 8 * 8 * C)
    kp["b1"] = params["b1"]
    kp["w2"] = jnp.transpose(params["w2"], (0, 2, 3, 1)).reshape(32, 4 * 4 * 16)
    kp["b2"] = params["b2"]
    # fc weights pre-transposed; fc2 padded to 128 output lanes (dense store)
    kp["wf1"] = jnp.asarray(params["wf1"].T)                         # (2592, 256)
    kp["bf1"] = params["bf1"]
    n2 = _round_up(action_dims, 128)
    kp["wf2"] = jnp.pad(jnp.asarray(params["wf2"].T),
                        ((0, 0), (0, n2 - action_dims)))             # (256, 128)
    kp["bf2"] = jnp.pad(params["bf2"], (0, n2 - action_dims))
    return kp


# ---------------------------------------------------------------------------
# Forward pass — all hot-path matmul/bias/relu compute runs in Pallas kernels.
# ---------------------------------------------------------------------------
@functools.partial(jax.jit, static_argnames="action_dims")
def forward(kparams, x_nchw, *, action_dims):
    B, C, H, W = x_nchw.shape
    x_cf = jnp.transpose(x_nchw, (1, 0, 2, 3))            # [C, B, H, W]

    # conv1 (k=8, s=4) + relu
    p1, oh1, ow1 = im2col_cf(x_cf, 8, 8, 4)
    y1 = conv_matmul(kparams["w1"], p1, kparams["b1"], relu=True)
    y1 = y1.reshape(16, B, oh1, ow1)

    # conv2 (k=4, s=2) + relu
    p2, oh2, ow2 = im2col_cf(y1, 4, 4, 2)
    y2 = conv_matmul(kparams["w2"], p2, kparams["b2"], relu=True)
    y2 = y2.reshape(32, B, oh2, ow2)

    # PyTorch's x.view(-1, 32*9*9) flattens NCHW -> feature order (c, h, w)
    flat = jnp.transpose(y2, (1, 0, 2, 3)).reshape(B, 32 * oh2 * ow2)

    # fused fc1 -> fc2 (no relu between, matching the reference forward)
    out = fc_fused(flat, kparams["wf1"], kparams["bf1"],
                   kparams["wf2"], kparams["bf2"])
    return out[:, :action_dims]


# ---------------------------------------------------------------------------
# Pure-JAX reference (correctness check only)
# ---------------------------------------------------------------------------
def reference_forward(params, x):
    dn1 = jax.lax.conv_dimension_numbers(x.shape, params["w1"].shape,
                                         ("NCHW", "OIHW", "NCHW"))
    y = jax.lax.conv_general_dilated(x, params["w1"], (4, 4), "VALID",
                                     dimension_numbers=dn1)
    y = jax.nn.relu(y + params["b1"][None, :, None, None])
    dn2 = jax.lax.conv_dimension_numbers(y.shape, params["w2"].shape,
                                         ("NCHW", "OIHW", "NCHW"))
    y = jax.lax.conv_general_dilated(y, params["w2"], (2, 2), "VALID",
                                     dimension_numbers=dn2)
    y = jax.nn.relu(y + params["b2"][None, :, None, None])
    y = y.reshape(y.shape[0], -1)
    y = y @ params["wf1"].T + params["bf1"]
    y = y @ params["wf2"].T + params["bf2"]
    return y


if __name__ == "__main__":
    key = jax.random.PRNGKey(0)
    kx, kp = jax.random.split(key)

    state_dims, action_dims, batch = 4, 6, 2
    # 84x84 spatial size is implied by in_features = 32 * 9 * 9
    x = jax.random.normal(kx, (batch, state_dims, 84, 84), jnp.float32)
    params = init_params(kp, state_dims, action_dims)
    kparams = prepare_params(params, action_dims)       # one-time re-layout

    out = jax.block_until_ready(forward(kparams, x, action_dims=action_dims))
    assert out.shape == (batch, action_dims)

    ref = reference_forward(params, x)
    tol = 1e-3 if MXU_INPUT_DTYPE == jnp.float32 else 2e-2
    assert jnp.allclose(out, ref, atol=tol, rtol=tol), "mismatch vs reference"

    print("KERNEL_OK")
</pallas_src>

<mosaic_0001>
module attributes {stable_mosaic.version = 11 : i64} {
  func.func @_conv_mm_kernel(%arg0: i32, %arg1: memref<16x256xf32, #tpu.memory_space<vmem>>, %arg2: memref<256x512xf32, #tpu.memory_space<vmem>>, %arg3: memref<16x1xf32, #tpu.memory_space<vmem>>, %arg4: memref<16x512xf32, #tpu.memory_space<vmem>>) attributes {dimension_semantics = [#tpu.dimension_semantics<parallel>], iteration_bounds = array<i64: 2>, scalar_prefetch = 0 : i64, scratch_operands = 0 : i64, tpu.core_type = #tpu.core_type<tc>, window_params = [{pipeline_mode = #tpu.pipeline_mode<synchronous>, transform_indices = @transform_0, window_bounds = array<i64: 16, 256>}, {transform_indices = @transform_1, window_bounds = array<i64: 256, 512>}, {pipeline_mode = #tpu.pipeline_mode<synchronous>, transform_indices = @transform_2, window_bounds = array<i64: 16, 1>}, {transform_indices = @transform_3, window_bounds = array<i64: 16, 512>}]} {
    %c0 = arith.constant 0 : index
    %c0_0 = arith.constant 0 : index
    %0 = vector.load %arg1[%c0, %c0_0] : memref<16x256xf32, #tpu.memory_space<vmem>>, vector<16x256xf32>
    %c0_1 = arith.constant 0 : index
    %c0_2 = arith.constant 0 : index
    %1 = vector.load %arg2[%c0_1, %c0_2] : memref<256x512xf32, #tpu.memory_space<vmem>>, vector<256x512xf32>
    %cst = arith.constant dense<0.000000e+00> : vector<16x512xf32>
    %2 = tpu.matmul %0, %1, %cst {dimension_numbers = #tpu.dot_dimension_numbers<[1], [0], [0], [1], [0, 0, 1, 1], [], []>} : vector<16x256xf32>, vector<256x512xf32>, vector<16x512xf32> -> vector<16x512xf32>
    %c0_3 = arith.constant 0 : index
    %c0_4 = arith.constant 0 : index
    %3 = vector.load %arg3[%c0_3, %c0_4] : memref<16x1xf32, #tpu.memory_space<vmem>>, vector<16x1xf32>
    %4 = vector.broadcast %3 : vector<16x1xf32> to vector<16x512xf32>
    %5 = arith.addf %2, %4 : vector<16x512xf32>
    %cst_5 = arith.constant 0.000000e+00 : f32
    %6 = vector.broadcast %cst_5 : f32 to vector<16x512xf32>
    %7 = arith.maximumf %5, %6 : vector<16x512xf32>
    %c0_6 = arith.constant 0 : index
    %c0_7 = arith.constant 0 : index
    %8 = vector.load %arg4[%c0_6, %c0_7] : memref<16x512xf32, #tpu.memory_space<vmem>>, vector<16x512xf32>
    tpu.vector_store %arg4[%c0_6, %c0_7], %7 {strides = array<i32>} : memref<16x512xf32, #tpu.memory_space<vmem>>, vector<16x512xf32>,
    return
  }
  func.func @transform_0(%arg0: i32) -> (i32, i32) {
    %c0_i32 = arith.constant 0 : i32
    %c0_i32_0 = arith.constant 0 : i32
    %c0_i32_1 = arith.constant 0 : i32
    return %c0_i32, %c0_i32_0 : i32, i32
  }
  func.func @transform_1(%arg0: i32) -> (i32, i32) {
    %c0_i32 = arith.constant 0 : i32
    %c0_i32_0 = arith.constant 0 : i32
    return %c0_i32, %arg0 : i32, i32
  }
  func.func @transform_2(%arg0: i32) -> (i32, i32) {
    %c0_i32 = arith.constant 0 : i32
    %c0_i32_0 = arith.constant 0 : i32
    %c0_i32_1 = arith.constant 0 : i32
    return %c0_i32, %c0_i32_0 : i32, i32
  }
  func.func @transform_3(%arg0: i32) -> (i32, i32) {
    %c0_i32 = arith.constant 0 : i32
    %c0_i32_0 = arith.constant 0 : i32
    return %c0_i32, %arg0 : i32, i32
  }
}

module attributes {stable_mosaic.version = 11 : i64} {
  func.func @_conv_mm_kernel(%arg0: i32, %arg1: memref<32x256xf32, #tpu.memory_space<vmem>>, %arg2: memref<256x256xf32, #tpu.memory_space<vmem>>, %arg3: memref<32x1xf32, #tpu.memory_space<vmem>>, %arg4: memref<32x256xf32, #tpu.memory_space<vmem>>) attributes {dimension_semantics = [#tpu.dimension_semantics<parallel>], iteration_bounds = array<i64: 1>, scalar_prefetch = 0 : i64, scratch_operands = 0 : i64, tpu.core_type = #tpu.core_type<tc>, window_params = [{pipeline_mode = #tpu.pipeline_mode<synchronous>, transform_indices = @transform_0, window_bounds = array<i64: 32, 256>}, {transform_indices = @transform_1, window_bounds = array<i64: 256, 256>}, {pipeline_mode = #tpu.pipeline_mode<synchronous>, transform_indices = @transform_2, window_bounds = array<i64: 32, 1>}, {transform_indices = @transform_3, window_bounds = array<i64: 32, 256>}]} {
    %c0 = arith.constant 0 : index
    %c0_0 = arith.constant 0 : index
    %0 = vector.load %arg1[%c0, %c0_0] : memref<32x256xf32, #tpu.memory_space<vmem>>, vector<32x256xf32>
    %c0_1 = arith.constant 0 : index
    %c0_2 = arith.constant 0 : index
    %1 = vector.load %arg2[%c0_1, %c0_2] : memref<256x256xf32, #tpu.memory_space<vmem>>, vector<256x256xf32>
    %cst = arith.constant dense<0.000000e+00> : vector<32x256xf32>
    %2 = tpu.matmul %0, %1, %cst {dimension_numbers = #tpu.dot_dimension_numbers<[1], [0], [0], [1], [0, 0, 1, 1], [], []>} : vector<32x256xf32>, vector<256x256xf32>, vector<32x256xf32> -> vector<32x256xf32>
    %c0_3 = arith.constant 0 : index
    %c0_4 = arith.constant 0 : index
    %3 = vector.load %arg3[%c0_3, %c0_4] : memref<32x1xf32, #tpu.memory_space<vmem>>, vector<32x1xf32>
    %4 = vector.broadcast %3 : vector<32x1xf32> to vector<32x256xf32>
    %5 = arith.addf %2, %4 : vector<32x256xf32>
    %cst_5 = arith.constant 0.000000e+00 : f32
    %6 = vector.broadcast %cst_5 : f32 to vector<32x256xf32>
    %7 = arith.maximumf %5, %6 : vector<32x256xf32>
    %c0_6 = arith.constant 0 : index
    %c0_7 = arith.constant 0 : index
    %8 = vector.load %arg4[%c0_6, %c0_7] : memref<32x256xf32, #tpu.memory_space<vmem>>, vector<32x256xf32>
    tpu.vector_store %arg4[%c0_6, %c0_7], %7 {strides = array<i32>} : memref<32x256xf32, #tpu.memory_space<vmem>>, vector<32x256xf32>,
    return
  }
  func.func @transform_0(%arg0: i32) -> (i32, i32) {
    %c0_i32 = arith.constant 0 : i32
    %c0_i32_0 = arith.constant 0 : i32
    %c0_i32_1 = arith.constant 0 : i32
    return %c0_i32, %c0_i32_0 : i32, i32
  }
  func.func @transform_1(%arg0: i32) -> (i32, i32) {
    %c0_i32 = arith.constant 0 : i32
    %c0_i32_0 = arith.constant 0 : i32
    return %c0_i32, %arg0 : i32, i32
  }
  func.func @transform_2(%arg0: i32) -> (i32, i32) {
    %c0_i32 = arith.constant 0 : i32
    %c0_i32_0 = arith.constant 0 : i32
    %c0_i32_1 = arith.constant 0 : i32
    return %c0_i32, %c0_i32_0 : i32, i32
  }
  func.func @transform_3(%arg0: i32) -> (i32, i32) {
    %c0_i32 = arith.constant 0 : i32
    %c0_i32_0 = arith.constant 0 : i32
    return %c0_i32, %arg0 : i32, i32
  }
}

module attributes {stable_mosaic.version = 11 : i64} {
  func.func @_fc_fused_kernel(%arg0: i32, %arg1: memref<8x2592xf32, #tpu.memory_space<vmem>>, %arg2: memref<2592x256xf32, #tpu.memory_space<vmem>>, %arg3: memref<1x256xf32, #tpu.memory_space<vmem>>, %arg4: memref<256x128xf32, #tpu.memory_space<vmem>>, %arg5: memref<1x128xf32, #tpu.memory_space<vmem>>, %arg6: memref<8x128xf32, #tpu.memory_space<vmem>>) attributes {dimension_semantics = [#tpu.dimension_semantics<parallel>], iteration_bounds = array<i64: 1>, scalar_prefetch = 0 : i64, scratch_operands = 0 : i64, tpu.core_type = #tpu.core_type<tc>, window_params = [{transform_indices = @transform_0, window_bounds = array<i64: 8, 2592>}, {pipeline_mode = #tpu.pipeline_mode<synchronous>, transform_indices = @transform_1, window_bounds = array<i64: 2592, 256>}, {pipeline_mode = #tpu.pipeline_mode<synchronous>, transform_indices = @transform_2, window_bounds = array<i64: 1, 256>}, {pipeline_mode = #tpu.pipeline_mode<synchronous>, transform_indices = @transform_3, window_bounds = array<i64: 256, 128>}, {pipeline_mode = #tpu.pipeline_mode<synchronous>, transform_indices = @transform_4, window_bounds = array<i64: 1, 128>}, {transform_indices = @transform_5, window_bounds = array<i64: 8, 128>}]} {
    %c0 = arith.constant 0 : index
    %c0_0 = arith.constant 0 : index
    %0 = vector.load %arg1[%c0, %c0_0] : memref<8x2592xf32, #tpu.memory_space<vmem>>, vector<8x2592xf32>
    %c0_1 = arith.constant 0 : index
    %c0_2 = arith.constant 0 : index
    %1 = vector.load %arg2[%c0_1, %c0_2] : memref<2592x256xf32, #tpu.memory_space<vmem>>, vector<2592x256xf32>
    %cst = arith.constant dense<0.000000e+00> : vector<8x256xf32>
    %2 = tpu.matmul %0, %1, %cst {dimension_numbers = #tpu.dot_dimension_numbers<[1], [0], [0], [1], [0, 0, 1, 1], [], []>} : vector<8x2592xf32>, vector<2592x256xf32>, vector<8x256xf32> -> vector<8x256xf32>
    %c0_3 = arith.constant 0 : index
    %c0_4 = arith.constant 0 : index
    %3 = vector.load %arg3[%c0_3, %c0_4] : memref<1x256xf32, #tpu.memory_space<vmem>>, vector<1x256xf32>
    %4 = vector.broadcast %3 : vector<1x256xf32> to vector<8x256xf32>
    %5 = arith.addf %2, %4 : vector<8x256xf32>
    %c0_5 = arith.constant 0 : index
    %c0_6 = arith.constant 0 : index
    %6 = vector.load %arg4[%c0_5, %c0_6] : memref<256x128xf32, #tpu.memory_space<vmem>>, vector<256x128xf32>
    %cst_7 = arith.constant dense<0.000000e+00> : vector<8x128xf32>
    %7 = tpu.matmul %5, %6, %cst_7 {dimension_numbers = #tpu.dot_dimension_numbers<[1], [0], [0], [1], [0, 0, 1, 1], [], []>} : vector<8x256xf32>, vector<256x128xf32>, vector<8x128xf32> -> vector<8x128xf32>
    %c0_8 = arith.constant 0 : index
    %c0_9 = arith.constant 0 : index
    %8 = vector.load %arg5[%c0_8, %c0_9] : memref<1x128xf32, #tpu.memory_space<vmem>>, vector<1x128xf32>
    %9 = vector.broadcast %8 : vector<1x128xf32> to vector<8x128xf32>
    %10 = arith.addf %7, %9 : vector<8x128xf32>
    %c0_10 = arith.constant 0 : index
    %c0_11 = arith.constant 0 : index
    %11 = vector.load %arg6[%c0_10, %c0_11] : memref<8x128xf32, #tpu.memory_space<vmem>>, vector<8x128xf32>
    tpu.vector_store %arg6[%c0_10, %c0_11], %10 {strides = array<i32>} : memref<8x128xf32, #tpu.memory_space<vmem>>, vector<8x128xf32>,
    return
  }
  func.func @transform_0(%arg0: i32) -> (i32, i32) {
    %c0_i32 = arith.constant 0 : i32
    %c0_i32_0 = arith.constant 0 : i32
    return %arg0, %c0_i32 : i32, i32
  }
  func.func @transform_1(%arg0: i32) -> (i32, i32) {
    %c0_i32 = arith.constant 0 : i32
    %c0_i32_0 = arith.constant 0 : i32
    %c0_i32_1 = arith.constant 0 : i32
    return %c0_i32, %c0_i32_0 : i32, i32
  }
  func.func @transform_2(%arg0: i32) -> (i32, i32) {
    %c0_i32 = arith.constant 0 : i32
    %c0_i32_0 = arith.constant 0 : i32
    %c0_i32_1 = arith.constant 0 : i32
    return %c0_i32, %c0_i32_0 : i32, i32
  }
  func.func @transform_3(%arg0: i32) -> (i32, i32) {
    %c0_i32 = arith.constant 0 : i32
    %c0_i32_0 = arith.constant 0 : i32
    %c0_i32_1 = arith.constant 0 : i32
    return %c0_i32, %c0_i32_0 : i32, i32
  }
  func.func @transform_4(%arg0: i32) -> (i32, i32) {
    %c0_i32 = arith.constant 0 : i32
    %c0_i32_0 = arith.constant 0 : i32
    %c0_i32_1 = arith.constant 0 : i32
    return %c0_i32, %c0_i32_0 : i32, i32
  }
  func.func @transform_5(%arg0: i32) -> (i32, i32) {
    %c0_i32 = arith.constant 0 : i32
    %c0_i32_0 = arith.constant 0 : i32
    return %arg0, %c0_i32 : i32, i32
  }
}

</mosaic_0001>

<bundles_post_ra>
// kernel: forward.3
= control target key start
LH: loop header
LB: loop body
LE: loop exit
PB: predicated region body
PF: predicated region fallthrough
CT: control target
= control target key end

     0   :  { %s940_s12 = smov 0   ;;  %s942_s13 = smov 0   ;;  %s1430_s0 = inlined_call_operand.vmem [shape: f32[16,256], index: 0, kind: input, shape index: {}]   ;;  %s1431_s1 = inlined_call_operand.vmem [shape: f32[256,1024], index: 1, kind: input, shape index: {}]   ;;  %s1432_s2 = inlined_call_operand.vmem [shape: f32[16,1], index: 2, kind: input, shape index: {}]   ;;  %s1433_s3 = inlined_call_operand.vmem [shape: f32[16,1024], index: 3, kind: output, shape index: {}]  }
   0x1   :  { %s944_s14 = smov 0  }
   0x2 LB: > { %s852_s15 = sadd.s32 4294967295, %s917_s14   ;;  %s957_s16 = sadd.s32 1, %s917_s14   ;;  %s917_s14 = sphi %s944_s14, %s1437_s14   ;;  %s913_s13 = sphi %s942_s13, %s1436_s13   ;;  %s909_s12 = sphi %s940_s12, %s1435_s12  }
   0x3   : > { %s38_s17 = ssub.s32 %s917_s14, %s957_s16  ;;  %s41_s18 = sadd.s32 1, %s913_s13 }
   0x4   : > { %p39_p0 = scmp.eq.s32.totalorder %s38_s17, 0  ;;  %p48_p1 = scmp.ne.s32.totalorder %s913_s13, %s909_s12 }
   0x5   : > { %p49_p2 = scmp.eq.s32.totalorder %s917_s14, 0  ;;  %p99_p3 = scmp.eq.s32.totalorder %s852_s15, 1 }
   0x6   : > { %s968_s19 = scalar_select %p39_p0, %s913_s13, %s41_s18  }
   0x7   : > { %p50_p4 = por %p49_p2, %p48_p1  ;;  %p970_p5 = por %p99_p3, %p48_p1 }
   0x8   : > { %p855_p6 = scmp.ge.s32.totalorder %s917_s14, 2 }
   0xa   : > { %127 = sbr.rel (%p855_p6) target bundleno = 83 (0x53), region = 24 }
   0xf   : > { %130 = sbr.rel (!%p50_p4) target bundleno = 83 (0x53), region = 28  ;;  %s132_s21 = sand.u32 (%p50_p4), 1, %s913_s13  }
  0x10   : > { %s867_s22 = sshll.u32 (%p50_p4), %s917_s14, 5  ;;  %s856_s23 = sshll.u32 (%p50_p4), %s132_s21, 10 }
  0x11   : > { %s980_s26 = scalar_lea.vmem (%p50_p4), %s1431_s1, %s867_s22  ;;  %s985_s27 = scalar_lea.vmem (%p50_p4), [#allocation2], %s856_s23 }
  0x12   : > { %v150_v0 = vld [vmem:[%s980_s26] sm:$0xff] (%p50_p4)  ;;  %v152_v1 = vld [vmem:[%s980_s26 + $0x8] sm:$0xff] (%p50_p4)  ;;  %v154_v2 = vld [vmem:[%s980_s26 + $0x10] sm:$0xff] (%p50_p4) }
  0x13   : > { %151 = vst [vmem:[%s985_s27] sm:$0xff] (%p50_p4), %v150_v0  ;;  %153 = vst [vmem:[%s985_s27 + $0x8] sm:$0xff] (%p50_p4), %v152_v1  ;;  %v156_v3 = vld [vmem:[%s980_s26 + $0x18] sm:$0xff] (%p50_p4)  ;;  %v158_v4 = vld [vmem:[%s980_s26 + $0x40] sm:$0xff] (%p50_p4) }
  0x14   : > { %155 = vst [vmem:[%s985_s27 + $0x10] sm:$0xff] %v154_v2  ;;  %v160_v5 = vld [vmem:[%s980_s26 + $0x48] sm:$0xff]  ;;  %157 = vst [vmem:[%s985_s27 + $0x18] sm:$0xff] %v156_v3  ;;  %v162_v6 = vld [vmem:[%s980_s26 + $0x50] sm:$0xff] }
  0x15   : > { %159 = vst [vmem:[%s985_s27 + $0x20] sm:$0xff] %v158_v4  ;;  %161 = vst [vmem:[%s985_s27 + $0x28] sm:$0xff] %v160_v5  ;;  %v164_v7 = vld [vmem:[%s980_s26 + $0x58] sm:$0xff]  ;;  %v166_v8 = vld [vmem:[%s980_s26 + $0x80] sm:$0xff] }
  0x16   : > { %163 = vst [vmem:[%s985_s27 + $0x30] sm:$0xff] %v162_v6  ;;  %165 = vst [vmem:[%s985_s27 + $0x38] sm:$0xff] %v164_v7  ;;  %v168_v9 = vld [vmem:[%s980_s26 + $0x88] sm:$0xff]  ;;  %v170_v10 = vld [vmem:[%s980_s26 + $0x90] sm:$0xff] }
  0x17   : > { %167 = vst [vmem:[%s985_s27 + $0x40] sm:$0xff] %v166_v8  ;;  %v172_v11 = vld [vmem:[%s980_s26 + $0x98] sm:$0xff]  ;;  %169 = vst [vmem:[%s985_s27 + $0x48] sm:$0xff] %v168_v9  ;;  %v174_v12 = vld [vmem:[%s980_s26 + $0xc0] sm:$0xff] }
  0x18   : > { %171 = vst [vmem:[%s985_s27 + $0x50] sm:$0xff] %v170_v10  ;;  %173 = vst [vmem:[%s985_s27 + $0x58] sm:$0xff] %v172_v11  ;;  %v176_v13 = vld [vmem:[%s980_s26 + $0xc8] sm:$0xff]  ;;  %v178_v14 = vld [vmem:[%s980_s26 + $0xd0] sm:$0xff] }
  0x19   : > { %175 = vst [vmem:[%s985_s27 + $0x60] sm:$0xff] %v174_v12  ;;  %177 = vst [vmem:[%s985_s27 + $0x68] sm:$0xff] %v176_v13  ;;  %v180_v15 = vld [vmem:[%s980_s26 + $0xd8] sm:$0xff]  ;;  %v182_v16 = vld [vmem:[%s980_s26 + $0x100] sm:$0xff] }
  0x1a   : > { %179 = vst [vmem:[%s985_s27 + $0x70] sm:$0xff] %v178_v14  ;;  %v184_v17 = vld [vmem:[%s980_s26 + $0x108] sm:$0xff]  ;;  %181 = vst [vmem:[%s985_s27 + $0x78] sm:$0xff] %v180_v15  ;;  %v186_v18 = vld [vmem:[%s980_s26 + $0x110] sm:$0xff] }
  0x1b   : > { %183 = vst [vmem:[%s985_s27 + $0x80] sm:$0xff] %v182_v16  ;;  %185 = vst [vmem:[%s985_s27 + $0x88] sm:$0xff] %v184_v17  ;;  %v188_v19 = vld [vmem:[%s980_s26 + $0x118] sm:$0xff]  ;;  %v190_v20 = vld [vmem:[%s980_s26 + $0x140] sm:$0xff] }
  0x1c   : > { %187 = vst [vmem:[%s985_s27 + $0x90] sm:$0xff] %v186_v18  ;;  %189 = vst [vmem:[%s985_s27 + $0x98] sm:$0xff] %v188_v19  ;;  %v192_v21 = vld [vmem:[%s980_s26 + $0x148] sm:$0xff]  ;;  %v194_v22 = vld [vmem:[%s980_s26 + $0x150] sm:$0xff] }
  0x1d   : > { %191 = vst [vmem:[%s985_s27 + $0xa0] sm:$0xff] %v190_v20  ;;  %v196_v23 = vld [vmem:[%s980_s26 + $0x158] sm:$0xff]  ;;  %193 = vst [vmem:[%s985_s27 + $0xa8] sm:$0xff] %v192_v21  ;;  %v198_v24 = vld [vmem:[%s980_s26 + $0x180] sm:$0xff] }
  0x1e   : > { %195 = vst [vmem:[%s985_s27 + $0xb0] sm:$0xff] %v194_v22  ;;  %197 = vst [vmem:[%s985_s27 + $0xb8] sm:$0xff] %v196_v23  ;;  %v200_v25 = vld [vmem:[%s980_s26 + $0x188] sm:$0xff]  ;;  %v202_v26 = vld [vmem:[%s980_s26 + $0x190] sm:$0xff] }
  0x1f   : > { %199 = vst [vmem:[%s985_s27 + $0xc0] sm:$0xff] %v198_v24  ;;  %201 = vst [vmem:[%s985_s27 + $0xc8] sm:$0xff] %v200_v25  ;;  %v204_v27 = vld [vmem:[%s980_s26 + $0x198] sm:$0xff]  ;;  %v206_v28 = vld [vmem:[%s980_s26 + $0x1c0] sm:$0xff] }
  0x20   : > { %203 = vst [vmem:[%s985_s27 + $0xd0] sm:$0xff] %v202_v26  ;;  %v208_v29 = vld [vmem:[%s980_s26 + $0x1c8] sm:$0xff]  ;;  %205 = vst [vmem:[%s985_s27 + $0xd8] sm:$0xff] %v204_v27  ;;  %v210_v30 = vld [vmem:[%s980_s26 + $0x1d0] sm:$0xff] }
  0x21   : > { %207 = vst [vmem:[%s985_s27 + $0xe0] sm:$0xff] %v206_v28  ;;  %209 = vst [vmem:[%s985_s27 + $0xe8] sm:$0xff] %v208_v29  ;;  %v212_v31 = vld [vmem:[%s980_s26 + $0x1d8] sm:$0xff]  ;;  %v214_v32 = vld [vmem:[%s980_s26 + $0x200] sm:$0xff] }
  0x22   : > { %211 = vst [vmem:[%s985_s27 + $0xf0] sm:$0xff] %v210_v30  ;;  %213 = vst [vmem:[%s985_s27 + $0xf8] sm:$0xff] %v212_v31  ;;  %v216_v33 = vld [vmem:[%s980_s26 + $0x208] sm:$0xff]  ;;  %v218_v34 = vld [vmem:[%s980_s26 + $0x210] sm:$0xff] }
  0x23   : > { %215 = vst [vmem:[%s985_s27 + $0x100] sm:$0xff] %v214_v32  ;;  %v220_v35 = vld [vmem:[%s980_s26 + $0x218] sm:$0xff]  ;;  %217 = vst [vmem:[%s985_s27 + $0x108] sm:$0xff] %v216_v33  ;;  %v222_v36 = vld [vmem:[%s980_s26 + $0x240] sm:$0xff] }
  0x24   : > { %219 = vst [vmem:[%s985_s27 + $0x110] sm:$0xff] %v218_v34  ;;  %221 = vst [vmem:[%s985_s27 + $0x118] sm:$0xff] %v220_v35  ;;  %v224_v37 = vld [vmem:[%s980_s26 + $0x248] sm:$0xff]  ;;  %v226_v38 = vld [vmem:[%s980_s26 + $0x250] sm:$0xff] }
  0x25   : > { %223 = vst [vmem:[%s985_s27 + $0x120] sm:$0xff] %v222_v36  ;;  %225 = vst [vmem:[%s985_s27 + $0x128] sm:$0xff] %v224_v37  ;;  %v228_v39 = vld [vmem:[%s980_s26 + $0x258] sm:$0xff]  ;;  %v230_v40 = vld [vmem:[%s980_s26 + $0x280] sm:$0xff] }
  0x26   : > { %227 = vst [vmem:[%s985_s27 + $0x130] sm:$0xff] %v226_v38  ;;  %v232_v41 = vld [vmem:[%s980_s26 + $0x288] sm:$0xff]  ;;  %229 = vst [vmem:[%s985_s27 + $0x138] sm:$0xff] %v228_v39  ;;  %v234_v42 = vld [vmem:[%s980_s26 + $0x290] sm:$0xff] }
  0x27   : > { %231 = vst [vmem:[%s985_s27 + $0x140] sm:$0xff] %v230_v40  ;;  %233 = vst [vmem:[%s985_s27 + $0x148] sm:$0xff] %v232_v41  ;;  %v236_v43 = vld [vmem:[%s980_s26 + $0x298] sm:$0xff]  ;;  %v238_v44 = vld [vmem:[%s980_s26 + $0x2c0] sm:$0xff] }
  0x28   : > { %235 = vst [vmem:[%s985_s27 + $0x150] sm:$0xff] %v234_v42  ;;  %237 = vst [vmem:[%s985_s27 + $0x158] sm:$0xff] %v236_v43  ;;  %v240_v45 = vld [vmem:[%s980_s26 + $0x2c8] sm:$0xff]  ;;  %v242_v46 = vld [vmem:[%s980_s26 + $0x2d0] sm:$0xff] }
  0x29   : > { %239 = vst [vmem:[%s985_s27 + $0x160] sm:$0xff] %v238_v44  ;;  %v244_v47 = vld [vmem:[%s980_s26 + $0x2d8] sm:$0xff]  ;;  %241 = vst [vmem:[%s985_s27 + $0x168] sm:$0xff] %v240_v45  ;;  %v246_v48 = vld [vmem:[%s980_s26 + $0x300] sm:$0xff] }
  0x2a   : > { %243 = vst [vmem:[%s985_s27 + $0x170] sm:$0xff] %v242_v46  ;;  %245 = vst [vmem:[%s985_s27 + $0x178] sm:$0xff] %v244_v47  ;;  %v248_v49 = vld [vmem:[%s980_s26 + $0x308] sm:$0xff]  ;;  %v250_v50 = vld [vmem:[%s980_s26 + $0x310] sm:$0xff] }
  0x2b   : > { %247 = vst [vmem:[%s985_s27 + $0x180] sm:$0xff] %v246_v48  ;;  %249 = vst [vmem:[%s985_s27 + $0x188] sm:$0xff] %v248_v49  ;;  %v252_v51 = vld [vmem:[%s980_s26 + $0x318] sm:$0xff]  ;;  %v254_v52 = vld [vmem:[%s980_s26 + $0x340] sm:$0xff] }
  0x2c   : > { %251 = vst [vmem:[%s985_s27 + $0x190] sm:$0xff] %v250_v50  ;;  %v256_v53 = vld [vmem:[%s980_s26 + $0x348] sm:$0xff]  ;;  %253 = vst [vmem:[%s985_s27 + $0x198] sm:$0xff] %v252_v51  ;;  %v258_v54 = vld [vmem:[%s980_s26 + $0x350] sm:$0xff] }
  0x2d   : > { %255 = vst [vmem:[%s985_s27 + $0x1a0] sm:$0xff] %v254_v52  ;;  %257 = vst [vmem:[%s985_s27 + $0x1a8] sm:$0xff] %v256_v53  ;;  %v260_v55 = vld [vmem:[%s980_s26 + $0x358] sm:$0xff]  ;;  %v262_v56 = vld [vmem:[%s980_s26 + $0x380] sm:$0xff] }
  0x2e   : > { %259 = vst [vmem:[%s985_s27 + $0x1b0] sm:$0xff] %v258_v54  ;;  %261 = vst [vmem:[%s985_s27 + $0x1b8] sm:$0xff] %v260_v55  ;;  %v264_v57 = vld [vmem:[%s980_s26 + $0x388] sm:$0xff]  ;;  %v266_v58 = vld [vmem:[%s980_s26 + $0x390] sm:$0xff] }
  0x2f   : > { %263 = vst [vmem:[%s985_s27 + $0x1c0] sm:$0xff] %v262_v56  ;;  %v268_v59 = vld [vmem:[%s980_s26 + $0x398] sm:$0xff]  ;;  %265 = vst [vmem:[%s985_s27 + $0x1c8] sm:$0xff] %v264_v57  ;;  %v270_v60 = vld [vmem:[%s980_s26 + $0x3c0] sm:$0xff] }
  0x30   : > { %267 = vst [vmem:[%s985_s27 + $0x1d0] sm:$0xff] %v266_v58  ;;  %269 = vst [vmem:[%s985_s27 + $0x1d8] sm:$0xff] %v268_v59  ;;  %v272_v61 = vld [vmem:[%s980_s26 + $0x3c8] sm:$0xff]  ;;  %v274_v62 = vld [vmem:[%s980_s26 + $0x3d0] sm:$0xff] }
  0x31   : > { %271 = vst [vmem:[%s985_s27 + $0x1e0] sm:$0xff] %v270_v60  ;;  %273 = vst [vmem:[%s985_s27 + $0x1e8] sm:$0xff] %v272_v61  ;;  %v276_v63 = vld [vmem:[%s980_s26 + $0x3d8] sm:$0xff]  ;;  %v278_v0 = vld [vmem:[%s980_s26 + $0x400] sm:$0xff] }
  0x32   : > { %275 = vst [vmem:[%s985_s27 + $0x1f0] sm:$0xff] %v274_v62  ;;  %v280_v1 = vld [vmem:[%s980_s26 + $0x408] sm:$0xff]  ;;  %277 = vst [vmem:[%s985_s27 + $0x1f8] sm:$0xff] %v276_v63  ;;  %v282_v2 = vld [vmem:[%s980_s26 + $0x410] sm:$0xff] }
  0x33   : > { %279 = vst [vmem:[%s985_s27 + $0x200] sm:$0xff] %v278_v0  ;;  %281 = vst [vmem:[%s985_s27 + $0x208] sm:$0xff] %v280_v1  ;;  %v284_v3 = vld [vmem:[%s980_s26 + $0x418] sm:$0xff]  ;;  %v286_v4 = vld [vmem:[%s980_s26 + $0x440] sm:$0xff] }
  0x34   : > { %283 = vst [vmem:[%s985_s27 + $0x210] sm:$0xff] %v282_v2  ;;  %285 = vst [vmem:[%s985_s27 + $0x218] sm:$0xff] %v284_v3  ;;  %v288_v5 = vld [vmem:[%s980_s26 + $0x448] sm:$0xff]  ;;  %v290_v6 = vld [vmem:[%s980_s26 + $0x450] sm:$0xff] }
  0x35   : > { %287 = vst [vmem:[%s985_s27 + $0x220] sm:$0xff] %v286_v4  ;;  %v292_v7 = vld [vmem:[%s980_s26 + $0x458] sm:$0xff]  ;;  %289 = vst [vmem:[%s985_s27 + $0x228] sm:$0xff] %v288_v5  ;;  %v294_v8 = vld [vmem:[%s980_s26 + $0x480] sm:$0xff] }
  0x36   : > { %291 = vst [vmem:[%s985_s27 + $0x230] sm:$0xff] %v290_v6  ;;  %293 = vst [vmem:[%s985_s27 + $0x238] sm:$0xff] %v292_v7  ;;  %v296_v9 = vld [vmem:[%s980_s26 + $0x488] sm:$0xff]  ;;  %v298_v10 = vld [vmem:[%s980_s26 + $0x490] sm:$0xff] }
  0x37   : > { %295 = vst [vmem:[%s985_s27 + $0x240] sm:$0xff] %v294_v8  ;;  %297 = vst [vmem:[%s985_s27 + $0x248] sm:$0xff] %v296_v9  ;;  %v300_v11 = vld [vmem:[%s980_s26 + $0x498] sm:$0xff]  ;;  %v302_v12 = vld [vmem:[%s980_s26 + $0x4c0] sm:$0xff] }
  0x38   : > { %299 = vst [vmem:[%s985_s27 + $0x250] sm:$0xff] %v298_v10  ;;  %v304_v13 = vld [vmem:[%s980_s26 + $0x4c8] sm:$0xff]  ;;  %301 = vst [vmem:[%s985_s27 + $0x258] sm:$0xff] %v300_v11  ;;  %v306_v14 = vld [vmem:[%s980_s26 + $0x4d0] sm:$0xff] }
  0x39   : > { %303 = vst [vmem:[%s985_s27 + $0x260] sm:$0xff] %v302_v12  ;;  %305 = vst [vmem:[%s985_s27 + $0x268] sm:$0xff] %v304_v13  ;;  %v308_v15 = vld [vmem:[%s980_s26 + $0x4d8] sm:$0xff]  ;;  %v310_v16 = vld [vmem:[%s980_s26 + $0x500] sm:$0xff] }
  0x3a   : > { %307 = vst [vmem:[%s985_s27 + $0x270] sm:$0xff] %v306_v14  ;;  %309 = vst [vmem:[%s985_s27 + $0x278] sm:$0xff] %v308_v15  ;;  %v312_v17 = vld [vmem:[%s980_s26 + $0x508] sm:$0xff]  ;;  %v314_v18 = vld [vmem:[%s980_s26 + $0x510] sm:$0xff] }
  0x3b   : > { %311 = vst [vmem:[%s985_s27 + $0x280] sm:$0xff] %v310_v16  ;;  %v316_v19 = vld [vmem:[%s980_s26 + $0x518] sm:$0xff]  ;;  %313 = vst [vmem:[%s985_s27 + $0x288] sm:$0xff] %v312_v17  ;;  %v318_v20 = vld [vmem:[%s980_s26 + $0x540] sm:$0xff] }
  0x3c   : > { %315 = vst [vmem:[%s985_s27 + $0x290] sm:$0xff] %v314_v18  ;;  %317 = vst [vmem:[%s985_s27 + $0x298] sm:$0xff] %v316_v19  ;;  %v320_v21 = vld [vmem:[%s980_s26 + $0x548] sm:$0xff]  ;;  %v322_v22 = vld [vmem:[%s980_s26 + $0x550] sm:$0xff] }
  0x3d   : > { %319 = vst [vmem:[%s985_s27 + $0x2a0] sm:$0xff] %v318_v20  ;;  %321 = vst [vmem:[%s985_s27 + $0x2a8] sm:$0xff] %v320_v21  ;;  %v324_v23 = vld [vmem:[%s980_s26 + $0x558] sm:$0xff]  ;;  %v326_v24 = vld [vmem:[%s980_s26 + $0x580] sm:$0xff] }
  0x3e   : > { %323 = vst [vmem:[%s985_s27 + $0x2b0] sm:$0xff] %v322_v22  ;;  %v328_v25 = vld [vmem:[%s980_s26 + $0x588] sm:$0xff]  ;;  %325 = vst [vmem:[%s985_s27 + $0x2b8] sm:$0xff] %v324_v23  ;;  %v330_v26 = vld [vmem:[%s980_s26 + $0x590] sm:$0xff] }
  0x3f   : > { %327 = vst [vmem:[%s985_s27 + $0x2c0] sm:$0xff] %v326_v24  ;;  %329 = vst [vmem:[%s985_s27 + $0x2c8] sm:$0xff] %v328_v25  ;;  %v332_v27 = vld [vmem:[%s980_s26 + $0x598] sm:$0xff]  ;;  %v334_v28 = vld [vmem:[%s980_s26 + $0x5c0] sm:$0xff] }
  0x40   : > { %331 = vst [vmem:[%s985_s27 + $0x2d0] sm:$0xff] %v330_v26  ;;  %333 = vst [vmem:[%s985_s27 + $0x2d8] sm:$0xff] %v332_v27  ;;  %v336_v29 = vld [vmem:[%s980_s26 + $0x5c8] sm:$0xff]  ;;  %v338_v30 = vld [vmem:[%s980_s26 + $0x5d0] sm:$0xff] }
  0x41   : > { %335 = vst [vmem:[%s985_s27 + $0x2e0] sm:$0xff] %v334_v28  ;;  %v340_v31 = vld [vmem:[%s980_s26 + $0x5d8] sm:$0xff]  ;;  %337 = vst [vmem:[%s985_s27 + $0x2e8] sm:$0xff] %v336_v29  ;;  %v342_v32 = vld [vmem:[%s980_s26 + $0x600] sm:$0xff] }
  0x42   : > { %339 = vst [vmem:[%s985_s27 + $0x2f0] sm:$0xff] %v338_v30  ;;  %341 = vst [vmem:[%s985_s27 + $0x2f8] sm:$0xff] %v340_v31  ;;  %v344_v33 = vld [vmem:[%s980_s26 + $0x608] sm:$0xff]  ;;  %v346_v34 = vld [vmem:[%s980_s26 + $0x610] sm:$0xff] }
  0x43   : > { %343 = vst [vmem:[%s985_s27 + $0x300] sm:$0xff] %v342_v32  ;;  %345 = vst [vmem:[%s985_s27 + $0x308] sm:$0xff] %v344_v33  ;;  %v348_v35 = vld [vmem:[%s980_s26 + $0x618] sm:$0xff]  ;;  %v350_v36 = vld [vmem:[%s980_s26 + $0x640] sm:$0xff] }
  0x44   : > { %347 = vst [vmem:[%s985_s27 + $0x310] sm:$0xff] %v346_v34  ;;  %v352_v37 = vld [vmem:[%s980_s26 + $0x648] sm:$0xff]  ;;  %349 = vst [vmem:[%s985_s27 + $0x318] sm:$0xff] %v348_v35  ;;  %v354_v38 = vld [vmem:[%s980_s26 + $0x650] sm:$0xff] }
  0x45   : > { %351 = vst [vmem:[%s985_s27 + $0x320] sm:$0xff] %v350_v36  ;;  %353 = vst [vmem:[%s985_s27 + $0x328] sm:$0xff] %v352_v37  ;;  %v356_v39 = vld [vmem:[%s980_s26 + $0x658] sm:$0xff]  ;;  %v358_v40 = vld [vmem:[%s980_s26 + $0x680] sm:$0xff] }
  0x46   : > { %355 = vst [vmem:[%s985_s27 + $0x330] sm:$0xff] %v354_v38  ;;  %357 = vst [vmem:[%s985_s27 + $0x338] sm:$0xff] %v356_v39  ;;  %v360_v41 = vld [vmem:[%s980_s26 + $0x688] sm:$0xff]  ;;  %v362_v42 = vld [vmem:[%s980_s26 + $0x690] sm:$0xff] }
  0x47   : > { %359 = vst [vmem:[%s985_s27 + $0x340] sm:$0xff] %v358_v40  ;;  %v364_v43 = vld [vmem:[%s980_s26 + $0x698] sm:$0xff]  ;;  %361 = vst [vmem:[%s985_s27 + $0x348] sm:$0xff] %v360_v41  ;;  %v366_v44 = vld [vmem:[%s980_s26 + $0x6c0] sm:$0xff] }
  0x48   : > { %363 = vst [vmem:[%s985_s27 + $0x350] sm:$0xff] %v362_v42  ;;  %365 = vst [vmem:[%s985_s27 + $0x358] sm:$0xff] %v364_v43  ;;  %v368_v45 = vld [vmem:[%s980_s26 + $0x6c8] sm:$0xff]  ;;  %v370_v46 = vld [vmem:[%s980_s26 + $0x6d0] sm:$0xff] }
  0x49   : > { %367 = vst [vmem:[%s985_s27 + $0x360] sm:$0xff] %v366_v44  ;;  %369 = vst [vmem:[%s985_s27 + $0x368] sm:$0xff] %v368_v45  ;;  %v372_v47 = vld [vmem:[%s980_s26 + $0x6d8] sm:$0xff]  ;;  %v374_v48 = vld [vmem:[%s980_s26 + $0x700] sm:$0xff] }
  0x4a   : > { %371 = vst [vmem:[%s985_s27 + $0x370] sm:$0xff] %v370_v46  ;;  %v376_v49 = vld [vmem:[%s980_s26 + $0x708] sm:$0xff]  ;;  %373 = vst [vmem:[%s985_s27 + $0x378] sm:$0xff] %v372_v47  ;;  %v378_v50 = vld [vmem:[%s980_s26 + $0x710] sm:$0xff] }
  0x4b   : > { %375 = vst [vmem:[%s985_s27 + $0x380] sm:$0xff] %v374_v48  ;;  %377 = vst [vmem:[%s985_s27 + $0x388] sm:$0xff] %v376_v49  ;;  %v380_v51 = vld [vmem:[%s980_s26 + $0x718] sm:$0xff]  ;;  %v382_v52 = vld [vmem:[%s980_s26 + $0x740] sm:$0xff] }
  0x4c   : > { %379 = vst [vmem:[%s985_s27 + $0x390] sm:$0xff] %v378_v50  ;;  %381 = vst [vmem:[%s985_s27 + $0x398] sm:$0xff] %v380_v51  ;;  %v384_v53 = vld [vmem:[%s980_s26 + $0x748] sm:$0xff]  ;;  %v386_v54 = vld [vmem:[%s980_s26 + $0x750] sm:$0xff] }
  0x4d   : > { %383 = vst [vmem:[%s985_s27 + $0x3a0] sm:$0xff] %v382_v52  ;;  %v388_v55 = vld [vmem:[%s980_s26 + $0x758] sm:$0xff]  ;;  %385 = vst [vmem:[%s985_s27 + $0x3a8] sm:$0xff] %v384_v53  ;;  %v390_v56 = vld [vmem:[%s980_s26 + $0x780] sm:$0xff] }
  0x4e   : > { %387 = vst [vmem:[%s985_s27 + $0x3b0] sm:$0xff] %v386_v54  ;;  %389 = vst [vmem:[%s985_s27 + $0x3b8] sm:$0xff] %v388_v55  ;;  %v392_v57 = vld [vmem:[%s980_s26 + $0x788] sm:$0xff]  ;;  %v394_v58 = vld [vmem:[%s980_s26 + $0x790] sm:$0xff] }
  0x4f   : > { %391 = vst [vmem:[%s985_s27 + $0x3c0] sm:$0xff] %v390_v56  ;;  %393 = vst [vmem:[%s985_s27 + $0x3c8] sm:$0xff] %v392_v57  ;;  %v396_v59 = vld [vmem:[%s980_s26 + $0x798] sm:$0xff]  ;;  %v398_v60 = vld [vmem:[%s980_s26 + $0x7c0] sm:$0xff] }
  0x50   : > { %395 = vst [vmem:[%s985_s27 + $0x3d0] sm:$0xff] %v394_v58  ;;  %v400_v61 = vld [vmem:[%s980_s26 + $0x7c8] sm:$0xff]  ;;  %397 = vst [vmem:[%s985_s27 + $0x3d8] sm:$0xff] %v396_v59  ;;  %v402_v62 = vld [vmem:[%s980_s26 + $0x7d0] sm:$0xff] }
  0x51   : > { %399 = vst [vmem:[%s985_s27 + $0x3e0] sm:$0xff] %v398_v60  ;;  %401 = vst [vmem:[%s985_s27 + $0x3e8] sm:$0xff] %v400_v61  ;;  %v404_v63 = vld [vmem:[%s980_s26 + $0x7d8] sm:$0xff] }
  0x52   : > { %403 = vst [vmem:[%s985_s27 + $0x3f0] sm:$0xff] %v402_v62  ;;  %405 = vst [vmem:[%s985_s27 + $0x3f8] sm:$0xff] %v404_v63 }
  0x53 PF: > { %p859_p7 = scmp.ge.s32.totalorder %s917_s14, 1  ;;  %p410_p8 = scmp.lt.s32.totalorder %s917_s14, 3 }
  0x55   : > { %p411_p9 = pnand %p859_p7, %p410_p8 }
  0x56   : > { %s417_s28 = sand.u32 (!%p411_p9), 1, %s909_s12  }
  0x57   : > { %414 = sbr.rel (%p411_p9) target bundleno = 371 (0x173), region = 51  ;;  %s860_s4 = sshll.u32 (!%p411_p9), %s417_s28, 10 }
  0x58   : > { %s1251_s7 = scalar_lea.vmem (!%p411_p9), [#allocation2], %s860_s4  ;;  %s861_s23 = sshll.u32 (!%p411_p9), %s417_s28, 6 }
  0x59   : > { %s1395_s24 = scalar_lea.vmem (!%p411_p9), [#allocation3], %s861_s23 }
  0x5c   : > { %v442_v0 = vld [vmem:[%s1430_s0 + $0x8] sm:$0xff]  ;;  %v573_v1 = vld [vmem:[%s1432_s2] sm:$0xff]  ;;  %v919_v2 = vmov 0   ;;  %v508_v4 = vld [vmem:[%s1251_s7 + $0x1f8] sm:$0xff]  ;;  %s868_s12 = sshll.u32 (%p970_p5), %s852_s15, 5 }
  0x5d   : > { %649 = vmatprep.mubr.f32.mxu0 %v442_v0  ;;  %726 = vmatprep.mubr.f32.mxu1 %v442_v0  ;;  %v506_v3 = vld [vmem:[%s1251_s7 + $0x1e8] sm:$0xff]  ;;  %v505_v5 = vld [vmem:[%s1251_s7 + $0x1e0] sm:$0xff]  ;;  %v507_v6 = vld [vmem:[%s1251_s7 + $0x1f0] sm:$0xff]  ;;  %s764_s27 = scalar_lea.vmem (%p970_p5), %s1433_s3, %s868_s12 }
  0x5e   : > { %894 = vset.pattern.permute.xlu0 %v919_v2  ;;  %585 = vmatprep.subr.mxu0 %v506_v3  ;;  %v502_v7 = vld [vmem:[%s1251_s7 + $0x1c8] sm:$0xff]  ;;  %v504_v8 = vld [vmem:[%s1251_s7 + $0x1d8] sm:$0xff]  ;;  %v501_v9 = vld [vmem:[%s1251_s7 + $0x1c0] sm:$0xff] }
  0x5f   : > { %577 = vperm.xlu0 %894, %v573_v1   ;;  %662 = vmatprep.subr.mxu1 %v508_v4  ;;  %v503_v10 = vld [vmem:[%s1251_s7 + $0x1d0] sm:$0xff]  ;;  %v498_v11 = vld [vmem:[%s1251_s7 + $0x1a8] sm:$0xff]  ;;  %v500_v12 = vld [vmem:[%s1251_s7 + $0x1b8] sm:$0xff] }
  0x60   : > { %586 = vmatpush1.msra.mxu0 %v505_v5  ;;  %663 = vmatpush1.msra.mxu1 %v507_v6  ;;  %v497_v13 = vld [vmem:[%s1251_s7 + $0x1a0] sm:$0xff]  ;;  %v499_v14 = vld [vmem:[%s1251_s7 + $0x1b0] sm:$0xff]  ;;  %v494_v15 = vld [vmem:[%s1251_s7 + $0x188] sm:$0xff] }
  0x61   : > { %587 = vmatprep.subr.mxu0 %v502_v7  ;;  %664 = vmatprep.subr.mxu1 %v504_v8  ;;  %v496_v16 = vld [vmem:[%s1251_s7 + $0x198] sm:$0xff]  ;;  %v493_v17 = vld [vmem:[%s1251_s7 + $0x180] sm:$0xff]  ;;  %v495_v18 = vld [vmem:[%s1251_s7 + $0x190] sm:$0xff] }
  0x62   : > { %588 = vmatpush1.msra.mxu0 %v501_v9  ;;  %665 = vmatpush1.msra.mxu1 %v503_v10  ;;  %v490_v19 = vld [vmem:[%s1251_s7 + $0x168] sm:$0xff]  ;;  %v492_v20 = vld [vmem:[%s1251_s7 + $0x178] sm:$0xff]  ;;  %v489_v21 = vld [vmem:[%s1251_s7 + $0x160] sm:$0xff] }
  0x63   : > { %589 = vmatprep.subr.mxu0 %v498_v11  ;;  %666 = vmatprep.subr.mxu1 %v500_v12  ;;  %v491_v22 = vld [vmem:[%s1251_s7 + $0x170] sm:$0xff]  ;;  %v486_v23 = vld [vmem:[%s1251_s7 + $0x148] sm:$0xff]  ;;  %v488_v24 = vld [vmem:[%s1251_s7 + $0x158] sm:$0xff] }
  0x64   : > { %590 = vmatpush1.msra.mxu0 %v497_v13  ;;  %667 = vmatpush1.msra.mxu1 %v499_v14  ;;  %v485_v25 = vld [vmem:[%s1251_s7 + $0x140] sm:$0xff]  ;;  %v487_v26 = vld [vmem:[%s1251_s7 + $0x150] sm:$0xff]  ;;  %v482_v27 = vld [vmem:[%s1251_s7 + $0x128] sm:$0xff] }
  0x65   : > { %591 = vmatprep.subr.mxu0 %v494_v15  ;;  %668 = vmatprep.subr.mxu1 %v496_v16  ;;  %v484_v28 = vld [vmem:[%s1251_s7 + $0x138] sm:$0xff]  ;;  %v481_v29 = vld [vmem:[%s1251_s7 + $0x120] sm:$0xff]  ;;  %v483_v30 = vld [vmem:[%s1251_s7 + $0x130] sm:$0xff] }
  0x66   : > { %592 = vmatpush1.msra.mxu0 %v493_v17  ;;  %669 = vmatpush1.msra.mxu1 %v495_v18  ;;  %v478_v31 = vld [vmem:[%s1251_s7 + $0x108] sm:$0xff]  ;;  %v480_v32 = vld [vmem:[%s1251_s7 + $0x118] sm:$0xff]  ;;  %v477_v33 = vld [vmem:[%s1251_s7 + $0x100] sm:$0xff] }
  0x67   : > { %593 = vmatprep.subr.mxu0 %v490_v19  ;;  %670 = vmatprep.subr.mxu1 %v492_v20  ;;  %v479_v34 = vld [vmem:[%s1251_s7 + $0x110] sm:$0xff]  ;;  %v474_v35 = vld [vmem:[%s1251_s7 + $0xe8] sm:$0xff]  ;;  %v476_v36 = vld [vmem:[%s1251_s7 + $0xf8] sm:$0xff] }
  0x68   : > { %594 = vmatpush1.msra.mxu0 %v489_v21  ;;  %671 = vmatpush1.msra.mxu1 %v491_v22  ;;  %v473_v37 = vld [vmem:[%s1251_s7 + $0xe0] sm:$0xff]  ;;  %v475_v38 = vld [vmem:[%s1251_s7 + $0xf0] sm:$0xff]  ;;  %v470_v39 = vld [vmem:[%s1251_s7 + $0xc8] sm:$0xff] }
  0x69   : > { %595 = vmatprep.subr.mxu0 %v486_v23  ;;  %672 = vmatprep.subr.mxu1 %v488_v24  ;;  %v472_v40 = vld [vmem:[%s1251_s7 + $0xd8] sm:$0xff]  ;;  %v469_v41 = vld [vmem:[%s1251_s7 + $0xc0] sm:$0xff]  ;;  %v471_v42 = vld [vmem:[%s1251_s7 + $0xd0] sm:$0xff] }
  0x6a   : > { %596 = vmatpush1.msra.mxu0 %v485_v25  ;;  %673 = vmatpush1.msra.mxu1 %v487_v26  ;;  %v466_v43 = vld [vmem:[%s1251_s7 + $0xa8] sm:$0xff]  ;;  %v468_v44 = vld [vmem:[%s1251_s7 + $0xb8] sm:$0xff]  ;;  %v465_v45 = vld [vmem:[%s1251_s7 + $0xa0] sm:$0xff] }
  0x6b   : > { %597 = vmatprep.subr.mxu0 %v482_v27  ;;  %674 = vmatprep.subr.mxu1 %v484_v28  ;;  %v467_v46 = vld [vmem:[%s1251_s7 + $0xb0] sm:$0xff]  ;;  %v462_v47 = vld [vmem:[%s1251_s7 + $0x88] sm:$0xff]  ;;  %v464_v48 = vld [vmem:[%s1251_s7 + $0x98] sm:$0xff] }
  0x6c   : > { %598 = vmatpush1.msra.mxu0 %v481_v29  ;;  %675 = vmatpush1.msra.mxu1 %v483_v30  ;;  %v461_v49 = vld [vmem:[%s1251_s7 + $0x80] sm:$0xff]  ;;  %v463_v50 = vld [vmem:[%s1251_s7 + $0x90] sm:$0xff]  ;;  %v458_v51 = vld [vmem:[%s1251_s7 + $0x68] sm:$0xff] }
  0x6d   : > { %599 = vmatprep.subr.mxu0 %v478_v31  ;;  %676 = vmatprep.subr.mxu1 %v480_v32  ;;  %v460_v52 = vld [vmem:[%s1251_s7 + $0x78] sm:$0xff]  ;;  %v457_v53 = vld [vmem:[%s1251_s7 + $0x60] sm:$0xff]  ;;  %v459_v54 = vld [vmem:[%s1251_s7 + $0x70] sm:$0xff] }
  0x6e   : > { %600 = vmatpush1.msra.mxu0 %v477_v33  ;;  %677 = vmatpush1.msra.mxu1 %v479_v34  ;;  %v454_v55 = vld [vmem:[%s1251_s7 + $0x48] sm:$0xff]  ;;  %v456_v56 = vld [vmem:[%s1251_s7 + $0x58] sm:$0xff]  ;;  %v453_v57 = vld [vmem:[%s1251_s7 + $0x40] sm:$0xff] }
  0x6f   : > { %601 = vmatprep.subr.mxu0 %v474_v35  ;;  %678 = vmatprep.subr.mxu1 %v476_v36  ;;  %v455_v58 = vld [vmem:[%s1251_s7 + $0x50] sm:$0xff]  ;;  %v450_v59 = vld [vmem:[%s1251_s7 + $0x28] sm:$0xff]  ;;  %v452_v60 = vld [vmem:[%s1251_s7 + $0x38] sm:$0xff] }
  0x70   : > { %602 = vmatpush1.msra.mxu0 %v473_v37  ;;  %679 = vmatpush1.msra.mxu1 %v475_v38  ;;  %v449_v61 = vld [vmem:[%s1251_s7 + $0x20] sm:$0xff]  ;;  %v451_v62 = vld [vmem:[%s1251_s7 + $0x30] sm:$0xff]  ;;  %v446_v63 = vld [vmem:[%s1251_s7 + $0x8] sm:$0xff] }
  0x71   : > { %603 = vmatprep.subr.mxu0 %v470_v39  ;;  %680 = vmatprep.subr.mxu1 %v472_v40  ;;  %v448_v0 = vld [vmem:[%s1251_s7 + $0x18] sm:$0xff]  ;;  %v445_v1 = vld [vmem:[%s1251_s7] sm:$0xff]  ;;  %v447_v2 = vld [vmem:[%s1251_s7 + $0x10] sm:$0xff] }
  0x72   : > { %604 = vmatpush1.msra.mxu0 %v469_v41  ;;  %681 = vmatpush1.msra.mxu1 %v471_v42  ;;  %v570_v3 = vld [vmem:[%s1251_s7 + $0x3e8] sm:$0xff]  ;;  %v572_v4 = vld [vmem:[%s1251_s7 + $0x3f8] sm:$0xff]  ;;  %v569_v5 = vld [vmem:[%s1251_s7 + $0x3e0] sm:$0xff] }
  0x73   : > { %605 = vmatprep.subr.mxu0 %v466_v43  ;;  %682 = vmatprep.subr.mxu1 %v468_v44  ;;  %v571_v6 = vld [vmem:[%s1251_s7 + $0x3f0] sm:$0xff]  ;;  %v566_v7 = vld [vmem:[%s1251_s7 + $0x3c8] sm:$0xff]  ;;  %v568_v8 = vld [vmem:[%s1251_s7 + $0x3d8] sm:$0xff] }
  0x74   : > { %606 = vmatpush1.msra.mxu0 %v465_v45  ;;  %683 = vmatpush1.msra.mxu1 %v467_v46  ;;  %v565_v9 = vld [vmem:[%s1251_s7 + $0x3c0] sm:$0xff]  ;;  %v567_v10 = vld [vmem:[%s1251_s7 + $0x3d0] sm:$0xff]  ;;  %v562_v11 = vld [vmem:[%s1251_s7 + $0x3a8] sm:$0xff] }
  0x75   : > { %607 = vmatprep.subr.mxu0 %v462_v47  ;;  %684 = vmatprep.subr.mxu1 %v464_v48  ;;  %v564_v12 = vld [vmem:[%s1251_s7 + $0x3b8] sm:$0xff]  ;;  %v561_v13 = vld [vmem:[%s1251_s7 + $0x3a0] sm:$0xff]  ;;  %v563_v14 = vld [vmem:[%s1251_s7 + $0x3b0] sm:$0xff] }
  0x76   : > { %608 = vmatpush1.msra.mxu0 %v461_v49  ;;  %685 = vmatpush1.msra.mxu1 %v463_v50  ;;  %v558_v15 = vld [vmem:[%s1251_s7 + $0x388] sm:$0xff]  ;;  %v560_v16 = vld [vmem:[%s1251_s7 + $0x398] sm:$0xff]  ;;  %v557_v17 = vld [vmem:[%s1251_s7 + $0x380] sm:$0xff] }
  0x77   : > { %609 = vmatprep.subr.mxu0 %v458_v51  ;;  %686 = vmatprep.subr.mxu1 %v460_v52  ;;  %v559_v18 = vld [vmem:[%s1251_s7 + $0x390] sm:$0xff]  ;;  %v554_v19 = vld [vmem:[%s1251_s7 + $0x368] sm:$0xff]  ;;  %v556_v20 = vld [vmem:[%s1251_s7 + $0x378] sm:$0xff] }
  0x78   : > { %610 = vmatpush1.msra.mxu0 %v457_v53  ;;  %687 = vmatpush1.msra.mxu1 %v459_v54  ;;  %v553_v21 = vld [vmem:[%s1251_s7 + $0x360] sm:$0xff]  ;;  %v555_v22 = vld [vmem:[%s1251_s7 + $0x370] sm:$0xff]  ;;  %v550_v23 = vld [vmem:[%s1251_s7 + $0x348] sm:$0xff] }
  0x79   : > { %611 = vmatprep.subr.mxu0 %v454_v55  ;;  %688 = vmatprep.subr.mxu1 %v456_v56  ;;  %v552_v24 = vld [vmem:[%s1251_s7 + $0x358] sm:$0xff]  ;;  %v549_v25 = vld [vmem:[%s1251_s7 + $0x340] sm:$0xff]  ;;  %v551_v26 = vld [vmem:[%s1251_s7 + $0x350] sm:$0xff] }
  0x7a   : > { %612 = vmatpush1.msra.mxu0 %v453_v57  ;;  %689 = vmatpush1.msra.mxu1 %v455_v58  ;;  %v546_v27 = vld [vmem:[%s1251_s7 + $0x328] sm:$0xff]  ;;  %v548_v28 = vld [vmem:[%s1251_s7 + $0x338] sm:$0xff]  ;;  %v545_v29 = vld [vmem:[%s1251_s7 + $0x320] sm:$0xff] }
  0x7b   : > { %613 = vmatprep.subr.mxu0 %v450_v59  ;;  %690 = vmatprep.subr.mxu1 %v452_v60  ;;  %v547_v30 = vld [vmem:[%s1251_s7 + $0x330] sm:$0xff]  ;;  %v542_v31 = vld [vmem:[%s1251_s7 + $0x308] sm:$0xff]  ;;  %v544_v32 = vld [vmem:[%s1251_s7 + $0x318] sm:$0xff] }
  0x7c   : > { %614 = vmatpush1.msra.mxu0 %v449_v61  ;;  %691 = vmatpush1.msra.mxu1 %v451_v62  ;;  %v541_v33 = vld [vmem:[%s1251_s7 + $0x300] sm:$0xff]  ;;  %v543_v34 = vld [vmem:[%s1251_s7 + $0x310] sm:$0xff]  ;;  %v538_v35 = vld [vmem:[%s1251_s7 + $0x2e8] sm:$0xff] }
  0x7d   : > { %615 = vmatprep.subr.mxu0 %v446_v63  ;;  %692 = vmatprep.subr.mxu1 %v448_v0  ;;  %v540_v36 = vld [vmem:[%s1251_s7 + $0x2f8] sm:$0xff]  ;;  %v537_v37 = vld [vmem:[%s1251_s7 + $0x2e0] sm:$0xff]  ;;  %v539_v38 = vld [vmem:[%s1251_s7 + $0x2f0] sm:$0xff] }
  0x7e   : > { %616 = vmatpush1.msra.mxu0 %v445_v1  ;;  %693 = vmatpush1.msra.mxu1 %v447_v2  ;;  %v534_v39 = vld [vmem:[%s1251_s7 + $0x2c8] sm:$0xff]  ;;  %v536_v40 = vld [vmem:[%s1251_s7 + $0x2d8] sm:$0xff]  ;;  %v533_v41 = vld [vmem:[%s1251_s7 + $0x2c0] sm:$0xff] }
  0x7f   : > { %617 = vmatprep.subr.mxu0 %v570_v3  ;;  %694 = vmatprep.subr.mxu1 %v572_v4  ;;  %v535_v42 = vld [vmem:[%s1251_s7 + $0x2d0] sm:$0xff]  ;;  %v530_v43 = vld [vmem:[%s1251_s7 + $0x2a8] sm:$0xff]  ;;  %v532_v44 = vld [vmem:[%s1251_s7 + $0x2b8] sm:$0xff] }
  0x80   : > { %618 = vmatpush2.msra.mxu0 %v569_v5  ;;  %695 = vmatpush2.msra.mxu1 %v571_v6  ;;  %v529_v45 = vld [vmem:[%s1251_s7 + $0x2a0] sm:$0xff]  ;;  %v531_v46 = vld [vmem:[%s1251_s7 + $0x2b0] sm:$0xff]  ;;  %v526_v47 = vld [vmem:[%s1251_s7 + $0x288] sm:$0xff] }
  0x81   : > { %619 = vmatprep.subr.mxu0 %v566_v7  ;;  %696 = vmatprep.subr.mxu1 %v568_v8  ;;  %v528_v48 = vld [vmem:[%s1251_s7 + $0x298] sm:$0xff]  ;;  %v525_v49 = vld [vmem:[%s1251_s7 + $0x280] sm:$0xff]  ;;  %v527_v50 = vld [vmem:[%s1251_s7 + $0x290] sm:$0xff] }
  0x82   : > { %620 = vmatpush2.msra.mxu0 %v565_v9  ;;  %697 = vmatpush2.msra.mxu1 %v567_v10  ;;  %v522_v51 = vld [vmem:[%s1251_s7 + $0x268] sm:$0xff]  ;;  %v524_v52 = vld [vmem:[%s1251_s7 + $0x278] sm:$0xff]  ;;  %v521_v53 = vld [vmem:[%s1251_s7 + $0x260] sm:$0xff] }
  0x83   : > { %621 = vmatprep.subr.mxu0 %v562_v11  ;;  %698 = vmatprep.subr.mxu1 %v564_v12  ;;  %v523_v54 = vld [vmem:[%s1251_s7 + $0x270] sm:$0xff]  ;;  %v518_v55 = vld [vmem:[%s1251_s7 + $0x248] sm:$0xff]  ;;  %v520_v56 = vld [vmem:[%s1251_s7 + $0x258] sm:$0xff] }
  0x84   : > { %622 = vmatpush2.msra.mxu0 %v561_v13  ;;  %699 = vmatpush2.msra.mxu1 %v563_v14  ;;  %v517_v57 = vld [vmem:[%s1251_s7 + $0x240] sm:$0xff]  ;;  %v519_v58 = vld [vmem:[%s1251_s7 + $0x250] sm:$0xff]  ;;  %v514_v59 = vld [vmem:[%s1251_s7 + $0x228] sm:$0xff] }
  0x85   : > { %623 = vmatprep.subr.mxu0 %v558_v15  ;;  %700 = vmatprep.subr.mxu1 %v560_v16  ;;  %v516_v60 = vld [vmem:[%s1251_s7 + $0x238] sm:$0xff]  ;;  %v513_v61 = vld [vmem:[%s1251_s7 + $0x220] sm:$0xff]  ;;  %v515_v62 = vld [vmem:[%s1251_s7 + $0x230] sm:$0xff] }
  0x86   : > { %624 = vmatpush2.msra.mxu0 %v557_v17  ;;  %701 = vmatpush2.msra.mxu1 %v559_v18  ;;  %v510_v63 = vld [vmem:[%s1251_s7 + $0x208] sm:$0xff]  ;;  %v512_v0 = vld [vmem:[%s1251_s7 + $0x218] sm:$0xff]  ;;  %v509_v1 = vld [vmem:[%s1251_s7 + $0x200] sm:$0xff] }
  0x87   : > { %625 = vmatprep.subr.mxu0 %v554_v19  ;;  %702 = vmatprep.subr.mxu1 %v556_v20  ;;  %v511_v2 = vld [vmem:[%s1251_s7 + $0x210] sm:$0xff]  ;;  %v441_v3 = vld [vmem:[%s1430_s0] sm:$0xff]  ;;  %v444_v4 = vld [vmem:[%s1430_s0 + $0x18] sm:$0xff] }
  0x88   : > { %626 = vmatpush2.msra.mxu0 %v553_v21  ;;  %703 = vmatpush2.msra.mxu1 %v555_v22  ;;  %v574_v5 = vld [vmem:[%s1432_s2 + $0x8] sm:$0xff]  ;;  %v443_v6 = vld [vmem:[%s1430_s0 + $0x10] sm:$0xff] }
  0x89   : > { %627 = vmatprep.subr.mxu0 %v550_v23  ;;  %704 = vmatprep.subr.mxu1 %v552_v24 }
  0x8a   : > { %628 = vmatpush2.msra.mxu0 %v549_v25  ;;  %705 = vmatpush2.msra.mxu1 %v551_v26 }
  0x8b   : > { %629 = vmatprep.subr.mxu0 %v546_v27  ;;  %706 = vmatprep.subr.mxu1 %v548_v28 }
  0x8c   : > { %630 = vmatpush2.msra.mxu0 %v545_v29  ;;  %707 = vmatpush2.msra.mxu1 %v547_v30 }
  0x8d   : > { %631 = vmatprep.subr.mxu0 %v542_v31  ;;  %708 = vmatprep.subr.mxu1 %v544_v32 }
  0x8e   : > { %632 = vmatpush2.msra.mxu0 %v541_v33  ;;  %709 = vmatpush2.msra.mxu1 %v543_v34 }
  0x8f   : > { %633 = vmatprep.subr.mxu0 %v538_v35  ;;  %710 = vmatprep.subr.mxu1 %v540_v36 }
  0x90   : > { %634 = vmatpush2.msra.mxu0 %v537_v37  ;;  %711 = vmatpush2.msra.mxu1 %v539_v38 }
  0x91   : > { %635 = vmatprep.subr.mxu0 %v534_v39  ;;  %712 = vmatprep.subr.mxu1 %v536_v40 }
  0x92   : > { %636 = vmatpush2.msra.mxu0 %v533_v41  ;;  %713 = vmatpush2.msra.mxu1 %v535_v42 }
  0x93   : > { %637 = vmatprep.subr.mxu0 %v530_v43  ;;  %714 = vmatprep.subr.mxu1 %v532_v44 }
  0x94   : > { %638 = vmatpush2.msra.mxu0 %v529_v45  ;;  %715 = vmatpush2.msra.mxu1 %v531_v46 }
  0x95   : > { %639 = vmatprep.subr.mxu0 %v526_v47  ;;  %716 = vmatprep.subr.mxu1 %v528_v48 }
  0x96   : > { %640 = vmatpush2.msra.mxu0 %v525_v49  ;;  %717 = vmatpush2.msra.mxu1 %v527_v50 }
  0x97   : > { %641 = vmatprep.subr.mxu0 %v522_v51  ;;  %718 = vmatprep.subr.mxu1 %v524_v52 }
  0x98   : > { %642 = vmatpush2.msra.mxu0 %v521_v53  ;;  %719 = vmatpush2.msra.mxu1 %v523_v54 }
  0x99   : > { %643 = vmatprep.subr.mxu0 %v518_v55  ;;  %720 = vmatprep.subr.mxu1 %v520_v56 }
  0x9a   : > { %644 = vmatpush2.msra.mxu0 %v517_v57  ;;  %721 = vmatpush2.msra.mxu1 %v519_v58 }
  0x9b   : > { %645 = vmatprep.subr.mxu0 %v514_v59  ;;  %722 = vmatprep.subr.mxu1 %v516_v60 }
  0x9c   : > { %646 = vmatpush2.msra.mxu0 %v513_v61  ;;  %723 = vmatpush2.msra.mxu1 %v515_v62 }
  0x9d   : > { %647 = vmatprep.subr.mxu0 %v510_v63  ;;  %724 = vmatprep.subr.mxu1 %v512_v0 }
  0x9e   : > { %648 = vmatpush2.msra.mxu0 %v509_v1  ;;  %725 = vmatpush2.msra.mxu1 %v511_v2 }
  0x9f   : > { %650 = vmatmul.mubr.f32.vlgmr.msra.gmra.mxu0 %v441_v3  ;;  %727 = vmatmul.mubr.f32.vlgmr.msra.gmra.mxu1 %v441_v3 }
  0xa0   : > { %655 = vmatprep.mubr.f32.mxu0 %v444_v4  ;;  %732 = vmatprep.mubr.f32.mxu1 %v444_v4 }
  0xa1   : > { %582 = vperm.xlu0 %894, %v574_v5  }
  0xa3   : > { %656 = vmatmul.mubr.f32.gmra.mxu0 %v443_v6  ;;  %733 = vmatmul.mubr.f32.gmra.mxu1 %v443_v6 }
  0xda   : > { %v578_v7 = vpop.permute.xlu0 %577 }
 0x11c   : > { %v583_v16 = vpop.permute.xlu0 %582 }
 0x15f   : > { %v651_v8 = vpop.f32.mrf.mxu0  ;;  %v728_v9 = vpop.f32.mrf.mxu1 }
 0x160   : > { %v652_v10 = vadd.f32 %v651_v8, %v578_v7  ;;  %v729_v11 = vadd.f32 %v728_v9, %v578_v7 }
 0x161   : > { %v653_v12 = vpop.f32.mrf.mxu0  ;;  %v730_v13 = vpop.f32.mrf.mxu1 }
 0x162   : > { %v739_v14 = vmax.f32 %v652_v10, 0.0  ;;  %v741_v15 = vmax.f32 %v729_v11, 0.0  ;;  %v654_v17 = vadd.f32 %v653_v12, %v578_v7  ;;  %v731_v18 = vadd.f32 %v730_v13, %v578_v7 }
 0x163   : > { %v657_v19 = vpop.f32.mrf.mxu0  ;;  %v734_v20 = vpop.f32.mrf.mxu1 }
 0x164   : > { %747 = vst [vmem:[%s1395_s24] sm:$0xff] %v739_v14  ;;  %749 = vst [vmem:[%s1395_s24 + $0x10] sm:$0xff] %v741_v15  ;;  %v740_v21 = vmax.f32 %v654_v17, 0.0  ;;  %v742_v22 = vmax.f32 %v731_v18, 0.0  ;;  %v658_v23 = vadd.f32 %v657_v19, %v583_v16  ;;  %v735_v24 = vadd.f32 %v734_v20, %v583_v16 }
 0x165   : > { %v659_v25 = vpop.f32.mrf.mxu0  ;;  %v736_v26 = vpop.f32.mrf.mxu1 }
 0x166   : > { %748 = vst [vmem:[%s1395_s24 + $0x8] sm:$0xff] %v740_v21  ;;  %750 = vst [vmem:[%s1395_s24 + $0x18] sm:$0xff] %v742_v22  ;;  %v743_v27 = vmax.f32 %v658_v23, 0.0  ;;  %v745_v28 = vmax.f32 %v735_v24, 0.0  ;;  %v660_v29 = vadd.f32 %v659_v25, %v583_v16  ;;  %v737_v30 = vadd.f32 %v736_v26, %v583_v16  ;;  %761 = sbr.rel (!%p970_p5) target bundleno = 371 (0x173), region = 59 }
 0x168   : > { %751 = vst [vmem:[%s1395_s24 + $0x20] sm:$0xff] %v743_v27  ;;  %753 = vst [vmem:[%s1395_s24 + $0x30] sm:$0xff] %v745_v28  ;;  %v744_v31 = vmax.f32 %v660_v29, 0.0  ;;  %v746_v32 = vmax.f32 %v737_v30, 0.0 }
 0x16a   : > { %752 = vst [vmem:[%s1395_s24 + $0x28] sm:$0xff] %v744_v31  ;;  %754 = vst [vmem:[%s1395_s24 + $0x38] sm:$0xff] %v746_v32 }
 0x16b   : > { %v777_v33 = vld [vmem:[%s1395_s24] sm:$0xff]  ;;  %v781_v35 = vld [vmem:[%s1395_s24 + $0x10] sm:$0xff] }
 0x16c   : > { %778 = vst [vmem:[%s764_s27] sm:$0xff] %v777_v33  ;;  %782 = vst [vmem:[%s764_s27 + $0x10] sm:$0xff] %v781_v35 }
 0x16d   : > { %v779_v34 = vld [vmem:[%s1395_s24 + $0x8] sm:$0xff]  ;;  %v783_v36 = vld [vmem:[%s1395_s24 + $0x18] sm:$0xff] }
 0x16e   : > { %780 = vst [vmem:[%s764_s27 + $0x8] sm:$0xff] %v779_v34  ;;  %784 = vst [vmem:[%s764_s27 + $0x18] sm:$0xff] %v783_v36 }
 0x16f   : > { %v785_v37 = vld [vmem:[%s1395_s24 + $0x20] sm:$0xff]  ;;  %v789_v39 = vld [vmem:[%s1395_s24 + $0x30] sm:$0xff] }
 0x170   : > { %786 = vst [vmem:[%s764_s27 + $0x40] sm:$0xff] %v785_v37  ;;  %790 = vst [vmem:[%s764_s27 + $0x50] sm:$0xff] %v789_v39 }
 0x171   : > { %v787_v38 = vld [vmem:[%s1395_s24 + $0x28] sm:$0xff]  ;;  %v791_v40 = vld [vmem:[%s1395_s24 + $0x38] sm:$0xff] }
 0x172   : > { %788 = vst [vmem:[%s764_s27 + $0x48] sm:$0xff] %v787_v38  ;;  %792 = vst [vmem:[%s764_s27 + $0x58] sm:$0xff] %v791_v40 }
 0x173 PF: > { %p10_p10 = scmp.ge.s32.totalorder %s957_s16, 4   ;;  %s1435_s12 = smov %s913_s13 }
 0x174   : > { %s1436_s13 = smov %s968_s19  ;;  %s1437_s14 = smov %s957_s16 }
 0x175   :  { %12 = sbr.rel (!%p10_p10) target bundleno = 2 (0x2), region = 113 }

// kernel: forward.4
= control target key start
LH: loop header
LB: loop body
LE: loop exit
PB: predicated region body
PF: predicated region fallthrough
CT: control target
= control target key end

     0   :  { %v286_v3 = vmov 0   ;;  %s559_s1 = inlined_call_operand.vmem [shape: f32[256,256], index: 1, kind: input, shape index: {}]   ;;  %s560_s0 = inlined_call_operand.vmem [shape: f32[32,256], index: 0, kind: input, shape index: {}]   ;;  %s561_s2 = inlined_call_operand.vmem [shape: f32[32,1], index: 2, kind: input, shape index: {}]   ;;  %s562_s3 = inlined_call_operand.vmem [shape: f32[32,256], index: 3, kind: output, shape index: {}]  }
   0x1   :  { %v53_v0 = vld [vmem:[%s559_s1 + $0xf8] sm:$0xff]  ;;  %v52_v1 = vld [vmem:[%s559_s1 + $0xf0] sm:$0xff]  ;;  %v51_v2 = vld [vmem:[%s559_s1 + $0xe8] sm:$0xff]  ;;  %285 = vset.pattern.permute.xlu1 %v286_v3  ;;  %284 = vset.pattern.permute.xlu0 %v286_v3 }
   0x2   :  { %110 = vmatprep.subr.mxu0 %v53_v0  ;;  %219 = vmatprep.subr.mxu1 %v53_v0  ;;  %v50_v4 = vld [vmem:[%s559_s1 + $0xe0] sm:$0xff]  ;;  %v49_v5 = vld [vmem:[%s559_s1 + $0xd8] sm:$0xff]  ;;  %v48_v6 = vld [vmem:[%s559_s1 + $0xd0] sm:$0xff] }
   0x3   :  { %111 = vmatpush1.msra.mxu0 %v52_v1  ;;  %251 = vmatpush1.msra.mxu1 %v52_v1  ;;  %v47_v7 = vld [vmem:[%s559_s1 + $0xc8] sm:$0xff]  ;;  %v46_v8 = vld [vmem:[%s559_s1 + $0xc0] sm:$0xff]  ;;  %v45_v9 = vld [vmem:[%s559_s1 + $0xb8] sm:$0xff] }
   0x4   :  { %112 = vmatprep.subr.mxu0 %v51_v2  ;;  %220 = vmatprep.subr.mxu1 %v51_v2  ;;  %v44_v10 = vld [vmem:[%s559_s1 + $0xb0] sm:$0xff]  ;;  %v43_v11 = vld [vmem:[%s559_s1 + $0xa8] sm:$0xff]  ;;  %v42_v12 = vld [vmem:[%s559_s1 + $0xa0] sm:$0xff] }
   0x5   :  { %113 = vmatpush1.msra.mxu0 %v50_v4  ;;  %252 = vmatpush1.msra.mxu1 %v50_v4  ;;  %v41_v13 = vld [vmem:[%s559_s1 + $0x98] sm:$0xff]  ;;  %v40_v14 = vld [vmem:[%s559_s1 + $0x90] sm:$0xff]  ;;  %v39_v15 = vld [vmem:[%s559_s1 + $0x88] sm:$0xff] }
   0x6   :  { %114 = vmatprep.subr.mxu0 %v49_v5  ;;  %221 = vmatprep.subr.mxu1 %v49_v5  ;;  %v38_v16 = vld [vmem:[%s559_s1 + $0x80] sm:$0xff]  ;;  %v37_v17 = vld [vmem:[%s559_s1 + $0x78] sm:$0xff]  ;;  %v36_v18 = vld [vmem:[%s559_s1 + $0x70] sm:$0xff] }
   0x7   :  { %115 = vmatpush1.msra.mxu0 %v48_v6  ;;  %253 = vmatpush1.msra.mxu1 %v48_v6  ;;  %v35_v19 = vld [vmem:[%s559_s1 + $0x68] sm:$0xff]  ;;  %v34_v20 = vld [vmem:[%s559_s1 + $0x60] sm:$0xff]  ;;  %v33_v21 = vld [vmem:[%s559_s1 + $0x58] sm:$0xff] }
   0x8   :  { %116 = vmatprep.subr.mxu0 %v47_v7  ;;  %222 = vmatprep.subr.mxu1 %v47_v7  ;;  %v32_v22 = vld [vmem:[%s559_s1 + $0x50] sm:$0xff]  ;;  %v31_v23 = vld [vmem:[%s559_s1 + $0x48] sm:$0xff]  ;;  %v30_v24 = vld [vmem:[%s559_s1 + $0x40] sm:$0xff] }
   0x9   :  { %117 = vmatpush1.msra.mxu0 %v46_v8  ;;  %254 = vmatpush1.msra.mxu1 %v46_v8  ;;  %v29_v25 = vld [vmem:[%s559_s1 + $0x38] sm:$0xff]  ;;  %v28_v26 = vld [vmem:[%s559_s1 + $0x30] sm:$0xff]  ;;  %v27_v27 = vld [vmem:[%s559_s1 + $0x28] sm:$0xff] }
   0xa   :  { %118 = vmatprep.subr.mxu0 %v45_v9  ;;  %223 = vmatprep.subr.mxu1 %v45_v9  ;;  %v26_v28 = vld [vmem:[%s559_s1 + $0x20] sm:$0xff]  ;;  %v25_v29 = vld [vmem:[%s559_s1 + $0x18] sm:$0xff]  ;;  %v24_v30 = vld [vmem:[%s559_s1 + $0x10] sm:$0xff] }
   0xb   :  { %119 = vmatpush1.msra.mxu0 %v44_v10  ;;  %255 = vmatpush1.msra.mxu1 %v44_v10  ;;  %v23_v31 = vld [vmem:[%s559_s1 + $0x8] sm:$0xff]  ;;  %v22_v32 = vld [vmem:[%s559_s1] sm:$0xff]  ;;  %v85_v33 = vld [vmem:[%s559_s1 + $0x1f8] sm:$0xff] }
   0xc   :  { %120 = vmatprep.subr.mxu0 %v43_v11  ;;  %224 = vmatprep.subr.mxu1 %v43_v11  ;;  %v84_v34 = vld [vmem:[%s559_s1 + $0x1f0] sm:$0xff]  ;;  %v83_v35 = vld [vmem:[%s559_s1 + $0x1e8] sm:$0xff]  ;;  %v82_v36 = vld [vmem:[%s559_s1 + $0x1e0] sm:$0xff] }
   0xd   :  { %121 = vmatpush1.msra.mxu0 %v42_v12  ;;  %256 = vmatpush1.msra.mxu1 %v42_v12  ;;  %v81_v37 = vld [vmem:[%s559_s1 + $0x1d8] sm:$0xff]  ;;  %v80_v38 = vld [vmem:[%s559_s1 + $0x1d0] sm:$0xff]  ;;  %v79_v39 = vld [vmem:[%s559_s1 + $0x1c8] sm:$0xff] }
   0xe   :  { %122 = vmatprep.subr.mxu0 %v41_v13  ;;  %225 = vmatprep.subr.mxu1 %v41_v13  ;;  %v78_v40 = vld [vmem:[%s559_s1 + $0x1c0] sm:$0xff]  ;;  %v77_v41 = vld [vmem:[%s559_s1 + $0x1b8] sm:$0xff]  ;;  %v76_v42 = vld [vmem:[%s559_s1 + $0x1b0] sm:$0xff] }
   0xf   :  { %123 = vmatpush1.msra.mxu0 %v40_v14  ;;  %257 = vmatpush1.msra.mxu1 %v40_v14  ;;  %v75_v43 = vld [vmem:[%s559_s1 + $0x1a8] sm:$0xff]  ;;  %v74_v44 = vld [vmem:[%s559_s1 + $0x1a0] sm:$0xff]  ;;  %v73_v45 = vld [vmem:[%s559_s1 + $0x198] sm:$0xff] }
  0x10   :  { %124 = vmatprep.subr.mxu0 %v39_v15  ;;  %226 = vmatprep.subr.mxu1 %v39_v15  ;;  %v72_v46 = vld [vmem:[%s559_s1 + $0x190] sm:$0xff]  ;;  %v71_v47 = vld [vmem:[%s559_s1 + $0x188] sm:$0xff]  ;;  %v70_v48 = vld [vmem:[%s559_s1 + $0x180] sm:$0xff] }
  0x11   :  { %125 = vmatpush1.msra.mxu0 %v38_v16  ;;  %258 = vmatpush1.msra.mxu1 %v38_v16  ;;  %v69_v49 = vld [vmem:[%s559_s1 + $0x178] sm:$0xff]  ;;  %v68_v50 = vld [vmem:[%s559_s1 + $0x170] sm:$0xff]  ;;  %v67_v51 = vld [vmem:[%s559_s1 + $0x168] sm:$0xff] }
  0x12   :  { %126 = vmatprep.subr.mxu0 %v37_v17  ;;  %227 = vmatprep.subr.mxu1 %v37_v17  ;;  %v66_v52 = vld [vmem:[%s559_s1 + $0x160] sm:$0xff]  ;;  %v65_v53 = vld [vmem:[%s559_s1 + $0x158] sm:$0xff]  ;;  %v64_v54 = vld [vmem:[%s559_s1 + $0x150] sm:$0xff] }
  0x13   :  { %127 = vmatpush1.msra.mxu0 %v36_v18  ;;  %259 = vmatpush1.msra.mxu1 %v36_v18  ;;  %v63_v55 = vld [vmem:[%s559_s1 + $0x148] sm:$0xff]  ;;  %v62_v56 = vld [vmem:[%s559_s1 + $0x140] sm:$0xff]  ;;  %v61_v57 = vld [vmem:[%s559_s1 + $0x138] sm:$0xff] }
  0x14   :  { %128 = vmatprep.subr.mxu0 %v35_v19  ;;  %228 = vmatprep.subr.mxu1 %v35_v19  ;;  %v60_v58 = vld [vmem:[%s559_s1 + $0x130] sm:$0xff]  ;;  %v59_v59 = vld [vmem:[%s559_s1 + $0x128] sm:$0xff]  ;;  %v58_v60 = vld [vmem:[%s559_s1 + $0x120] sm:$0xff] }
  0x15   :  { %129 = vmatpush1.msra.mxu0 %v34_v20  ;;  %260 = vmatpush1.msra.mxu1 %v34_v20  ;;  %v57_v61 = vld [vmem:[%s559_s1 + $0x118] sm:$0xff]  ;;  %v56_v62 = vld [vmem:[%s559_s1 + $0x110] sm:$0xff]  ;;  %v55_v63 = vld [vmem:[%s559_s1 + $0x108] sm:$0xff] }
  0x16   :  { %130 = vmatprep.subr.mxu0 %v33_v21  ;;  %229 = vmatprep.subr.mxu1 %v33_v21  ;;  %v54_v0 = vld [vmem:[%s559_s1 + $0x100] sm:$0xff]  ;;  %v15_v1 = vld [vmem:[%s560_s0 + $0x8] sm:$0xff]  ;;  %v17_v5 = vld [vmem:[%s560_s0 + $0x18] sm:$0xff] }
  0x17   :  { %131 = vmatpush1.msra.mxu0 %v32_v22  ;;  %261 = vmatpush1.msra.mxu1 %v32_v22  ;;  %v19_v2 = vld [vmem:[%s560_s0 + $0x28] sm:$0xff]  ;;  %v14_v3 = vld [vmem:[%s560_s0] sm:$0xff]  ;;  %v21_v6 = vld [vmem:[%s560_s0 + $0x38] sm:$0xff] }
  0x18   :  { %132 = vmatprep.subr.mxu0 %v31_v23  ;;  %230 = vmatprep.subr.mxu1 %v31_v23  ;;  %v18_v4 = vld [vmem:[%s560_s0 + $0x20] sm:$0xff]  ;;  %v88_v7 = vld [vmem:[%s561_s2 + $0x10] sm:$0xff]  ;;  %v89_v11 = vld [vmem:[%s561_s2 + $0x18] sm:$0xff] }
  0x19   :  { %133 = vmatpush1.msra.mxu0 %v30_v24  ;;  %262 = vmatpush1.msra.mxu1 %v30_v24  ;;  %v86_v8 = vld [vmem:[%s561_s2] sm:$0xff]  ;;  %v16_v9 = vld [vmem:[%s560_s0 + $0x10] sm:$0xff]  ;;  %v87_v12 = vld [vmem:[%s561_s2 + $0x8] sm:$0xff] }
  0x1a   :  { %134 = vmatprep.subr.mxu0 %v29_v25  ;;  %231 = vmatprep.subr.mxu1 %v29_v25  ;;  %v20_v10 = vld [vmem:[%s560_s0 + $0x30] sm:$0xff] }
  0x1b   :  { %135 = vmatpush1.msra.mxu0 %v28_v26  ;;  %263 = vmatpush1.msra.mxu1 %v28_v26 }
  0x1c   :  { %136 = vmatprep.subr.mxu0 %v27_v27  ;;  %232 = vmatprep.subr.mxu1 %v27_v27 }
  0x1d   :  { %137 = vmatpush1.msra.mxu0 %v26_v28  ;;  %264 = vmatpush1.msra.mxu1 %v26_v28 }
  0x1e   :  { %138 = vmatprep.subr.mxu0 %v25_v29  ;;  %233 = vmatprep.subr.mxu1 %v25_v29 }
  0x1f   :  { %139 = vmatpush1.msra.mxu0 %v24_v30  ;;  %265 = vmatpush1.msra.mxu1 %v24_v30 }
  0x20   :  { %140 = vmatprep.subr.mxu0 %v23_v31  ;;  %234 = vmatprep.subr.mxu1 %v23_v31 }
  0x21   :  { %141 = vmatpush1.msra.mxu0 %v22_v32  ;;  %266 = vmatpush1.msra.mxu1 %v22_v32 }
  0x22   :  { %142 = vmatprep.subr.mxu0 %v85_v33  ;;  %235 = vmatprep.subr.mxu1 %v85_v33 }
  0x23   :  { %143 = vmatpush2.msra.mxu0 %v84_v34  ;;  %267 = vmatpush2.msra.mxu1 %v84_v34 }
  0x24   :  { %144 = vmatprep.subr.mxu0 %v83_v35  ;;  %236 = vmatprep.subr.mxu1 %v83_v35 }
  0x25   :  { %145 = vmatpush2.msra.mxu0 %v82_v36  ;;  %268 = vmatpush2.msra.mxu1 %v82_v36 }
  0x26   :  { %146 = vmatprep.subr.mxu0 %v81_v37  ;;  %237 = vmatprep.subr.mxu1 %v81_v37 }
  0x27   :  { %147 = vmatpush2.msra.mxu0 %v80_v38  ;;  %269 = vmatpush2.msra.mxu1 %v80_v38 }
  0x28   :  { %148 = vmatprep.subr.mxu0 %v79_v39  ;;  %238 = vmatprep.subr.mxu1 %v79_v39 }
  0x29   :  { %149 = vmatpush2.msra.mxu0 %v78_v40  ;;  %270 = vmatpush2.msra.mxu1 %v78_v40 }
  0x2a   :  { %150 = vmatprep.subr.mxu0 %v77_v41  ;;  %239 = vmatprep.subr.mxu1 %v77_v41 }
  0x2b   :  { %151 = vmatpush2.msra.mxu0 %v76_v42  ;;  %271 = vmatpush2.msra.mxu1 %v76_v42 }
  0x2c   :  { %152 = vmatprep.subr.mxu0 %v75_v43  ;;  %240 = vmatprep.subr.mxu1 %v75_v43 }
  0x2d   :  { %153 = vmatpush2.msra.mxu0 %v74_v44  ;;  %272 = vmatpush2.msra.mxu1 %v74_v44 }
  0x2e   :  { %154 = vmatprep.subr.mxu0 %v73_v45  ;;  %241 = vmatprep.subr.mxu1 %v73_v45 }
  0x2f   :  { %155 = vmatpush2.msra.mxu0 %v72_v46  ;;  %273 = vmatpush2.msra.mxu1 %v72_v46 }
  0x30   :  { %156 = vmatprep.subr.mxu0 %v71_v47  ;;  %242 = vmatprep.subr.mxu1 %v71_v47 }
  0x31   :  { %157 = vmatpush2.msra.mxu0 %v70_v48  ;;  %274 = vmatpush2.msra.mxu1 %v70_v48 }
  0x32   :  { %158 = vmatprep.subr.mxu0 %v69_v49  ;;  %243 = vmatprep.subr.mxu1 %v69_v49 }
  0x33   :  { %159 = vmatpush2.msra.mxu0 %v68_v50  ;;  %275 = vmatpush2.msra.mxu1 %v68_v50 }
  0x34   :  { %160 = vmatprep.subr.mxu0 %v67_v51  ;;  %244 = vmatprep.subr.mxu1 %v67_v51 }
  0x35   :  { %161 = vmatpush2.msra.mxu0 %v66_v52  ;;  %276 = vmatpush2.msra.mxu1 %v66_v52 }
  0x36   :  { %162 = vmatprep.subr.mxu0 %v65_v53  ;;  %245 = vmatprep.subr.mxu1 %v65_v53 }
  0x37   :  { %163 = vmatpush2.msra.mxu0 %v64_v54  ;;  %277 = vmatpush2.msra.mxu1 %v64_v54 }
  0x38   :  { %164 = vmatprep.subr.mxu0 %v63_v55  ;;  %246 = vmatprep.subr.mxu1 %v63_v55 }
  0x39   :  { %165 = vmatpush2.msra.mxu0 %v62_v56  ;;  %278 = vmatpush2.msra.mxu1 %v62_v56 }
  0x3a   :  { %166 = vmatprep.subr.mxu0 %v61_v57  ;;  %247 = vmatprep.subr.mxu1 %v61_v57 }
  0x3b   :  { %167 = vmatpush2.msra.mxu0 %v60_v58  ;;  %279 = vmatpush2.msra.mxu1 %v60_v58 }
  0x3c   :  { %168 = vmatprep.subr.mxu0 %v59_v59  ;;  %248 = vmatprep.subr.mxu1 %v59_v59 }
  0x3d   :  { %169 = vmatpush2.msra.mxu0 %v58_v60  ;;  %280 = vmatpush2.msra.mxu1 %v58_v60 }
  0x3e   :  { %170 = vmatprep.subr.mxu0 %v57_v61  ;;  %249 = vmatprep.subr.mxu1 %v57_v61 }
  0x3f   :  { %171 = vmatpush2.msra.mxu0 %v56_v62  ;;  %281 = vmatpush2.msra.mxu1 %v56_v62 }
  0x40   :  { %172 = vmatprep.subr.mxu0 %v55_v63  ;;  %250 = vmatprep.subr.mxu1 %v55_v63 }
  0x41   :  { %173 = vmatpush2.msra.mxu0 %v54_v0  ;;  %282 = vmatpush2.msra.mxu1 %v54_v0 }
  0x42   :  { %174 = vmatprep.mubr.f32.mxu0 %v15_v1  ;;  %186 = vmatprep.mubr.f32.mxu1 %v19_v2 }
  0x43   :  { %175 = vmatmul.mubr.f32.vlgmr.msra.gmra.mxu0 %v14_v3  ;;  %187 = vmatmul.mubr.f32.vlgmr.msra.gmra.mxu1 %v18_v4 }
  0x44   :  { %180 = vmatprep.mubr.f32.mxu0 %v17_v5  ;;  %192 = vmatprep.mubr.f32.mxu1 %v21_v6 }
  0x45   :  { %102 = vperm.xlu1 %285, %v88_v7   ;;  %92 = vperm.xlu0 %284, %v86_v8  }
  0x47   :  { %181 = vmatmul.mubr.f32.gmra.mxu0 %v16_v9  ;;  %193 = vmatmul.mubr.f32.gmra.mxu1 %v20_v10 }
  0x49   :  { %107 = vperm.xlu1 %285, %v89_v11   ;;  %97 = vperm.xlu0 %284, %v87_v12  }
  0xc0   :  { %v103_v13 = vpop.permute.xlu1 %102  ;;  %v93_v14 = vpop.permute.xlu0 %92 }
  0xc4   :  { %v108_v23 = vpop.permute.xlu1 %107  ;;  %v98_v24 = vpop.permute.xlu0 %97 }
 0x103   :  { %v176_v15 = vpop.f32.mrf.mxu0  ;;  %v188_v16 = vpop.f32.mrf.mxu1 }
 0x104   :  { %v177_v17 = vadd.f32 %v176_v15, %v93_v14  ;;  %v189_v18 = vadd.f32 %v188_v16, %v103_v13 }
 0x105   :  { %v178_v19 = vpop.f32.mrf.mxu0  ;;  %v190_v20 = vpop.f32.mrf.mxu1 }
 0x106   :  { %v199_v21 = vmax.f32 %v177_v17, 0.0  ;;  %v203_v22 = vmax.f32 %v189_v18, 0.0  ;;  %v179_v25 = vadd.f32 %v178_v19, %v93_v14  ;;  %v191_v26 = vadd.f32 %v190_v20, %v103_v13 }
 0x107   :  { %v182_v27 = vpop.f32.mrf.mxu0  ;;  %v194_v28 = vpop.f32.mrf.mxu1 }
 0x108   :  { %207 = vst [vmem:[%s562_s3] sm:$0xff] %v199_v21  ;;  %211 = vst [vmem:[%s562_s3 + $0x20] sm:$0xff] %v203_v22  ;;  %v200_v29 = vmax.f32 %v179_v25, 0.0  ;;  %v204_v30 = vmax.f32 %v191_v26, 0.0  ;;  %v183_v31 = vadd.f32 %v182_v27, %v98_v24  ;;  %v195_v32 = vadd.f32 %v194_v28, %v108_v23 }
 0x109   :  { %v184_v33 = vpop.f32.mrf.mxu0  ;;  %v196_v34 = vpop.f32.mrf.mxu1 }
 0x10a   :  { %208 = vst [vmem:[%s562_s3 + $0x8] sm:$0xff] %v200_v29  ;;  %212 = vst [vmem:[%s562_s3 + $0x28] sm:$0xff] %v204_v30  ;;  %v201_v35 = vmax.f32 %v183_v31, 0.0  ;;  %v205_v36 = vmax.f32 %v195_v32, 0.0  ;;  %v185_v37 = vadd.f32 %v184_v33, %v98_v24  ;;  %v197_v38 = vadd.f32 %v196_v34, %v108_v23 }
 0x10c   :  { %209 = vst [vmem:[%s562_s3 + $0x10] sm:$0xff] %v201_v35  ;;  %213 = vst [vmem:[%s562_s3 + $0x30] sm:$0xff] %v205_v36  ;;  %v202_v39 = vmax.f32 %v185_v37, 0.0  ;;  %v206_v40 = vmax.f32 %v197_v38, 0.0 }
 0x10e   :  { %210 = vst [vmem:[%s562_s3 + $0x18] sm:$0xff] %v202_v39  ;;  %214 = vst [vmem:[%s562_s3 + $0x38] sm:$0xff] %v206_v40 }

// kernel: forward.5
= control target key start
LH: loop header
LB: loop body
LE: loop exit
PB: predicated region body
PF: predicated region fallthrough
CT: control target
= control target key end

     0   :  { %vm701_vm0 = vcmask 261120   ;;  %s3781_s1 = inlined_call_operand.vmem [shape: f32[2592,256], index: 1, kind: input, shape index: {}]   ;;  %s3782_s0 = inlined_call_operand.vmem [shape: f32[8,2592], index: 0, kind: input, shape index: {}]   ;;  %s3783_s3 = inlined_call_operand.vmem [shape: f32[256,128], index: 3, kind: input, shape index: {}]   ;;  %s3784_s2 = inlined_call_operand.vmem [shape: f32[1,256], index: 2, kind: input, shape index: {}]   ;;  %s3785_s4 = inlined_call_operand.vmem [shape: f32[1,128], index: 4, kind: input, shape index: {}]   ;;  %s3786_s5 = inlined_call_operand.vmem [shape: f32[8,128], index: 5, kind: output, shape index: {}]  }
   0x1   :  { %v72_v0 = vld [vmem:[%s3781_s1 + $0xf8] sm:$0xff]  ;;  %v71_v1 = vld [vmem:[%s3781_s1 + $0xf0] sm:$0xff]  ;;  %v70_v2 = vld [vmem:[%s3781_s1 + $0xe8] sm:$0xff] }
   0x2   :  { %705 = vmatprep.subr.mxu0 %v72_v0  ;;  %v136_v3 = vld [vmem:[%s3781_s1 + $0x2f8] sm:$0xff]  ;;  %v69_v4 = vld [vmem:[%s3781_s1 + $0xe0] sm:$0xff]  ;;  %v135_v5 = vld [vmem:[%s3781_s1 + $0x2f0] sm:$0xff] }
   0x3   :  { %706 = vmatpush1.msra.mxu0 %v71_v1  ;;  %776 = vmatprep.subr.mxu1 %v136_v3  ;;  %v68_v6 = vld [vmem:[%s3781_s1 + $0xd8] sm:$0xff]  ;;  %v134_v7 = vld [vmem:[%s3781_s1 + $0x2e8] sm:$0xff]  ;;  %v67_v8 = vld [vmem:[%s3781_s1 + $0xd0] sm:$0xff] }
   0x4   :  { %707 = vmatprep.subr.mxu0 %v70_v2  ;;  %777 = vmatpush1.msra.mxu1 %v135_v5  ;;  %v133_v9 = vld [vmem:[%s3781_s1 + $0x2e0] sm:$0xff]  ;;  %v132_v10 = vld [vmem:[%s3781_s1 + $0x2d8] sm:$0xff]  ;;  %v66_v11 = vld [vmem:[%s3781_s1 + $0xc8] sm:$0xff] }
   0x5   :  { %708 = vmatpush1.msra.mxu0 %v69_v4  ;;  %778 = vmatprep.subr.mxu1 %v134_v7  ;;  %v131_v12 = vld [vmem:[%s3781_s1 + $0x2d0] sm:$0xff]  ;;  %v65_v13 = vld [vmem:[%s3781_s1 + $0xc0] sm:$0xff]  ;;  %v130_v14 = vld [vmem:[%s3781_s1 + $0x2c8] sm:$0xff] }
   0x6   :  { %709 = vmatprep.subr.mxu0 %v68_v6  ;;  %779 = vmatpush1.msra.mxu1 %v133_v9  ;;  %v64_v15 = vld [vmem:[%s3781_s1 + $0xb8] sm:$0xff]  ;;  %v129_v16 = vld [vmem:[%s3781_s1 + $0x2c0] sm:$0xff]  ;;  %v63_v17 = vld [vmem:[%s3781_s1 + $0xb0] sm:$0xff] }
   0x7   :  { %710 = vmatpush1.msra.mxu0 %v67_v8  ;;  %780 = vmatprep.subr.mxu1 %v132_v10  ;;  %v128_v18 = vld [vmem:[%s3781_s1 + $0x2b8] sm:$0xff]  ;;  %v62_v19 = vld [vmem:[%s3781_s1 + $0xa8] sm:$0xff]  ;;  %v127_v20 = vld [vmem:[%s3781_s1 + $0x2b0] sm:$0xff] }
   0x8   :  { %711 = vmatprep.subr.mxu0 %v66_v11  ;;  %781 = vmatpush1.msra.mxu1 %v131_v12  ;;  %v61_v21 = vld [vmem:[%s3781_s1 + $0xa0] sm:$0xff]  ;;  %v126_v22 = vld [vmem:[%s3781_s1 + $0x2a8] sm:$0xff]  ;;  %v60_v23 = vld [vmem:[%s3781_s1 + $0x98] sm:$0xff] }
   0x9   :  { %712 = vmatpush1.msra.mxu0 %v65_v13  ;;  %782 = vmatprep.subr.mxu1 %v130_v14  ;;  %v125_v24 = vld [vmem:[%s3781_s1 + $0x2a0] sm:$0xff]  ;;  %v59_v25 = vld [vmem:[%s3781_s1 + $0x90] sm:$0xff]  ;;  %v124_v26 = vld [vmem:[%s3781_s1 + $0x298] sm:$0xff] }
   0xa   :  { %713 = vmatprep.subr.mxu0 %v64_v15  ;;  %783 = vmatpush1.msra.mxu1 %v129_v16  ;;  %v58_v27 = vld [vmem:[%s3781_s1 + $0x88] sm:$0xff]  ;;  %v123_v28 = vld [vmem:[%s3781_s1 + $0x290] sm:$0xff]  ;;  %v57_v29 = vld [vmem:[%s3781_s1 + $0x80] sm:$0xff] }
   0xb   :  { %714 = vmatpush1.msra.mxu0 %v63_v17  ;;  %784 = vmatprep.subr.mxu1 %v128_v18  ;;  %v122_v30 = vld [vmem:[%s3781_s1 + $0x288] sm:$0xff]  ;;  %v56_v31 = vld [vmem:[%s3781_s1 + $0x78] sm:$0xff]  ;;  %v121_v32 = vld [vmem:[%s3781_s1 + $0x280] sm:$0xff] }
   0xc   :  { %715 = vmatprep.subr.mxu0 %v62_v19  ;;  %785 = vmatpush1.msra.mxu1 %v127_v20  ;;  %v55_v33 = vld [vmem:[%s3781_s1 + $0x70] sm:$0xff]  ;;  %v120_v34 = vld [vmem:[%s3781_s1 + $0x278] sm:$0xff]  ;;  %v54_v35 = vld [vmem:[%s3781_s1 + $0x68] sm:$0xff] }
   0xd   :  { %716 = vmatpush1.msra.mxu0 %v61_v21  ;;  %786 = vmatprep.subr.mxu1 %v126_v22  ;;  %v119_v36 = vld [vmem:[%s3781_s1 + $0x270] sm:$0xff]  ;;  %v53_v37 = vld [vmem:[%s3781_s1 + $0x60] sm:$0xff]  ;;  %v118_v38 = vld [vmem:[%s3781_s1 + $0x268] sm:$0xff] }
   0xe   :  { %717 = vmatprep.subr.mxu0 %v60_v23  ;;  %787 = vmatpush1.msra.mxu1 %v125_v24  ;;  %v52_v39 = vld [vmem:[%s3781_s1 + $0x58] sm:$0xff]  ;;  %v117_v40 = vld [vmem:[%s3781_s1 + $0x260] sm:$0xff]  ;;  %v51_v41 = vld [vmem:[%s3781_s1 + $0x50] sm:$0xff] }
   0xf   :  { %718 = vmatpush1.msra.mxu0 %v59_v25  ;;  %788 = vmatprep.subr.mxu1 %v124_v26  ;;  %v116_v42 = vld [vmem:[%s3781_s1 + $0x258] sm:$0xff]  ;;  %v50_v43 = vld [vmem:[%s3781_s1 + $0x48] sm:$0xff]  ;;  %v115_v44 = vld [vmem:[%s3781_s1 + $0x250] sm:$0xff] }
  0x10   :  { %719 = vmatprep.subr.mxu0 %v58_v27  ;;  %789 = vmatpush1.msra.mxu1 %v123_v28  ;;  %v49_v45 = vld [vmem:[%s3781_s1 + $0x40] sm:$0xff]  ;;  %v114_v46 = vld [vmem:[%s3781_s1 + $0x248] sm:$0xff]  ;;  %v48_v47 = vld [vmem:[%s3781_s1 + $0x38] sm:$0xff] }
  0x11   :  { %720 = vmatpush1.msra.mxu0 %v57_v29  ;;  %790 = vmatprep.subr.mxu1 %v122_v30  ;;  %v113_v48 = vld [vmem:[%s3781_s1 + $0x240] sm:$0xff]  ;;  %v47_v49 = vld [vmem:[%s3781_s1 + $0x30] sm:$0xff]  ;;  %v112_v50 = vld [vmem:[%s3781_s1 + $0x238] sm:$0xff] }
  0x12   :  { %721 = vmatprep.subr.mxu0 %v56_v31  ;;  %791 = vmatpush1.msra.mxu1 %v121_v32  ;;  %v46_v51 = vld [vmem:[%s3781_s1 + $0x28] sm:$0xff]  ;;  %v111_v52 = vld [vmem:[%s3781_s1 + $0x230] sm:$0xff]  ;;  %v45_v53 = vld [vmem:[%s3781_s1 + $0x20] sm:$0xff] }
  0x13   :  { %722 = vmatpush1.msra.mxu0 %v55_v33  ;;  %792 = vmatprep.subr.mxu1 %v120_v34  ;;  %v110_v54 = vld [vmem:[%s3781_s1 + $0x228] sm:$0xff]  ;;  %v44_v55 = vld [vmem:[%s3781_s1 + $0x18] sm:$0xff]  ;;  %v109_v56 = vld [vmem:[%s3781_s1 + $0x220] sm:$0xff] }
  0x14   :  { %723 = vmatprep.subr.mxu0 %v54_v35  ;;  %793 = vmatpush1.msra.mxu1 %v119_v36  ;;  %v43_v57 = vld [vmem:[%s3781_s1 + $0x10] sm:$0xff]  ;;  %v108_v58 = vld [vmem:[%s3781_s1 + $0x218] sm:$0xff]  ;;  %v42_v59 = vld [vmem:[%s3781_s1 + $0x8] sm:$0xff] }
  0x15   :  { %724 = vmatpush1.msra.mxu0 %v53_v37  ;;  %794 = vmatprep.subr.mxu1 %v118_v38  ;;  %v107_v60 = vld [vmem:[%s3781_s1 + $0x210] sm:$0xff]  ;;  %v41_v61 = vld [vmem:[%s3781_s1] sm:$0xff]  ;;  %v106_v62 = vld [vmem:[%s3781_s1 + $0x208] sm:$0xff] }
  0x16   :  { %725 = vmatprep.subr.mxu0 %v52_v39  ;;  %795 = vmatpush1.msra.mxu1 %v117_v40  ;;  %v104_v63 = vld [vmem:[%s3781_s1 + $0x1f8] sm:$0xff]  ;;  %v105_v0 = vld [vmem:[%s3781_s1 + $0x200] sm:$0xff]  ;;  %v103_v1 = vld [vmem:[%s3781_s1 + $0x1f0] sm:$0xff] }
  0x17   :  { %726 = vmatpush1.msra.mxu0 %v51_v41  ;;  %796 = vmatprep.subr.mxu1 %v116_v42  ;;  %v168_v2 = vld [vmem:[%s3781_s1 + $0x3f8] sm:$0xff]  ;;  %v102_v3 = vld [vmem:[%s3781_s1 + $0x1e8] sm:$0xff]  ;;  %v167_v4 = vld [vmem:[%s3781_s1 + $0x3f0] sm:$0xff] }
  0x18   :  { %727 = vmatprep.subr.mxu0 %v50_v43  ;;  %797 = vmatpush1.msra.mxu1 %v115_v44  ;;  %v101_v5 = vld [vmem:[%s3781_s1 + $0x1e0] sm:$0xff]  ;;  %v166_v6 = vld [vmem:[%s3781_s1 + $0x3e8] sm:$0xff]  ;;  %v100_v7 = vld [vmem:[%s3781_s1 + $0x1d8] sm:$0xff] }
  0x19   :  { %728 = vmatpush1.msra.mxu0 %v49_v45  ;;  %798 = vmatprep.subr.mxu1 %v114_v46  ;;  %v165_v8 = vld [vmem:[%s3781_s1 + $0x3e0] sm:$0xff]  ;;  %v99_v9 = vld [vmem:[%s3781_s1 + $0x1d0] sm:$0xff]  ;;  %v164_v10 = vld [vmem:[%s3781_s1 + $0x3d8] sm:$0xff] }
  0x1a   :  { %729 = vmatprep.subr.mxu0 %v48_v47  ;;  %799 = vmatpush1.msra.mxu1 %v113_v48  ;;  %v98_v11 = vld [vmem:[%s3781_s1 + $0x1c8] sm:$0xff]  ;;  %v163_v12 = vld [vmem:[%s3781_s1 + $0x3d0] sm:$0xff]  ;;  %v97_v13 = vld [vmem:[%s3781_s1 + $0x1c0] sm:$0xff] }
  0x1b   :  { %730 = vmatpush1.msra.mxu0 %v47_v49  ;;  %800 = vmatprep.subr.mxu1 %v112_v50  ;;  %v162_v14 = vld [vmem:[%s3781_s1 + $0x3c8] sm:$0xff]  ;;  %v96_v15 = vld [vmem:[%s3781_s1 + $0x1b8] sm:$0xff]  ;;  %v161_v16 = vld [vmem:[%s3781_s1 + $0x3c0] sm:$0xff] }
  0x1c   :  { %731 = vmatprep.subr.mxu0 %v46_v51  ;;  %801 = vmatpush1.msra.mxu1 %v111_v52  ;;  %v95_v17 = vld [vmem:[%s3781_s1 + $0x1b0] sm:$0xff]  ;;  %v160_v18 = vld [vmem:[%s3781_s1 + $0x3b8] sm:$0xff]  ;;  %v94_v19 = vld [vmem:[%s3781_s1 + $0x1a8] sm:$0xff] }
  0x1d   :  { %732 = vmatpush1.msra.mxu0 %v45_v53  ;;  %802 = vmatprep.subr.mxu1 %v110_v54  ;;  %v159_v20 = vld [vmem:[%s3781_s1 + $0x3b0] sm:$0xff]  ;;  %v93_v21 = vld [vmem:[%s3781_s1 + $0x1a0] sm:$0xff]  ;;  %v158_v22 = vld [vmem:[%s3781_s1 + $0x3a8] sm:$0xff] }
  0x1e   :  { %733 = vmatprep.subr.mxu0 %v44_v55  ;;  %803 = vmatpush1.msra.mxu1 %v109_v56  ;;  %v92_v23 = vld [vmem:[%s3781_s1 + $0x198] sm:$0xff]  ;;  %v157_v24 = vld [vmem:[%s3781_s1 + $0x3a0] sm:$0xff]  ;;  %v91_v25 = vld [vmem:[%s3781_s1 + $0x190] sm:$0xff] }
  0x1f   :  { %734 = vmatpush1.msra.mxu0 %v43_v57  ;;  %804 = vmatprep.subr.mxu1 %v108_v58  ;;  %v156_v26 = vld [vmem:[%s3781_s1 + $0x398] sm:$0xff]  ;;  %v90_v27 = vld [vmem:[%s3781_s1 + $0x188] sm:$0xff]  ;;  %v155_v28 = vld [vmem:[%s3781_s1 + $0x390] sm:$0xff] }
  0x20   :  { %735 = vmatprep.subr.mxu0 %v42_v59  ;;  %805 = vmatpush1.msra.mxu1 %v107_v60  ;;  %v89_v29 = vld [vmem:[%s3781_s1 + $0x180] sm:$0xff]  ;;  %v154_v30 = vld [vmem:[%s3781_s1 + $0x388] sm:$0xff]  ;;  %v88_v31 = vld [vmem:[%s3781_s1 + $0x178] sm:$0xff] }
  0x21   :  { %736 = vmatpush1.msra.mxu0 %v41_v61  ;;  %806 = vmatprep.subr.mxu1 %v106_v62  ;;  %v153_v32 = vld [vmem:[%s3781_s1 + $0x380] sm:$0xff]  ;;  %v87_v33 = vld [vmem:[%s3781_s1 + $0x170] sm:$0xff]  ;;  %v152_v34 = vld [vmem:[%s3781_s1 + $0x378] sm:$0xff] }
  0x22   :  { %737 = vmatprep.subr.mxu0 %v104_v63  ;;  %807 = vmatpush1.msra.mxu1 %v105_v0  ;;  %v86_v35 = vld [vmem:[%s3781_s1 + $0x168] sm:$0xff]  ;;  %v151_v36 = vld [vmem:[%s3781_s1 + $0x370] sm:$0xff]  ;;  %v85_v37 = vld [vmem:[%s3781_s1 + $0x160] sm:$0xff] }
  0x23   :  { %738 = vmatpush2.msra.mxu0 %v103_v1  ;;  %808 = vmatprep.subr.mxu1 %v168_v2  ;;  %v150_v38 = vld [vmem:[%s3781_s1 + $0x368] sm:$0xff]  ;;  %v84_v39 = vld [vmem:[%s3781_s1 + $0x158] sm:$0xff]  ;;  %v149_v40 = vld [vmem:[%s3781_s1 + $0x360] sm:$0xff] }
  0x24   :  { %739 = vmatprep.subr.mxu0 %v102_v3  ;;  %809 = vmatpush2.msra.mxu1 %v167_v4  ;;  %v83_v41 = vld [vmem:[%s3781_s1 + $0x150] sm:$0xff]  ;;  %v148_v42 = vld [vmem:[%s3781_s1 + $0x358] sm:$0xff]  ;;  %v82_v43 = vld [vmem:[%s3781_s1 + $0x148] sm:$0xff] }
  0x25   :  { %740 = vmatpush2.msra.mxu0 %v101_v5  ;;  %810 = vmatprep.subr.mxu1 %v166_v6  ;;  %v147_v44 = vld [vmem:[%s3781_s1 + $0x350] sm:$0xff]  ;;  %v81_v45 = vld [vmem:[%s3781_s1 + $0x140] sm:$0xff]  ;;  %v146_v46 = vld [vmem:[%s3781_s1 + $0x348] sm:$0xff] }
  0x26   :  { %741 = vmatprep.subr.mxu0 %v100_v7  ;;  %811 = vmatpush2.msra.mxu1 %v165_v8  ;;  %v80_v47 = vld [vmem:[%s3781_s1 + $0x138] sm:$0xff]  ;;  %v145_v48 = vld [vmem:[%s3781_s1 + $0x340] sm:$0xff]  ;;  %v79_v49 = vld [vmem:[%s3781_s1 + $0x130] sm:$0xff] }
  0x27   :  { %742 = vmatpush2.msra.mxu0 %v99_v9  ;;  %812 = vmatprep.subr.mxu1 %v164_v10  ;;  %v144_v50 = vld [vmem:[%s3781_s1 + $0x338] sm:$0xff]  ;;  %v78_v51 = vld [vmem:[%s3781_s1 + $0x128] sm:$0xff]  ;;  %v143_v52 = vld [vmem:[%s3781_s1 + $0x330] sm:$0xff] }
  0x28   :  { %743 = vmatprep.subr.mxu0 %v98_v11  ;;  %813 = vmatpush2.msra.mxu1 %v163_v12  ;;  %v77_v53 = vld [vmem:[%s3781_s1 + $0x120] sm:$0xff]  ;;  %v142_v54 = vld [vmem:[%s3781_s1 + $0x328] sm:$0xff]  ;;  %v76_v55 = vld [vmem:[%s3781_s1 + $0x118] sm:$0xff] }
  0x29   :  { %744 = vmatpush2.msra.mxu0 %v97_v13  ;;  %814 = vmatprep.subr.mxu1 %v162_v14  ;;  %v141_v56 = vld [vmem:[%s3781_s1 + $0x320] sm:$0xff]  ;;  %v75_v57 = vld [vmem:[%s3781_s1 + $0x110] sm:$0xff]  ;;  %v140_v58 = vld [vmem:[%s3781_s1 + $0x318] sm:$0xff] }
  0x2a   :  { %745 = vmatprep.subr.mxu0 %v96_v15  ;;  %815 = vmatpush2.msra.mxu1 %v161_v16  ;;  %v74_v59 = vld [vmem:[%s3781_s1 + $0x108] sm:$0xff]  ;;  %v73_v61 = vld [vmem:[%s3781_s1 + $0x100] sm:$0xff]  ;;  %v139_v62 = vld [vmem:[%s3781_s1 + $0x310] sm:$0xff] }
  0x2b   :  { %746 = vmatpush2.msra.mxu0 %v95_v17  ;;  %816 = vmatprep.subr.mxu1 %v160_v18  ;;  %v21_v60 = vld [vmem:[%s3782_s0 + $0x8] sm:$0xff]  ;;  %v20_v63 = vld [vmem:[%s3782_s0] sm:$0xff]  ;;  %v200_v1 = vld [vmem:[%s3781_s1 + $0x4f8] sm:$0xff] }
  0x2c   :  { %747 = vmatprep.subr.mxu0 %v94_v19  ;;  %817 = vmatpush2.msra.mxu1 %v159_v20  ;;  %v138_v0 = vld [vmem:[%s3781_s1 + $0x308] sm:$0xff]  ;;  %v137_v2 = vld [vmem:[%s3781_s1 + $0x300] sm:$0xff]  ;;  %v23_v3 = vld [vmem:[%s3782_s0 + $0x18] sm:$0xff] }
  0x2d   :  { %748 = vmatpush2.msra.mxu0 %v93_v21  ;;  %818 = vmatprep.subr.mxu1 %v158_v22  ;;  %v199_v4 = vld [vmem:[%s3781_s1 + $0x4f0] sm:$0xff]  ;;  %v198_v6 = vld [vmem:[%s3781_s1 + $0x4e8] sm:$0xff]  ;;  %v264_v7 = vld [vmem:[%s3781_s1 + $0x6f8] sm:$0xff] }
  0x2e   :  { %749 = vmatprep.subr.mxu0 %v92_v23  ;;  %819 = vmatpush2.msra.mxu1 %v157_v24  ;;  %v22_v5 = vld [vmem:[%s3782_s0 + $0x10] sm:$0xff]  ;;  %v197_v8 = vld [vmem:[%s3781_s1 + $0x4e0] sm:$0xff]  ;;  %v196_v10 = vld [vmem:[%s3781_s1 + $0x4d8] sm:$0xff] }
  0x2f   :  { %750 = vmatpush2.msra.mxu0 %v91_v25  ;;  %820 = vmatprep.subr.mxu1 %v156_v26  ;;  %v263_v9 = vld [vmem:[%s3781_s1 + $0x6f0] sm:$0xff]  ;;  %v262_v11 = vld [vmem:[%s3781_s1 + $0x6e8] sm:$0xff]  ;;  %v261_v13 = vld [vmem:[%s3781_s1 + $0x6e0] sm:$0xff] }
  0x30   :  { %751 = vmatprep.subr.mxu0 %v90_v27  ;;  %821 = vmatpush2.msra.mxu1 %v155_v28  ;;  %v195_v12 = vld [vmem:[%s3781_s1 + $0x4d0] sm:$0xff]  ;;  %v194_v14 = vld [vmem:[%s3781_s1 + $0x4c8] sm:$0xff]  ;;  %v260_v15 = vld [vmem:[%s3781_s1 + $0x6d8] sm:$0xff] }
  0x31   :  { %752 = vmatpush2.msra.mxu0 %v89_v29  ;;  %822 = vmatprep.subr.mxu1 %v154_v30  ;;  %v193_v16 = vld [vmem:[%s3781_s1 + $0x4c0] sm:$0xff]  ;;  %v259_v17 = vld [vmem:[%s3781_s1 + $0x6d0] sm:$0xff]  ;;  %v192_v18 = vld [vmem:[%s3781_s1 + $0x4b8] sm:$0xff] }
  0x32   :  { %753 = vmatprep.subr.mxu0 %v88_v31  ;;  %823 = vmatpush2.msra.mxu1 %v153_v32  ;;  %v258_v19 = vld [vmem:[%s3781_s1 + $0x6c8] sm:$0xff]  ;;  %v191_v20 = vld [vmem:[%s3781_s1 + $0x4b0] sm:$0xff]  ;;  %v257_v21 = vld [vmem:[%s3781_s1 + $0x6c0] sm:$0xff] }
  0x33   :  { %754 = vmatpush2.msra.mxu0 %v87_v33  ;;  %824 = vmatprep.subr.mxu1 %v152_v34  ;;  %v190_v22 = vld [vmem:[%s3781_s1 + $0x4a8] sm:$0xff]  ;;  %v256_v23 = vld [vmem:[%s3781_s1 + $0x6b8] sm:$0xff]  ;;  %v189_v24 = vld [vmem:[%s3781_s1 + $0x4a0] sm:$0xff] }
  0x34   :  { %755 = vmatprep.subr.mxu0 %v86_v35  ;;  %825 = vmatpush2.msra.mxu1 %v151_v36  ;;  %v255_v25 = vld [vmem:[%s3781_s1 + $0x6b0] sm:$0xff]  ;;  %v188_v26 = vld [vmem:[%s3781_s1 + $0x498] sm:$0xff]  ;;  %v254_v27 = vld [vmem:[%s3781_s1 + $0x6a8] sm:$0xff] }
  0x35   :  { %756 = vmatpush2.msra.mxu0 %v85_v37  ;;  %826 = vmatprep.subr.mxu1 %v150_v38  ;;  %v187_v28 = vld [vmem:[%s3781_s1 + $0x490] sm:$0xff]  ;;  %v253_v29 = vld [vmem:[%s3781_s1 + $0x6a0] sm:$0xff]  ;;  %v186_v30 = vld [vmem:[%s3781_s1 + $0x488] sm:$0xff] }
  0x36   :  { %757 = vmatprep.subr.mxu0 %v84_v39  ;;  %827 = vmatpush2.msra.mxu1 %v149_v40  ;;  %v252_v31 = vld [vmem:[%s3781_s1 + $0x698] sm:$0xff]  ;;  %v185_v32 = vld [vmem:[%s3781_s1 + $0x480] sm:$0xff]  ;;  %v251_v33 = vld [vmem:[%s3781_s1 + $0x690] sm:$0xff] }
  0x37   :  { %758 = vmatpush2.msra.mxu0 %v83_v41  ;;  %828 = vmatprep.subr.mxu1 %v148_v42  ;;  %v184_v34 = vld [vmem:[%s3781_s1 + $0x478] sm:$0xff]  ;;  %v250_v35 = vld [vmem:[%s3781_s1 + $0x688] sm:$0xff]  ;;  %v183_v36 = vld [vmem:[%s3781_s1 + $0x470] sm:$0xff] }
  0x38   :  { %759 = vmatprep.subr.mxu0 %v82_v43  ;;  %829 = vmatpush2.msra.mxu1 %v147_v44  ;;  %v249_v37 = vld [vmem:[%s3781_s1 + $0x680] sm:$0xff]  ;;  %v182_v38 = vld [vmem:[%s3781_s1 + $0x468] sm:$0xff]  ;;  %v248_v39 = vld [vmem:[%s3781_s1 + $0x678] sm:$0xff] }
  0x39   :  { %760 = vmatpush2.msra.mxu0 %v81_v45  ;;  %830 = vmatprep.subr.mxu1 %v146_v46  ;;  %v181_v40 = vld [vmem:[%s3781_s1 + $0x460] sm:$0xff]  ;;  %v247_v41 = vld [vmem:[%s3781_s1 + $0x670] sm:$0xff]  ;;  %v180_v42 = vld [vmem:[%s3781_s1 + $0x458] sm:$0xff] }
  0x3a   :  { %761 = vmatprep.subr.mxu0 %v80_v47  ;;  %831 = vmatpush2.msra.mxu1 %v145_v48  ;;  %v246_v43 = vld [vmem:[%s3781_s1 + $0x668] sm:$0xff]  ;;  %v179_v44 = vld [vmem:[%s3781_s1 + $0x450] sm:$0xff]  ;;  %v245_v45 = vld [vmem:[%s3781_s1 + $0x660] sm:$0xff] }
  0x3b   :  { %762 = vmatpush2.msra.mxu0 %v79_v49  ;;  %832 = vmatprep.subr.mxu1 %v144_v50  ;;  %v178_v46 = vld [vmem:[%s3781_s1 + $0x448] sm:$0xff]  ;;  %v244_v47 = vld [vmem:[%s3781_s1 + $0x658] sm:$0xff]  ;;  %v177_v48 = vld [vmem:[%s3781_s1 + $0x440] sm:$0xff] }
  0x3c   :  { %763 = vmatprep.subr.mxu0 %v78_v51  ;;  %833 = vmatpush2.msra.mxu1 %v143_v52  ;;  %v243_v49 = vld [vmem:[%s3781_s1 + $0x650] sm:$0xff]  ;;  %v176_v50 = vld [vmem:[%s3781_s1 + $0x438] sm:$0xff]  ;;  %v242_v51 = vld [vmem:[%s3781_s1 + $0x648] sm:$0xff] }
  0x3d   :  { %764 = vmatpush2.msra.mxu0 %v77_v53  ;;  %834 = vmatprep.subr.mxu1 %v142_v54  ;;  %v175_v52 = vld [vmem:[%s3781_s1 + $0x430] sm:$0xff]  ;;  %v241_v53 = vld [vmem:[%s3781_s1 + $0x640] sm:$0xff]  ;;  %v174_v54 = vld [vmem:[%s3781_s1 + $0x428] sm:$0xff] }
  0x3e   :  { %765 = vmatprep.subr.mxu0 %v76_v55  ;;  %835 = vmatpush2.msra.mxu1 %v141_v56  ;;  %v240_v55 = vld [vmem:[%s3781_s1 + $0x638] sm:$0xff]  ;;  %v173_v56 = vld [vmem:[%s3781_s1 + $0x420] sm:$0xff] }
  0x3f   :  { %766 = vmatpush2.msra.mxu0 %v75_v57  ;;  %836 = vmatprep.subr.mxu1 %v140_v58  ;;  %v239_v57 = vld [vmem:[%s3781_s1 + $0x630] sm:$0xff]  ;;  %v172_v58 = vld [vmem:[%s3781_s1 + $0x418] sm:$0xff] }
  0x40   :  { %767 = vmatprep.subr.mxu0 %v74_v59  ;;  %769 = vmatprep.mubr.f32.mxu0 %v21_v60  ;;  %v238_v59 = vld [vmem:[%s3781_s1 + $0x628] sm:$0xff]  ;;  %v171_v60 = vld [vmem:[%s3781_s1 + $0x410] sm:$0xff] }
  0x41   :  { %768 = vmatpush2.msra.mxu0 %v73_v61  ;;  %837 = vmatpush2.msra.mxu1 %v139_v62  ;;  %v237_v61 = vld [vmem:[%s3781_s1 + $0x620] sm:$0xff]  ;;  %v170_v62 = vld [vmem:[%s3781_s1 + $0x408] sm:$0xff] }
  0x42   :  { %770 = vmatmul.mubr.f32.vlgmr.msra.gmra.mxu0 %v20_v63  ;;  %838 = vmatprep.subr.mxu1 %v138_v0  ;;  %v236_v63 = vld [vmem:[%s3781_s1 + $0x618] sm:$0xff]  ;;  %v169_v0 = vld [vmem:[%s3781_s1 + $0x400] sm:$0xff] }
  0x43   :  { %847 = vmatprep.subr.mxu0 %v200_v1  ;;  %839 = vmatpush2.msra.mxu1 %v137_v2  ;;  %v235_v1 = vld [vmem:[%s3781_s1 + $0x610] sm:$0xff]  ;;  %v232_v2 = vld [vmem:[%s3781_s1 + $0x5f8] sm:$0xff] }
  0x44   :  { %840 = vmatprep.mubr.f32.mxu1 %v23_v3  ;;  %848 = vmatpush1.msra.mxu0 %v199_v4  ;;  %v234_v3 = vld [vmem:[%s3781_s1 + $0x608] sm:$0xff]  ;;  %v231_v4 = vld [vmem:[%s3781_s1 + $0x5f0] sm:$0xff] }
  0x45   :  { %841 = vmatmul.mubr.f32.vlgmr.msra.gmra.mxu1 %v22_v5  ;;  %849 = vmatprep.subr.mxu0 %v198_v6  ;;  %v233_v5 = vld [vmem:[%s3781_s1 + $0x600] sm:$0xff]  ;;  %v230_v6 = vld [vmem:[%s3781_s1 + $0x5e8] sm:$0xff] }
  0x46   :  { %918 = vmatprep.subr.mxu1 %v264_v7  ;;  %850 = vmatpush1.msra.mxu0 %v197_v8  ;;  %v296_v7 = vld [vmem:[%s3781_s1 + $0x7f8] sm:$0xff]  ;;  %v229_v8 = vld [vmem:[%s3781_s1 + $0x5e0] sm:$0xff] }
  0x47   :  { %919 = vmatpush1.msra.mxu1 %v263_v9  ;;  %851 = vmatprep.subr.mxu0 %v196_v10  ;;  %v295_v9 = vld [vmem:[%s3781_s1 + $0x7f0] sm:$0xff]  ;;  %v228_v10 = vld [vmem:[%s3781_s1 + $0x5d8] sm:$0xff] }
  0x48   :  { %920 = vmatprep.subr.mxu1 %v262_v11  ;;  %852 = vmatpush1.msra.mxu0 %v195_v12  ;;  %v294_v11 = vld [vmem:[%s3781_s1 + $0x7e8] sm:$0xff]  ;;  %v227_v12 = vld [vmem:[%s3781_s1 + $0x5d0] sm:$0xff] }
  0x49   :  { %921 = vmatpush1.msra.mxu1 %v261_v13  ;;  %853 = vmatprep.subr.mxu0 %v194_v14  ;;  %v293_v13 = vld [vmem:[%s3781_s1 + $0x7e0] sm:$0xff]  ;;  %v226_v14 = vld [vmem:[%s3781_s1 + $0x5c8] sm:$0xff] }
  0x4a   :  { %922 = vmatprep.subr.mxu1 %v260_v15  ;;  %854 = vmatpush1.msra.mxu0 %v193_v16  ;;  %v292_v15 = vld [vmem:[%s3781_s1 + $0x7d8] sm:$0xff]  ;;  %v225_v16 = vld [vmem:[%s3781_s1 + $0x5c0] sm:$0xff] }
  0x4b   :  { %923 = vmatpush1.msra.mxu1 %v259_v17  ;;  %855 = vmatprep.subr.mxu0 %v192_v18  ;;  %v291_v17 = vld [vmem:[%s3781_s1 + $0x7d0] sm:$0xff]  ;;  %v224_v18 = vld [vmem:[%s3781_s1 + $0x5b8] sm:$0xff] }
  0x4c   :  { %924 = vmatprep.subr.mxu1 %v258_v19  ;;  %856 = vmatpush1.msra.mxu0 %v191_v20  ;;  %v290_v19 = vld [vmem:[%s3781_s1 + $0x7c8] sm:$0xff]  ;;  %v223_v20 = vld [vmem:[%s3781_s1 + $0x5b0] sm:$0xff] }
  0x4d   :  { %925 = vmatpush1.msra.mxu1 %v257_v21  ;;  %857 = vmatprep.subr.mxu0 %v190_v22  ;;  %v289_v21 = vld [vmem:[%s3781_s1 + $0x7c0] sm:$0xff]  ;;  %v222_v22 = vld [vmem:[%s3781_s1 + $0x5a8] sm:$0xff] }
  0x4e   :  { %926 = vmatprep.subr.mxu1 %v256_v23  ;;  %858 = vmatpush1.msra.mxu0 %v189_v24  ;;  %v288_v23 = vld [vmem:[%s3781_s1 + $0x7b8] sm:$0xff]  ;;  %v221_v24 = vld [vmem:[%s3781_s1 + $0x5a0] sm:$0xff] }
  0x4f   :  { %927 = vmatpush1.msra.mxu1 %v255_v25  ;;  %859 = vmatprep.subr.mxu0 %v188_v26  ;;  %v287_v25 = vld [vmem:[%s3781_s1 + $0x7b0] sm:$0xff]  ;;  %v220_v26 = vld [vmem:[%s3781_s1 + $0x598] sm:$0xff] }
  0x50   :  { %928 = vmatprep.subr.mxu1 %v254_v27  ;;  %860 = vmatpush1.msra.mxu0 %v187_v28  ;;  %v286_v27 = vld [vmem:[%s3781_s1 + $0x7a8] sm:$0xff]  ;;  %v219_v28 = vld [vmem:[%s3781_s1 + $0x590] sm:$0xff] }
  0x51   :  { %929 = vmatpush1.msra.mxu1 %v253_v29  ;;  %861 = vmatprep.subr.mxu0 %v186_v30  ;;  %v285_v29 = vld [vmem:[%s3781_s1 + $0x7a0] sm:$0xff]  ;;  %v218_v30 = vld [vmem:[%s3781_s1 + $0x588] sm:$0xff] }
  0x52   :  { %930 = vmatprep.subr.mxu1 %v252_v31  ;;  %862 = vmatpush1.msra.mxu0 %v185_v32  ;;  %v284_v31 = vld [vmem:[%s3781_s1 + $0x798] sm:$0xff]  ;;  %v217_v32 = vld [vmem:[%s3781_s1 + $0x580] sm:$0xff] }
  0x53   :  { %931 = vmatpush1.msra.mxu1 %v251_v33  ;;  %863 = vmatprep.subr.mxu0 %v184_v34  ;;  %v283_v33 = vld [vmem:[%s3781_s1 + $0x790] sm:$0xff]  ;;  %v216_v34 = vld [vmem:[%s3781_s1 + $0x578] sm:$0xff] }
  0x54   :  { %932 = vmatprep.subr.mxu1 %v250_v35  ;;  %864 = vmatpush1.msra.mxu0 %v183_v36  ;;  %v282_v35 = vld [vmem:[%s3781_s1 + $0x788] sm:$0xff]  ;;  %v215_v36 = vld [vmem:[%s3781_s1 + $0x570] sm:$0xff] }
  0x55   :  { %933 = vmatpush1.msra.mxu1 %v249_v37  ;;  %865 = vmatprep.subr.mxu0 %v182_v38  ;;  %v281_v37 = vld [vmem:[%s3781_s1 + $0x780] sm:$0xff]  ;;  %v214_v38 = vld [vmem:[%s3781_s1 + $0x568] sm:$0xff] }
  0x56   :  { %934 = vmatprep.subr.mxu1 %v248_v39  ;;  %866 = vmatpush1.msra.mxu0 %v181_v40  ;;  %v280_v39 = vld [vmem:[%s3781_s1 + $0x778] sm:$0xff]  ;;  %v213_v40 = vld [vmem:[%s3781_s1 + $0x560] sm:$0xff] }
  0x57   :  { %935 = vmatpush1.msra.mxu1 %v247_v41  ;;  %867 = vmatprep.subr.mxu0 %v180_v42  ;;  %v279_v41 = vld [vmem:[%s3781_s1 + $0x770] sm:$0xff]  ;;  %v212_v42 = vld [vmem:[%s3781_s1 + $0x558] sm:$0xff] }
  0x58   :  { %936 = vmatprep.subr.mxu1 %v246_v43  ;;  %868 = vmatpush1.msra.mxu0 %v179_v44  ;;  %v278_v43 = vld [vmem:[%s3781_s1 + $0x768] sm:$0xff]  ;;  %v211_v44 = vld [vmem:[%s3781_s1 + $0x550] sm:$0xff] }
  0x59   :  { %937 = vmatpush1.msra.mxu1 %v245_v45  ;;  %869 = vmatprep.subr.mxu0 %v178_v46  ;;  %v277_v45 = vld [vmem:[%s3781_s1 + $0x760] sm:$0xff]  ;;  %v210_v46 = vld [vmem:[%s3781_s1 + $0x548] sm:$0xff] }
  0x5a   :  { %938 = vmatprep.subr.mxu1 %v244_v47  ;;  %870 = vmatpush1.msra.mxu0 %v177_v48  ;;  %v276_v47 = vld [vmem:[%s3781_s1 + $0x758] sm:$0xff]  ;;  %v209_v48 = vld [vmem:[%s3781_s1 + $0x540] sm:$0xff] }
  0x5b   :  { %939 = vmatpush1.msra.mxu1 %v243_v49  ;;  %871 = vmatprep.subr.mxu0 %v176_v50  ;;  %v275_v49 = vld [vmem:[%s3781_s1 + $0x750] sm:$0xff]  ;;  %v208_v50 = vld [vmem:[%s3781_s1 + $0x538] sm:$0xff] }
  0x5c   :  { %940 = vmatprep.subr.mxu1 %v242_v51  ;;  %872 = vmatpush1.msra.mxu0 %v175_v52  ;;  %v274_v51 = vld [vmem:[%s3781_s1 + $0x748] sm:$0xff]  ;;  %v207_v52 = vld [vmem:[%s3781_s1 + $0x530] sm:$0xff] }
  0x5d   :  { %941 = vmatpush1.msra.mxu1 %v241_v53  ;;  %873 = vmatprep.subr.mxu0 %v174_v54  ;;  %v273_v53 = vld [vmem:[%s3781_s1 + $0x740] sm:$0xff]  ;;  %v206_v54 = vld [vmem:[%s3781_s1 + $0x528] sm:$0xff] }
  0x5e   :  { %942 = vmatprep.subr.mxu1 %v240_v55  ;;  %874 = vmatpush1.msra.mxu0 %v173_v56  ;;  %v272_v55 = vld [vmem:[%s3781_s1 + $0x738] sm:$0xff]  ;;  %v205_v56 = vld [vmem:[%s3781_s1 + $0x520] sm:$0xff] }
  0x5f   :  { %943 = vmatpush1.msra.mxu1 %v239_v57  ;;  %875 = vmatprep.subr.mxu0 %v172_v58  ;;  %v271_v57 = vld [vmem:[%s3781_s1 + $0x730] sm:$0xff]  ;;  %v204_v58 = vld [vmem:[%s3781_s1 + $0x518] sm:$0xff] }
  0x60   :  { %944 = vmatprep.subr.mxu1 %v238_v59  ;;  %876 = vmatpush1.msra.mxu0 %v171_v60  ;;  %v270_v59 = vld [vmem:[%s3781_s1 + $0x728] sm:$0xff]  ;;  %v203_v60 = vld [vmem:[%s3781_s1 + $0x510] sm:$0xff] }
  0x61   :  { %945 = vmatpush1.msra.mxu1 %v237_v61  ;;  %877 = vmatprep.subr.mxu0 %v170_v62  ;;  %v269_v61 = vld [vmem:[%s3781_s1 + $0x720] sm:$0xff]  ;;  %v202_v62 = vld [vmem:[%s3781_s1 + $0x508] sm:$0xff] }
  0x62   :  { %946 = vmatprep.subr.mxu1 %v236_v63  ;;  %878 = vmatpush1.msra.mxu0 %v169_v0  ;;  %v268_v63 = vld [vmem:[%s3781_s1 + $0x718] sm:$0xff]  ;;  %v201_v0 = vld [vmem:[%s3781_s1 + $0x500] sm:$0xff] }
  0x63   :  { %947 = vmatpush1.msra.mxu1 %v235_v1  ;;  %879 = vmatprep.subr.mxu0 %v232_v2  ;;  %v25_v1 = vld [vmem:[%s3782_s0 + $0x28] sm:$0xff]  ;;  %v267_v2 = vld [vmem:[%s3781_s1 + $0x710] sm:$0xff] }
  0x64   :  { %948 = vmatprep.subr.mxu1 %v234_v3  ;;  %880 = vmatpush2.msra.mxu0 %v231_v4  ;;  %v24_v3 = vld [vmem:[%s3782_s0 + $0x20] sm:$0xff]  ;;  %v266_v4 = vld [vmem:[%s3781_s1 + $0x708] sm:$0xff] }
  0x65   :  { %949 = vmatpush1.msra.mxu1 %v233_v5  ;;  %881 = vmatprep.subr.mxu0 %v230_v6  ;;  %v328_v5 = vld [vmem:[%s3781_s1 + $0x8f8] sm:$0xff]  ;;  %v265_v6 = vld [vmem:[%s3781_s1 + $0x700] sm:$0xff] }
  0x66   :  { %950 = vmatprep.subr.mxu1 %v296_v7  ;;  %882 = vmatpush2.msra.mxu0 %v229_v8  ;;  %v27_v7 = vld [vmem:[%s3782_s0 + $0x38] sm:$0xff]  ;;  %v327_v8 = vld [vmem:[%s3781_s1 + $0x8f0] sm:$0xff] }
  0x67   :  { %951 = vmatpush2.msra.mxu1 %v295_v9  ;;  %883 = vmatprep.subr.mxu0 %v228_v10  ;;  %v26_v9 = vld [vmem:[%s3782_s0 + $0x30] sm:$0xff]  ;;  %v326_v10 = vld [vmem:[%s3781_s1 + $0x8e8] sm:$0xff] }
  0x68   :  { %952 = vmatprep.subr.mxu1 %v294_v11  ;;  %884 = vmatpush2.msra.mxu0 %v227_v12  ;;  %v392_v11 = vld [vmem:[%s3781_s1 + $0xaf8] sm:$0xff]  ;;  %v325_v12 = vld [vmem:[%s3781_s1 + $0x8e0] sm:$0xff] }
  0x69   :  { %953 = vmatpush2.msra.mxu1 %v293_v13  ;;  %885 = vmatprep.subr.mxu0 %v226_v14  ;;  %v391_v13 = vld [vmem:[%s3781_s1 + $0xaf0] sm:$0xff]  ;;  %v324_v14 = vld [vmem:[%s3781_s1 + $0x8d8] sm:$0xff] }
  0x6a   :  { %954 = vmatprep.subr.mxu1 %v292_v15  ;;  %886 = vmatpush2.msra.mxu0 %v225_v16  ;;  %v390_v15 = vld [vmem:[%s3781_s1 + $0xae8] sm:$0xff]  ;;  %v323_v16 = vld [vmem:[%s3781_s1 + $0x8d0] sm:$0xff] }
  0x6b   :  { %955 = vmatpush2.msra.mxu1 %v291_v17  ;;  %887 = vmatprep.subr.mxu0 %v224_v18  ;;  %v389_v17 = vld [vmem:[%s3781_s1 + $0xae0] sm:$0xff]  ;;  %v322_v18 = vld [vmem:[%s3781_s1 + $0x8c8] sm:$0xff] }
  0x6c   :  { %956 = vmatprep.subr.mxu1 %v290_v19  ;;  %888 = vmatpush2.msra.mxu0 %v223_v20  ;;  %v388_v19 = vld [vmem:[%s3781_s1 + $0xad8] sm:$0xff]  ;;  %v321_v20 = vld [vmem:[%s3781_s1 + $0x8c0] sm:$0xff] }
  0x6d   :  { %957 = vmatpush2.msra.mxu1 %v289_v21  ;;  %889 = vmatprep.subr.mxu0 %v222_v22  ;;  %v387_v21 = vld [vmem:[%s3781_s1 + $0xad0] sm:$0xff]  ;;  %v320_v22 = vld [vmem:[%s3781_s1 + $0x8b8] sm:$0xff] }
  0x6e   :  { %958 = vmatprep.subr.mxu1 %v288_v23  ;;  %890 = vmatpush2.msra.mxu0 %v221_v24  ;;  %v386_v23 = vld [vmem:[%s3781_s1 + $0xac8] sm:$0xff]  ;;  %v319_v24 = vld [vmem:[%s3781_s1 + $0x8b0] sm:$0xff] }
  0x6f   :  { %959 = vmatpush2.msra.mxu1 %v287_v25  ;;  %891 = vmatprep.subr.mxu0 %v220_v26  ;;  %v385_v25 = vld [vmem:[%s3781_s1 + $0xac0] sm:$0xff]  ;;  %v318_v26 = vld [vmem:[%s3781_s1 + $0x8a8] sm:$0xff] }
  0x70   :  { %960 = vmatprep.subr.mxu1 %v286_v27  ;;  %892 = vmatpush2.msra.mxu0 %v219_v28  ;;  %v384_v27 = vld [vmem:[%s3781_s1 + $0xab8] sm:$0xff]  ;;  %v317_v28 = vld [vmem:[%s3781_s1 + $0x8a0] sm:$0xff] }
  0x71   :  { %961 = vmatpush2.msra.mxu1 %v285_v29  ;;  %893 = vmatprep.subr.mxu0 %v218_v30  ;;  %v383_v29 = vld [vmem:[%s3781_s1 + $0xab0] sm:$0xff]  ;;  %v316_v30 = vld [vmem:[%s3781_s1 + $0x898] sm:$0xff] }
  0x72   :  { %962 = vmatprep.subr.mxu1 %v284_v31  ;;  %894 = vmatpush2.msra.mxu0 %v217_v32  ;;  %v382_v31 = vld [vmem:[%s3781_s1 + $0xaa8] sm:$0xff]  ;;  %v315_v32 = vld [vmem:[%s3781_s1 + $0x890] sm:$0xff] }
  0x73   :  { %963 = vmatpush2.msra.mxu1 %v283_v33  ;;  %895 = vmatprep.subr.mxu0 %v216_v34  ;;  %v381_v33 = vld [vmem:[%s3781_s1 + $0xaa0] sm:$0xff]  ;;  %v314_v34 = vld [vmem:[%s3781_s1 + $0x888] sm:$0xff] }
  0x74   :  { %964 = vmatprep.subr.mxu1 %v282_v35  ;;  %896 = vmatpush2.msra.mxu0 %v215_v36  ;;  %v380_v35 = vld [vmem:[%s3781_s1 + $0xa98] sm:$0xff]  ;;  %v313_v36 = vld [vmem:[%s3781_s1 + $0x880] sm:$0xff] }
  0x75   :  { %965 = vmatpush2.msra.mxu1 %v281_v37  ;;  %897 = vmatprep.subr.mxu0 %v214_v38  ;;  %v379_v37 = vld [vmem:[%s3781_s1 + $0xa90] sm:$0xff]  ;;  %v312_v38 = vld [vmem:[%s3781_s1 + $0x878] sm:$0xff] }
  0x76   :  { %966 = vmatprep.subr.mxu1 %v280_v39  ;;  %898 = vmatpush2.msra.mxu0 %v213_v40  ;;  %v378_v39 = vld [vmem:[%s3781_s1 + $0xa88] sm:$0xff]  ;;  %v311_v40 = vld [vmem:[%s3781_s1 + $0x870] sm:$0xff] }
  0x77   :  { %967 = vmatpush2.msra.mxu1 %v279_v41  ;;  %899 = vmatprep.subr.mxu0 %v212_v42  ;;  %v377_v41 = vld [vmem:[%s3781_s1 + $0xa80] sm:$0xff]  ;;  %v310_v42 = vld [vmem:[%s3781_s1 + $0x868] sm:$0xff] }
  0x78   :  { %968 = vmatprep.subr.mxu1 %v278_v43  ;;  %900 = vmatpush2.msra.mxu0 %v211_v44  ;;  %v376_v43 = vld [vmem:[%s3781_s1 + $0xa78] sm:$0xff]  ;;  %v309_v44 = vld [vmem:[%s3781_s1 + $0x860] sm:$0xff] }
  0x79   :  { %969 = vmatpush2.msra.mxu1 %v277_v45  ;;  %901 = vmatprep.subr.mxu0 %v210_v46  ;;  %v375_v45 = vld [vmem:[%s3781_s1 + $0xa70] sm:$0xff]  ;;  %v308_v46 = vld [vmem:[%s3781_s1 + $0x858] sm:$0xff] }
  0x7a   :  { %970 = vmatprep.subr.mxu1 %v276_v47  ;;  %902 = vmatpush2.msra.mxu0 %v209_v48  ;;  %v374_v47 = vld [vmem:[%s3781_s1 + $0xa68] sm:$0xff]  ;;  %v307_v48 = vld [vmem:[%s3781_s1 + $0x850] sm:$0xff] }
  0x7b   :  { %971 = vmatpush2.msra.mxu1 %v275_v49  ;;  %903 = vmatprep.subr.mxu0 %v208_v50  ;;  %v373_v49 = vld [vmem:[%s3781_s1 + $0xa60] sm:$0xff]  ;;  %v306_v50 = vld [vmem:[%s3781_s1 + $0x848] sm:$0xff] }
  0x7c   :  { %972 = vmatprep.subr.mxu1 %v274_v51  ;;  %904 = vmatpush2.msra.mxu0 %v207_v52  ;;  %v372_v51 = vld [vmem:[%s3781_s1 + $0xa58] sm:$0xff]  ;;  %v305_v52 = vld [vmem:[%s3781_s1 + $0x840] sm:$0xff] }
  0x7d   :  { %973 = vmatpush2.msra.mxu1 %v273_v53  ;;  %905 = vmatprep.subr.mxu0 %v206_v54  ;;  %v371_v53 = vld [vmem:[%s3781_s1 + $0xa50] sm:$0xff]  ;;  %v304_v54 = vld [vmem:[%s3781_s1 + $0x838] sm:$0xff] }
  0x7e   :  { %974 = vmatprep.subr.mxu1 %v272_v55  ;;  %906 = vmatpush2.msra.mxu0 %v205_v56  ;;  %v370_v55 = vld [vmem:[%s3781_s1 + $0xa48] sm:$0xff]  ;;  %v303_v56 = vld [vmem:[%s3781_s1 + $0x830] sm:$0xff] }
  0x7f   :  { %975 = vmatpush2.msra.mxu1 %v271_v57  ;;  %907 = vmatprep.subr.mxu0 %v204_v58  ;;  %v369_v57 = vld [vmem:[%s3781_s1 + $0xa40] sm:$0xff]  ;;  %v302_v58 = vld [vmem:[%s3781_s1 + $0x828] sm:$0xff] }
  0x80   :  { %976 = vmatprep.subr.mxu1 %v270_v59  ;;  %908 = vmatpush2.msra.mxu0 %v203_v60  ;;  %v368_v59 = vld [vmem:[%s3781_s1 + $0xa38] sm:$0xff]  ;;  %v301_v60 = vld [vmem:[%s3781_s1 + $0x820] sm:$0xff] }
  0x81   :  { %977 = vmatpush2.msra.mxu1 %v269_v61  ;;  %909 = vmatprep.subr.mxu0 %v202_v62  ;;  %v367_v61 = vld [vmem:[%s3781_s1 + $0xa30] sm:$0xff]  ;;  %v300_v62 = vld [vmem:[%s3781_s1 + $0x818] sm:$0xff] }
  0x82   :  { %978 = vmatprep.subr.mxu1 %v268_v63  ;;  %910 = vmatpush2.msra.mxu0 %v201_v0  ;;  %v366_v63 = vld [vmem:[%s3781_s1 + $0xa28] sm:$0xff]  ;;  %v299_v0 = vld [vmem:[%s3781_s1 + $0x810] sm:$0xff] }
  0x83   :  { %911 = vmatprep.mubr.f32.mxu0 %v25_v1  ;;  %979 = vmatpush2.msra.mxu1 %v267_v2  ;;  %v365_v1 = vld [vmem:[%s3781_s1 + $0xa20] sm:$0xff]  ;;  %v298_v2 = vld [vmem:[%s3781_s1 + $0x808] sm:$0xff] }
  0x84   :  { %912 = vmatmul.mubr.f32.vlgmr.msra.gmra.mxu0 %v24_v3  ;;  %980 = vmatprep.subr.mxu1 %v266_v4  ;;  %v364_v3 = vld [vmem:[%s3781_s1 + $0xa18] sm:$0xff]  ;;  %v297_v4 = vld [vmem:[%s3781_s1 + $0x800] sm:$0xff] }
  0x85   :  { %989 = vmatprep.subr.mxu0 %v328_v5  ;;  %981 = vmatpush2.msra.mxu1 %v265_v6  ;;  %v363_v5 = vld [vmem:[%s3781_s1 + $0xa10] sm:$0xff]  ;;  %v360_v6 = vld [vmem:[%s3781_s1 + $0x9f8] sm:$0xff] }
  0x86   :  { %982 = vmatprep.mubr.f32.mxu1 %v27_v7  ;;  %990 = vmatpush1.msra.mxu0 %v327_v8  ;;  %v362_v7 = vld [vmem:[%s3781_s1 + $0xa08] sm:$0xff]  ;;  %v359_v8 = vld [vmem:[%s3781_s1 + $0x9f0] sm:$0xff] }
  0x87   :  { %983 = vmatmul.mubr.f32.vlgmr.msra.gmra.mxu1 %v26_v9  ;;  %991 = vmatprep.subr.mxu0 %v326_v10  ;;  %v361_v9 = vld [vmem:[%s3781_s1 + $0xa00] sm:$0xff]  ;;  %v358_v10 = vld [vmem:[%s3781_s1 + $0x9e8] sm:$0xff] }
  0x88   :  { %1060 = vmatprep.subr.mxu1 %v392_v11  ;;  %992 = vmatpush1.msra.mxu0 %v325_v12  ;;  %v424_v11 = vld [vmem:[%s3781_s1 + $0xbf8] sm:$0xff]  ;;  %v357_v12 = vld [vmem:[%s3781_s1 + $0x9e0] sm:$0xff] }
  0x89   :  { %1061 = vmatpush1.msra.mxu1 %v391_v13  ;;  %993 = vmatprep.subr.mxu0 %v324_v14  ;;  %v423_v13 = vld [vmem:[%s3781_s1 + $0xbf0] sm:$0xff]  ;;  %v356_v14 = vld [vmem:[%s3781_s1 + $0x9d8] sm:$0xff] }
  0x8a   :  { %1062 = vmatprep.subr.mxu1 %v390_v15  ;;  %994 = vmatpush1.msra.mxu0 %v323_v16  ;;  %v422_v15 = vld [vmem:[%s3781_s1 + $0xbe8] sm:$0xff]  ;;  %v355_v16 = vld [vmem:[%s3781_s1 + $0x9d0] sm:$0xff] }
  0x8b   :  { %1063 = vmatpush1.msra.mxu1 %v389_v17  ;;  %995 = vmatprep.subr.mxu0 %v322_v18  ;;  %v421_v17 = vld [vmem:[%s3781_s1 + $0xbe0] sm:$0xff]  ;;  %v354_v18 = vld [vmem:[%s3781_s1 + $0x9c8] sm:$0xff] }
  0x8c   :  { %1064 = vmatprep.subr.mxu1 %v388_v19  ;;  %996 = vmatpush1.msra.mxu0 %v321_v20  ;;  %v420_v19 = vld [vmem:[%s3781_s1 + $0xbd8] sm:$0xff]  ;;  %v353_v20 = vld [vmem:[%s3781_s1 + $0x9c0] sm:$0xff] }
  0x8d   :  { %1065 = vmatpush1.msra.mxu1 %v387_v21  ;;  %997 = vmatprep.subr.mxu0 %v320_v22  ;;  %v419_v21 = vld [vmem:[%s3781_s1 + $0xbd0] sm:$0xff]  ;;  %v352_v22 = vld [vmem:[%s3781_s1 + $0x9b8] sm:$0xff] }
  0x8e   :  { %1066 = vmatprep.subr.mxu1 %v386_v23  ;;  %998 = vmatpush1.msra.mxu0 %v319_v24  ;;  %v418_v23 = vld [vmem:[%s3781_s1 + $0xbc8] sm:$0xff]  ;;  %v351_v24 = vld [vmem:[%s3781_s1 + $0x9b0] sm:$0xff] }
  0x8f   :  { %1067 = vmatpush1.msra.mxu1 %v385_v25  ;;  %999 = vmatprep.subr.mxu0 %v318_v26  ;;  %v417_v25 = vld [vmem:[%s3781_s1 + $0xbc0] sm:$0xff]  ;;  %v350_v26 = vld [vmem:[%s3781_s1 + $0x9a8] sm:$0xff] }
  0x90   :  { %1068 = vmatprep.subr.mxu1 %v384_v27  ;;  %1000 = vmatpush1.msra.mxu0 %v317_v28  ;;  %v416_v27 = vld [vmem:[%s3781_s1 + $0xbb8] sm:$0xff]  ;;  %v349_v28 = vld [vmem:[%s3781_s1 + $0x9a0] sm:$0xff] }
  0x91   :  { %1069 = vmatpush1.msra.mxu1 %v383_v29  ;;  %1001 = vmatprep.subr.mxu0 %v316_v30  ;;  %v415_v29 = vld [vmem:[%s3781_s1 + $0xbb0] sm:$0xff]  ;;  %v348_v30 = vld [vmem:[%s3781_s1 + $0x998] sm:$0xff] }
  0x92   :  { %1070 = vmatprep.subr.mxu1 %v382_v31  ;;  %1002 = vmatpush1.msra.mxu0 %v315_v32  ;;  %v414_v31 = vld [vmem:[%s3781_s1 + $0xba8] sm:$0xff]  ;;  %v347_v32 = vld [vmem:[%s3781_s1 + $0x990] sm:$0xff] }
  0x93   :  { %1071 = vmatpush1.msra.mxu1 %v381_v33  ;;  %1003 = vmatprep.subr.mxu0 %v314_v34  ;;  %v413_v33 = vld [vmem:[%s3781_s1 + $0xba0] sm:$0xff]  ;;  %v346_v34 = vld [vmem:[%s3781_s1 + $0x988] sm:$0xff] }
  0x94   :  { %1072 = vmatprep.subr.mxu1 %v380_v35  ;;  %1004 = vmatpush1.msra.mxu0 %v313_v36  ;;  %v412_v35 = vld [vmem:[%s3781_s1 + $0xb98] sm:$0xff]  ;;  %v345_v36 = vld [vmem:[%s3781_s1 + $0x980] sm:$0xff] }
  0x95   :  { %1073 = vmatpush1.msra.mxu1 %v379_v37  ;;  %1005 = vmatprep.subr.mxu0 %v312_v38  ;;  %v411_v37 = vld [vmem:[%s3781_s1 + $0xb90] sm:$0xff]  ;;  %v344_v38 = vld [vmem:[%s3781_s1 + $0x978] sm:$0xff] }
  0x96   :  { %1074 = vmatprep.subr.mxu1 %v378_v39  ;;  %1006 = vmatpush1.msra.mxu0 %v311_v40  ;;  %v410_v39 = vld [vmem:[%s3781_s1 + $0xb88] sm:$0xff]  ;;  %v343_v40 = vld [vmem:[%s3781_s1 + $0x970] sm:$0xff] }
  0x97   :  { %1075 = vmatpush1.msra.mxu1 %v377_v41  ;;  %1007 = vmatprep.subr.mxu0 %v310_v42  ;;  %v409_v41 = vld [vmem:[%s3781_s1 + $0xb80] sm:$0xff]  ;;  %v342_v42 = vld [vmem:[%s3781_s1 + $0x968] sm:$0xff] }
  0x98   :  { %1076 = vmatprep.subr.mxu1 %v376_v43  ;;  %1008 = vmatpush1.msra.mxu0 %v309_v44  ;;  %v408_v43 = vld [vmem:[%s3781_s1 + $0xb78] sm:$0xff]  ;;  %v341_v44 = vld [vmem:[%s3781_s1 + $0x960] sm:$0xff] }
  0x99   :  { %1077 = vmatpush1.msra.mxu1 %v375_v45  ;;  %1009 = vmatprep.subr.mxu0 %v308_v46  ;;  %v407_v45 = vld [vmem:[%s3781_s1 + $0xb70] sm:$0xff]  ;;  %v340_v46 = vld [vmem:[%s3781_s1 + $0x958] sm:$0xff] }
  0x9a   :  { %1078 = vmatprep.subr.mxu1 %v374_v47  ;;  %1010 = vmatpush1.msra.mxu0 %v307_v48  ;;  %v406_v47 = vld [vmem:[%s3781_s1 + $0xb68] sm:$0xff]  ;;  %v339_v48 = vld [vmem:[%s3781_s1 + $0x950] sm:$0xff] }
  0x9b   :  { %1079 = vmatpush1.msra.mxu1 %v373_v49  ;;  %1011 = vmatprep.subr.mxu0 %v306_v50  ;;  %v405_v49 = vld [vmem:[%s3781_s1 + $0xb60] sm:$0xff]  ;;  %v338_v50 = vld [vmem:[%s3781_s1 + $0x948] sm:$0xff] }
  0x9c   :  { %1080 = vmatprep.subr.mxu1 %v372_v51  ;;  %1012 = vmatpush1.msra.mxu0 %v305_v52  ;;  %v404_v51 = vld [vmem:[%s3781_s1 + $0xb58] sm:$0xff]  ;;  %v337_v52 = vld [vmem:[%s3781_s1 + $0x940] sm:$0xff] }
  0x9d   :  { %1081 = vmatpush1.msra.mxu1 %v371_v53  ;;  %1013 = vmatprep.subr.mxu0 %v304_v54  ;;  %v403_v53 = vld [vmem:[%s3781_s1 + $0xb50] sm:$0xff]  ;;  %v336_v54 = vld [vmem:[%s3781_s1 + $0x938] sm:$0xff] }
  0x9e   :  { %1082 = vmatprep.subr.mxu1 %v370_v55  ;;  %1014 = vmatpush1.msra.mxu0 %v303_v56  ;;  %v402_v55 = vld [vmem:[%s3781_s1 + $0xb48] sm:$0xff]  ;;  %v335_v56 = vld [vmem:[%s3781_s1 + $0x930] sm:$0xff] }
  0x9f   :  { %1083 = vmatpush1.msra.mxu1 %v369_v57  ;;  %1015 = vmatprep.subr.mxu0 %v302_v58  ;;  %v401_v57 = vld [vmem:[%s3781_s1 + $0xb40] sm:$0xff]  ;;  %v334_v58 = vld [vmem:[%s3781_s1 + $0x928] sm:$0xff] }
  0xa0   :  { %1084 = vmatprep.subr.mxu1 %v368_v59  ;;  %1016 = vmatpush1.msra.mxu0 %v301_v60  ;;  %v400_v59 = vld [vmem:[%s3781_s1 + $0xb38] sm:$0xff]  ;;  %v333_v60 = vld [vmem:[%s3781_s1 + $0x920] sm:$0xff] }
  0xa1   :  { %1085 = vmatpush1.msra.mxu1 %v367_v61  ;;  %1017 = vmatprep.subr.mxu0 %v300_v62  ;;  %v399_v61 = vld [vmem:[%s3781_s1 + $0xb30] sm:$0xff]  ;;  %v332_v62 = vld [vmem:[%s3781_s1 + $0x918] sm:$0xff] }
  0xa2   :  { %1086 = vmatprep.subr.mxu1 %v366_v63  ;;  %1018 = vmatpush1.msra.mxu0 %v299_v0  ;;  %v398_v63 = vld [vmem:[%s3781_s1 + $0xb28] sm:$0xff]  ;;  %v331_v0 = vld [vmem:[%s3781_s1 + $0x910] sm:$0xff] }
  0xa3   :  { %1087 = vmatpush1.msra.mxu1 %v365_v1  ;;  %1019 = vmatprep.subr.mxu0 %v298_v2  ;;  %v397_v1 = vld [vmem:[%s3781_s1 + $0xb20] sm:$0xff]  ;;  %v330_v2 = vld [vmem:[%s3781_s1 + $0x908] sm:$0xff] }
  0xa4   :  { %1088 = vmatprep.subr.mxu1 %v364_v3  ;;  %1020 = vmatpush1.msra.mxu0 %v297_v4  ;;  %v396_v3 = vld [vmem:[%s3781_s1 + $0xb18] sm:$0xff]  ;;  %v329_v4 = vld [vmem:[%s3781_s1 + $0x900] sm:$0xff] }
  0xa5   :  { %1089 = vmatpush1.msra.mxu1 %v363_v5  ;;  %1021 = vmatprep.subr.mxu0 %v360_v6  ;;  %v29_v5 = vld [vmem:[%s3782_s0 + $0x48] sm:$0xff]  ;;  %v395_v6 = vld [vmem:[%s3781_s1 + $0xb10] sm:$0xff] }
  0xa6   :  { %1090 = vmatprep.subr.mxu1 %v362_v7  ;;  %1022 = vmatpush2.msra.mxu0 %v359_v8  ;;  %v28_v7 = vld [vmem:[%s3782_s0 + $0x40] sm:$0xff]  ;;  %v394_v8 = vld [vmem:[%s3781_s1 + $0xb08] sm:$0xff] }
  0xa7   :  { %1091 = vmatpush1.msra.mxu1 %v361_v9  ;;  %1023 = vmatprep.subr.mxu0 %v358_v10  ;;  %v456_v9 = vld [vmem:[%s3781_s1 + $0xcf8] sm:$0xff]  ;;  %v393_v10 = vld [vmem:[%s3781_s1 + $0xb00] sm:$0xff] }
  0xa8   :  { %1092 = vmatprep.subr.mxu1 %v424_v11  ;;  %1024 = vmatpush2.msra.mxu0 %v357_v12  ;;  %v31_v11 = vld [vmem:[%s3782_s0 + $0x58] sm:$0xff]  ;;  %v455_v12 = vld [vmem:[%s3781_s1 + $0xcf0] sm:$0xff] }
  0xa9   :  { %1093 = vmatpush2.msra.mxu1 %v423_v13  ;;  %1025 = vmatprep.subr.mxu0 %v356_v14  ;;  %v30_v13 = vld [vmem:[%s3782_s0 + $0x50] sm:$0xff]  ;;  %v454_v14 = vld [vmem:[%s3781_s1 + $0xce8] sm:$0xff] }
  0xaa   :  { %1094 = vmatprep.subr.mxu1 %v422_v15  ;;  %1026 = vmatpush2.msra.mxu0 %v355_v16  ;;  %v520_v15 = vld [vmem:[%s3781_s1 + $0xef8] sm:$0xff]  ;;  %v453_v16 = vld [vmem:[%s3781_s1 + $0xce0] sm:$0xff] }
  0xab   :  { %1095 = vmatpush2.msra.mxu1 %v421_v17  ;;  %1027 = vmatprep.subr.mxu0 %v354_v18  ;;  %v519_v17 = vld [vmem:[%s3781_s1 + $0xef0] sm:$0xff]  ;;  %v452_v18 = vld [vmem:[%s3781_s1 + $0xcd8] sm:$0xff] }
  0xac   :  { %1096 = vmatprep.subr.mxu1 %v420_v19  ;;  %1028 = vmatpush2.msra.mxu0 %v353_v20  ;;  %v518_v19 = vld [vmem:[%s3781_s1 + $0xee8] sm:$0xff]  ;;  %v451_v20 = vld [vmem:[%s3781_s1 + $0xcd0] sm:$0xff] }
  0xad   :  { %1097 = vmatpush2.msra.mxu1 %v419_v21  ;;  %1029 = vmatprep.subr.mxu0 %v352_v22  ;;  %v517_v21 = vld [vmem:[%s3781_s1 + $0xee0] sm:$0xff]  ;;  %v450_v22 = vld [vmem:[%s3781_s1 + $0xcc8] sm:$0xff] }
  0xae   :  { %1098 = vmatprep.subr.mxu1 %v418_v23  ;;  %1030 = vmatpush2.msra.mxu0 %v351_v24  ;;  %v516_v23 = vld [vmem:[%s3781_s1 + $0xed8] sm:$0xff]  ;;  %v449_v24 = vld [vmem:[%s3781_s1 + $0xcc0] sm:$0xff] }
  0xaf   :  { %1099 = vmatpush2.msra.mxu1 %v417_v25  ;;  %1031 = vmatprep.subr.mxu0 %v350_v26  ;;  %v515_v25 = vld [vmem:[%s3781_s1 + $0xed0] sm:$0xff]  ;;  %v448_v26 = vld [vmem:[%s3781_s1 + $0xcb8] sm:$0xff] }
  0xb0   :  { %1100 = vmatprep.subr.mxu1 %v416_v27  ;;  %1032 = vmatpush2.msra.mxu0 %v349_v28  ;;  %v514_v27 = vld [vmem:[%s3781_s1 + $0xec8] sm:$0xff]  ;;  %v447_v28 = vld [vmem:[%s3781_s1 + $0xcb0] sm:$0xff] }
  0xb1   :  { %1101 = vmatpush2.msra.mxu1 %v415_v29  ;;  %1033 = vmatprep.subr.mxu0 %v348_v30  ;;  %v513_v29 = vld [vmem:[%s3781_s1 + $0xec0] sm:$0xff]  ;;  %v446_v30 = vld [vmem:[%s3781_s1 + $0xca8] sm:$0xff] }
  0xb2   :  { %1102 = vmatprep.subr.mxu1 %v414_v31  ;;  %1034 = vmatpush2.msra.mxu0 %v347_v32  ;;  %v512_v31 = vld [vmem:[%s3781_s1 + $0xeb8] sm:$0xff]  ;;  %v445_v32 = vld [vmem:[%s3781_s1 + $0xca0] sm:$0xff] }
  0xb3   :  { %1103 = vmatpush2.msra.mxu1 %v413_v33  ;;  %1035 = vmatprep.subr.mxu0 %v346_v34  ;;  %v511_v33 = vld [vmem:[%s3781_s1 + $0xeb0] sm:$0xff]  ;;  %v444_v34 = vld [vmem:[%s3781_s1 + $0xc98] sm:$0xff] }
  0xb4   :  { %1104 = vmatprep.subr.mxu1 %v412_v35  ;;  %1036 = vmatpush2.msra.mxu0 %v345_v36  ;;  %v510_v35 = vld [vmem:[%s3781_s1 + $0xea8] sm:$0xff]  ;;  %v443_v36 = vld [vmem:[%s3781_s1 + $0xc90] sm:$0xff] }
  0xb5   :  { %1105 = vmatpush2.msra.mxu1 %v411_v37  ;;  %1037 = vmatprep.subr.mxu0 %v344_v38  ;;  %v509_v37 = vld [vmem:[%s3781_s1 + $0xea0] sm:$0xff]  ;;  %v442_v38 = vld [vmem:[%s3781_s1 + $0xc88] sm:$0xff] }
  0xb6   :  { %1106 = vmatprep.subr.mxu1 %v410_v39  ;;  %1038 = vmatpush2.msra.mxu0 %v343_v40  ;;  %v508_v39 = vld [vmem:[%s3781_s1 + $0xe98] sm:$0xff]  ;;  %v441_v40 = vld [vmem:[%s3781_s1 + $0xc80] sm:$0xff] }
  0xb7   :  { %1107 = vmatpush2.msra.mxu1 %v409_v41  ;;  %1039 = vmatprep.subr.mxu0 %v342_v42  ;;  %v507_v41 = vld [vmem:[%s3781_s1 + $0xe90] sm:$0xff]  ;;  %v440_v42 = vld [vmem:[%s3781_s1 + $0xc78] sm:$0xff] }
  0xb8   :  { %1108 = vmatprep.subr.mxu1 %v408_v43  ;;  %1040 = vmatpush2.msra.mxu0 %v341_v44  ;;  %v506_v43 = vld [vmem:[%s3781_s1 + $0xe88] sm:$0xff]  ;;  %v439_v44 = vld [vmem:[%s3781_s1 + $0xc70] sm:$0xff] }
  0xb9   :  { %1109 = vmatpush2.msra.mxu1 %v407_v45  ;;  %1041 = vmatprep.subr.mxu0 %v340_v46  ;;  %v505_v45 = vld [vmem:[%s3781_s1 + $0xe80] sm:$0xff]  ;;  %v438_v46 = vld [vmem:[%s3781_s1 + $0xc68] sm:$0xff] }
  0xba   :  { %1110 = vmatprep.subr.mxu1 %v406_v47  ;;  %1042 = vmatpush2.msra.mxu0 %v339_v48  ;;  %v504_v47 = vld [vmem:[%s3781_s1 + $0xe78] sm:$0xff]  ;;  %v437_v48 = vld [vmem:[%s3781_s1 + $0xc60] sm:$0xff] }
  0xbb   :  { %1111 = vmatpush2.msra.mxu1 %v405_v49  ;;  %1043 = vmatprep.subr.mxu0 %v338_v50  ;;  %v503_v49 = vld [vmem:[%s3781_s1 + $0xe70] sm:$0xff]  ;;  %v436_v50 = vld [vmem:[%s3781_s1 + $0xc58] sm:$0xff] }
  0xbc   :  { %1112 = vmatprep.subr.mxu1 %v404_v51  ;;  %1044 = vmatpush2.msra.mxu0 %v337_v52  ;;  %v502_v51 = vld [vmem:[%s3781_s1 + $0xe68] sm:$0xff]  ;;  %v435_v52 = vld [vmem:[%s3781_s1 + $0xc50] sm:$0xff] }
  0xbd   :  { %1113 = vmatpush2.msra.mxu1 %v403_v53  ;;  %1045 = vmatprep.subr.mxu0 %v336_v54  ;;  %v501_v53 = vld [vmem:[%s3781_s1 + $0xe60] sm:$0xff]  ;;  %v434_v54 = vld [vmem:[%s3781_s1 + $0xc48] sm:$0xff] }
  0xbe   :  { %1114 = vmatprep.subr.mxu1 %v402_v55  ;;  %1046 = vmatpush2.msra.mxu0 %v335_v56  ;;  %v500_v55 = vld [vmem:[%s3781_s1 + $0xe58] sm:$0xff]  ;;  %v433_v56 = vld [vmem:[%s3781_s1 + $0xc40] sm:$0xff] }
  0xbf   :  { %1115 = vmatpush2.msra.mxu1 %v401_v57  ;;  %1047 = vmatprep.subr.mxu0 %v334_v58  ;;  %v499_v57 = vld [vmem:[%s3781_s1 + $0xe50] sm:$0xff]  ;;  %v432_v58 = vld [vmem:[%s3781_s1 + $0xc38] sm:$0xff] }
  0xc0   :  { %1116 = vmatprep.subr.mxu1 %v400_v59  ;;  %1048 = vmatpush2.msra.mxu0 %v333_v60  ;;  %v498_v59 = vld [vmem:[%s3781_s1 + $0xe48] sm:$0xff]  ;;  %v431_v60 = vld [vmem:[%s3781_s1 + $0xc30] sm:$0xff] }
  0xc1   :  { %1117 = vmatpush2.msra.mxu1 %v399_v61  ;;  %1049 = vmatprep.subr.mxu0 %v332_v62  ;;  %v497_v61 = vld [vmem:[%s3781_s1 + $0xe40] sm:$0xff]  ;;  %v430_v62 = vld [vmem:[%s3781_s1 + $0xc28] sm:$0xff] }
  0xc2   :  { %1118 = vmatprep.subr.mxu1 %v398_v63  ;;  %1050 = vmatpush2.msra.mxu0 %v331_v0  ;;  %v496_v63 = vld [vmem:[%s3781_s1 + $0xe38] sm:$0xff]  ;;  %v429_v0 = vld [vmem:[%s3781_s1 + $0xc20] sm:$0xff] }
  0xc3   :  { %1119 = vmatpush2.msra.mxu1 %v397_v1  ;;  %1051 = vmatprep.subr.mxu0 %v330_v2  ;;  %v495_v1 = vld [vmem:[%s3781_s1 + $0xe30] sm:$0xff]  ;;  %v428_v2 = vld [vmem:[%s3781_s1 + $0xc18] sm:$0xff] }
  0xc4   :  { %1120 = vmatprep.subr.mxu1 %v396_v3  ;;  %1052 = vmatpush2.msra.mxu0 %v329_v4  ;;  %v494_v3 = vld [vmem:[%s3781_s1 + $0xe28] sm:$0xff]  ;;  %v427_v4 = vld [vmem:[%s3781_s1 + $0xc10] sm:$0xff] }
  0xc5   :  { %1053 = vmatprep.mubr.f32.mxu0 %v29_v5  ;;  %1121 = vmatpush2.msra.mxu1 %v395_v6  ;;  %v493_v5 = vld [vmem:[%s3781_s1 + $0xe20] sm:$0xff]  ;;  %v426_v6 = vld [vmem:[%s3781_s1 + $0xc08] sm:$0xff] }
  0xc6   :  { %1054 = vmatmul.mubr.f32.vlgmr.msra.gmra.mxu0 %v28_v7  ;;  %1122 = vmatprep.subr.mxu1 %v394_v8  ;;  %v492_v7 = vld [vmem:[%s3781_s1 + $0xe18] sm:$0xff]  ;;  %v425_v8 = vld [vmem:[%s3781_s1 + $0xc00] sm:$0xff] }
  0xc7   :  { %1131 = vmatprep.subr.mxu0 %v456_v9  ;;  %1123 = vmatpush2.msra.mxu1 %v393_v10  ;;  %v491_v9 = vld [vmem:[%s3781_s1 + $0xe10] sm:$0xff]  ;;  %v488_v10 = vld [vmem:[%s3781_s1 + $0xdf8] sm:$0xff] }
  0xc8   :  { %1124 = vmatprep.mubr.f32.mxu1 %v31_v11  ;;  %1132 = vmatpush1.msra.mxu0 %v455_v12  ;;  %v490_v11 = vld [vmem:[%s3781_s1 + $0xe08] sm:$0xff]  ;;  %v487_v12 = vld [vmem:[%s3781_s1 + $0xdf0] sm:$0xff] }
  0xc9   :  { %1125 = vmatmul.mubr.f32.vlgmr.msra.gmra.mxu1 %v30_v13  ;;  %1133 = vmatprep.subr.mxu0 %v454_v14  ;;  %v489_v13 = vld [vmem:[%s3781_s1 + $0xe00] sm:$0xff]  ;;  %v486_v14 = vld [vmem:[%s3781_s1 + $0xde8] sm:$0xff] }
  0xca   :  { %1202 = vmatprep.subr.mxu1 %v520_v15  ;;  %1134 = vmatpush1.msra.mxu0 %v453_v16  ;;  %v552_v15 = vld [vmem:[%s3781_s1 + $0xff8] sm:$0xff]  ;;  %v485_v16 = vld [vmem:[%s3781_s1 + $0xde0] sm:$0xff] }
  0xcb   :  { %1203 = vmatpush1.msra.mxu1 %v519_v17  ;;  %1135 = vmatprep.subr.mxu0 %v452_v18  ;;  %v551_v17 = vld [vmem:[%s3781_s1 + $0xff0] sm:$0xff]  ;;  %v484_v18 = vld [vmem:[%s3781_s1 + $0xdd8] sm:$0xff] }
  0xcc   :  { %1204 = vmatprep.subr.mxu1 %v518_v19  ;;  %1136 = vmatpush1.msra.mxu0 %v451_v20  ;;  %v550_v19 = vld [vmem:[%s3781_s1 + $0xfe8] sm:$0xff]  ;;  %v483_v20 = vld [vmem:[%s3781_s1 + $0xdd0] sm:$0xff] }
  0xcd   :  { %1205 = vmatpush1.msra.mxu1 %v517_v21  ;;  %1137 = vmatprep.subr.mxu0 %v450_v22  ;;  %v549_v21 = vld [vmem:[%s3781_s1 + $0xfe0] sm:$0xff]  ;;  %v482_v22 = vld [vmem:[%s3781_s1 + $0xdc8] sm:$0xff] }
  0xce   :  { %1206 = vmatprep.subr.mxu1 %v516_v23  ;;  %1138 = vmatpush1.msra.mxu0 %v449_v24  ;;  %v548_v23 = vld [vmem:[%s3781_s1 + $0xfd8] sm:$0xff]  ;;  %v481_v24 = vld [vmem:[%s3781_s1 + $0xdc0] sm:$0xff] }
  0xcf   :  { %1207 = vmatpush1.msra.mxu1 %v515_v25  ;;  %1139 = vmatprep.subr.mxu0 %v448_v26  ;;  %v547_v25 = vld [vmem:[%s3781_s1 + $0xfd0] sm:$0xff]  ;;  %v480_v26 = vld [vmem:[%s3781_s1 + $0xdb8] sm:$0xff] }
  0xd0   :  { %1208 = vmatprep.subr.mxu1 %v514_v27  ;;  %1140 = vmatpush1.msra.mxu0 %v447_v28  ;;  %v546_v27 = vld [vmem:[%s3781_s1 + $0xfc8] sm:$0xff]  ;;  %v479_v28 = vld [vmem:[%s3781_s1 + $0xdb0] sm:$0xff] }
  0xd1   :  { %1209 = vmatpush1.msra.mxu1 %v513_v29  ;;  %1141 = vmatprep.subr.mxu0 %v446_v30  ;;  %v545_v29 = vld [vmem:[%s3781_s1 + $0xfc0] sm:$0xff]  ;;  %v478_v30 = vld [vmem:[%s3781_s1 + $0xda8] sm:$0xff] }
  0xd2   :  { %1210 = vmatprep.subr.mxu1 %v512_v31  ;;  %1142 = vmatpush1.msra.mxu0 %v445_v32  ;;  %v544_v31 = vld [vmem:[%s3781_s1 + $0xfb8] sm:$0xff]  ;;  %v477_v32 = vld [vmem:[%s3781_s1 + $0xda0] sm:$0xff] }
  0xd3   :  { %1211 = vmatpush1.msra.mxu1 %v511_v33  ;;  %1143 = vmatprep.subr.mxu0 %v444_v34  ;;  %v543_v33 = vld [vmem:[%s3781_s1 + $0xfb0] sm:$0xff]  ;;  %v476_v34 = vld [vmem:[%s3781_s1 + $0xd98] sm:$0xff] }
  0xd4   :  { %1212 = vmatprep.subr.mxu1 %v510_v35  ;;  %1144 = vmatpush1.msra.mxu0 %v443_v36  ;;  %v542_v35 = vld [vmem:[%s3781_s1 + $0xfa8] sm:$0xff]  ;;  %v475_v36 = vld [vmem:[%s3781_s1 + $0xd90] sm:$0xff] }
  0xd5   :  { %1213 = vmatpush1.msra.mxu1 %v509_v37  ;;  %1145 = vmatprep.subr.mxu0 %v442_v38  ;;  %v541_v37 = vld [vmem:[%s3781_s1 + $0xfa0] sm:$0xff]  ;;  %v474_v38 = vld [vmem:[%s3781_s1 + $0xd88] sm:$0xff] }
  0xd6   :  { %1214 = vmatprep.subr.mxu1 %v508_v39  ;;  %1146 = vmatpush1.msra.mxu0 %v441_v40  ;;  %v540_v39 = vld [vmem:[%s3781_s1 + $0xf98] sm:$0xff]  ;;  %v473_v40 = vld [vmem:[%s3781_s1 + $0xd80] sm:$0xff] }
  0xd7   :  { %1215 = vmatpush1.msra.mxu1 %v507_v41  ;;  %1147 = vmatprep.subr.mxu0 %v440_v42  ;;  %v539_v41 = vld [vmem:[%s3781_s1 + $0xf90] sm:$0xff]  ;;  %v472_v42 = vld [vmem:[%s3781_s1 + $0xd78] sm:$0xff] }
  0xd8   :  { %1216 = vmatprep.subr.mxu1 %v506_v43  ;;  %1148 = vmatpush1.msra.mxu0 %v439_v44  ;;  %v538_v43 = vld [vmem:[%s3781_s1 + $0xf88] sm:$0xff]  ;;  %v471_v44 = vld [vmem:[%s3781_s1 + $0xd70] sm:$0xff] }
  0xd9   :  { %1217 = vmatpush1.msra.mxu1 %v505_v45  ;;  %1149 = vmatprep.subr.mxu0 %v438_v46  ;;  %v537_v45 = vld [vmem:[%s3781_s1 + $0xf80] sm:$0xff]  ;;  %v470_v46 = vld [vmem:[%s3781_s1 + $0xd68] sm:$0xff] }
  0xda   :  { %1218 = vmatprep.subr.mxu1 %v504_v47  ;;  %1150 = vmatpush1.msra.mxu0 %v437_v48  ;;  %v536_v47 = vld [vmem:[%s3781_s1 + $0xf78] sm:$0xff]  ;;  %v469_v48 = vld [vmem:[%s3781_s1 + $0xd60] sm:$0xff] }
  0xdb   :  { %1219 = vmatpush1.msra.mxu1 %v503_v49  ;;  %1151 = vmatprep.subr.mxu0 %v436_v50  ;;  %v535_v49 = vld [vmem:[%s3781_s1 + $0xf70] sm:$0xff]  ;;  %v468_v50 = vld [vmem:[%s3781_s1 + $0xd58] sm:$0xff] }
  0xdc   :  { %1220 = vmatprep.subr.mxu1 %v502_v51  ;;  %1152 = vmatpush1.msra.mxu0 %v435_v52  ;;  %v534_v51 = vld [vmem:[%s3781_s1 + $0xf68] sm:$0xff]  ;;  %v467_v52 = vld [vmem:[%s3781_s1 + $0xd50] sm:$0xff] }
  0xdd   :  { %1221 = vmatpush1.msra.mxu1 %v501_v53  ;;  %1153 = vmatprep.subr.mxu0 %v434_v54  ;;  %v533_v53 = vld [vmem:[%s3781_s1 + $0xf60] sm:$0xff]  ;;  %v466_v54 = vld [vmem:[%s3781_s1 + $0xd48] sm:$0xff] }
  0xde   :  { %1222 = vmatprep.subr.mxu1 %v500_v55  ;;  %1154 = vmatpush1.msra.mxu0 %v433_v56  ;;  %v532_v55 = vld [vmem:[%s3781_s1 + $0xf58] sm:$0xff]  ;;  %v465_v56 = vld [vmem:[%s3781_s1 + $0xd40] sm:$0xff] }
  0xdf   :  { %1223 = vmatpush1.msra.mxu1 %v499_v57  ;;  %1155 = vmatprep.subr.mxu0 %v432_v58  ;;  %v531_v57 = vld [vmem:[%s3781_s1 + $0xf50] sm:$0xff]  ;;  %v464_v58 = vld [vmem:[%s3781_s1 + $0xd38] sm:$0xff] }
  0xe0   :  { %1224 = vmatprep.subr.mxu1 %v498_v59  ;;  %1156 = vmatpush1.msra.mxu0 %v431_v60  ;;  %v530_v59 = vld [vmem:[%s3781_s1 + $0xf48] sm:$0xff]  ;;  %v463_v60 = vld [vmem:[%s3781_s1 + $0xd30] sm:$0xff] }
  0xe1   :  { %1225 = vmatpush1.msra.mxu1 %v497_v61  ;;  %1157 = vmatprep.subr.mxu0 %v430_v62  ;;  %v529_v61 = vld [vmem:[%s3781_s1 + $0xf40] sm:$0xff]  ;;  %v462_v62 = vld [vmem:[%s3781_s1 + $0xd28] sm:$0xff] }
  0xe2   :  { %1226 = vmatprep.subr.mxu1 %v496_v63  ;;  %1158 = vmatpush1.msra.mxu0 %v429_v0  ;;  %v528_v63 = vld [vmem:[%s3781_s1 + $0xf38] sm:$0xff]  ;;  %v461_v0 = vld [vmem:[%s3781_s1 + $0xd20] sm:$0xff] }
  0xe3   :  { %1227 = vmatpush1.msra.mxu1 %v495_v1  ;;  %1159 = vmatprep.subr.mxu0 %v428_v2  ;;  %v527_v1 = vld [vmem:[%s3781_s1 + $0xf30] sm:$0xff]  ;;  %v460_v2 = vld [vmem:[%s3781_s1 + $0xd18] sm:$0xff] }
  0xe4   :  { %1228 = vmatprep.subr.mxu1 %v494_v3  ;;  %1160 = vmatpush1.msra.mxu0 %v427_v4  ;;  %v526_v3 = vld [vmem:[%s3781_s1 + $0xf28] sm:$0xff]  ;;  %v459_v4 = vld [vmem:[%s3781_s1 + $0xd10] sm:$0xff] }
  0xe5   :  { %1229 = vmatpush1.msra.mxu1 %v493_v5  ;;  %1161 = vmatprep.subr.mxu0 %v426_v6  ;;  %v525_v5 = vld [vmem:[%s3781_s1 + $0xf20] sm:$0xff]  ;;  %v458_v6 = vld [vmem:[%s3781_s1 + $0xd08] sm:$0xff] }
  0xe6   :  { %1230 = vmatprep.subr.mxu1 %v492_v7  ;;  %1162 = vmatpush1.msra.mxu0 %v425_v8  ;;  %v524_v7 = vld [vmem:[%s3781_s1 + $0xf18] sm:$0xff]  ;;  %v457_v8 = vld [vmem:[%s3781_s1 + $0xd00] sm:$0xff] }
  0xe7   :  { %1231 = vmatpush1.msra.mxu1 %v491_v9  ;;  %1163 = vmatprep.subr.mxu0 %v488_v10  ;;  %v33_v9 = vld [vmem:[%s3782_s0 + $0x68] sm:$0xff]  ;;  %v523_v10 = vld [vmem:[%s3781_s1 + $0xf10] sm:$0xff] }
  0xe8   :  { %1232 = vmatprep.subr.mxu1 %v490_v11  ;;  %1164 = vmatpush2.msra.mxu0 %v487_v12  ;;  %v32_v11 = vld [vmem:[%s3782_s0 + $0x60] sm:$0xff]  ;;  %v522_v12 = vld [vmem:[%s3781_s1 + $0xf08] sm:$0xff] }
  0xe9   :  { %1233 = vmatpush1.msra.mxu1 %v489_v13  ;;  %1165 = vmatprep.subr.mxu0 %v486_v14  ;;  %v584_v13 = vld [vmem:[%s3781_s1 + $0x10f8] sm:$0xff]  ;;  %v521_v14 = vld [vmem:[%s3781_s1 + $0xf00] sm:$0xff] }
  0xea   :  { %1234 = vmatprep.subr.mxu1 %v552_v15  ;;  %1166 = vmatpush2.msra.mxu0 %v485_v16  ;;  %v35_v15 = vld [vmem:[%s3782_s0 + $0x78] sm:$0xff]  ;;  %v583_v16 = vld [vmem:[%s3781_s1 + $0x10f0] sm:$0xff] }
  0xeb   :  { %1235 = vmatpush2.msra.mxu1 %v551_v17  ;;  %1167 = vmatprep.subr.mxu0 %v484_v18  ;;  %v34_v17 = vld [vmem:[%s3782_s0 + $0x70] sm:$0xff]  ;;  %v582_v18 = vld [vmem:[%s3781_s1 + $0x10e8] sm:$0xff] }
  0xec   :  { %1236 = vmatprep.subr.mxu1 %v550_v19  ;;  %1168 = vmatpush2.msra.mxu0 %v483_v20  ;;  %v648_v19 = vld [vmem:[%s3781_s1 + $0x12f8] sm:$0xff]  ;;  %v581_v20 = vld [vmem:[%s3781_s1 + $0x10e0] sm:$0xff] }
  0xed   :  { %1237 = vmatpush2.msra.mxu1 %v549_v21  ;;  %1169 = vmatprep.subr.mxu0 %v482_v22  ;;  %v647_v21 = vld [vmem:[%s3781_s1 + $0x12f0] sm:$0xff]  ;;  %v580_v22 = vld [vmem:[%s3781_s1 + $0x10d8] sm:$0xff] }
  0xee   :  { %1238 = vmatprep.subr.mxu1 %v548_v23  ;;  %1170 = vmatpush2.msra.mxu0 %v481_v24  ;;  %v646_v23 = vld [vmem:[%s3781_s1 + $0x12e8] sm:$0xff]  ;;  %v579_v24 = vld [vmem:[%s3781_s1 + $0x10d0] sm:$0xff] }
  0xef   :  { %1239 = vmatpush2.msra.mxu1 %v547_v25  ;;  %1171 = vmatprep.subr.mxu0 %v480_v26  ;;  %v645_v25 = vld [vmem:[%s3781_s1 + $0x12e0] sm:$0xff]  ;;  %v578_v26 = vld [vmem:[%s3781_s1 + $0x10c8] sm:$0xff] }
  0xf0   :  { %1240 = vmatprep.subr.mxu1 %v546_v27  ;;  %1172 = vmatpush2.msra.mxu0 %v479_v28  ;;  %v644_v27 = vld [vmem:[%s3781_s1 + $0x12d8] sm:$0xff]  ;;  %v577_v28 = vld [vmem:[%s3781_s1 + $0x10c0] sm:$0xff] }
  0xf1   :  { %1241 = vmatpush2.msra.mxu1 %v545_v29  ;;  %1173 = vmatprep.subr.mxu0 %v478_v30  ;;  %v643_v29 = vld [vmem:[%s3781_s1 + $0x12d0] sm:$0xff]  ;;  %v576_v30 = vld [vmem:[%s3781_s1 + $0x10b8] sm:$0xff] }
  0xf2   :  { %1242 = vmatprep.subr.mxu1 %v544_v31  ;;  %1174 = vmatpush2.msra.mxu0 %v477_v32  ;;  %v642_v31 = vld [vmem:[%s3781_s1 + $0x12c8] sm:$0xff]  ;;  %v575_v32 = vld [vmem:[%s3781_s1 + $0x10b0] sm:$0xff] }
  0xf3   :  { %1243 = vmatpush2.msra.mxu1 %v543_v33  ;;  %1175 = vmatprep.subr.mxu0 %v476_v34  ;;  %v641_v33 = vld [vmem:[%s3781_s1 + $0x12c0] sm:$0xff]  ;;  %v574_v34 = vld [vmem:[%s3781_s1 + $0x10a8] sm:$0xff] }
  0xf4   :  { %1244 = vmatprep.subr.mxu1 %v542_v35  ;;  %1176 = vmatpush2.msra.mxu0 %v475_v36  ;;  %v640_v35 = vld [vmem:[%s3781_s1 + $0x12b8] sm:$0xff]  ;;  %v573_v36 = vld [vmem:[%s3781_s1 + $0x10a0] sm:$0xff] }
  0xf5   :  { %1245 = vmatpush2.msra.mxu1 %v541_v37  ;;  %1177 = vmatprep.subr.mxu0 %v474_v38  ;;  %v639_v37 = vld [vmem:[%s3781_s1 + $0x12b0] sm:$0xff]  ;;  %v572_v38 = vld [vmem:[%s3781_s1 + $0x1098] sm:$0xff] }
  0xf6   :  { %1246 = vmatprep.subr.mxu1 %v540_v39  ;;  %1178 = vmatpush2.msra.mxu0 %v473_v40  ;;  %v638_v39 = vld [vmem:[%s3781_s1 + $0x12a8] sm:$0xff]  ;;  %v571_v40 = vld [vmem:[%s3781_s1 + $0x1090] sm:$0xff] }
  0xf7   :  { %1247 = vmatpush2.msra.mxu1 %v539_v41  ;;  %1179 = vmatprep.subr.mxu0 %v472_v42  ;;  %v637_v41 = vld [vmem:[%s3781_s1 + $0x12a0] sm:$0xff]  ;;  %v570_v42 = vld [vmem:[%s3781_s1 + $0x1088] sm:$0xff] }
  0xf8   :  { %1248 = vmatprep.subr.mxu1 %v538_v43  ;;  %1180 = vmatpush2.msra.mxu0 %v471_v44  ;;  %v636_v43 = vld [vmem:[%s3781_s1 + $0x1298] sm:$0xff]  ;;  %v569_v44 = vld [vmem:[%s3781_s1 + $0x1080] sm:$0xff] }
  0xf9   :  { %1249 = vmatpush2.msra.mxu1 %v537_v45  ;;  %1181 = vmatprep.subr.mxu0 %v470_v46  ;;  %v635_v45 = vld [vmem:[%s3781_s1 + $0x1290] sm:$0xff]  ;;  %v568_v46 = vld [vmem:[%s3781_s1 + $0x1078] sm:$0xff] }
  0xfa   :  { %1250 = vmatprep.subr.mxu1 %v536_v47  ;;  %1182 = vmatpush2.msra.mxu0 %v469_v48  ;;  %v634_v47 = vld [vmem:[%s3781_s1 + $0x1288] sm:$0xff]  ;;  %v567_v48 = vld [vmem:[%s3781_s1 + $0x1070] sm:$0xff] }
  0xfb   :  { %1251 = vmatpush2.msra.mxu1 %v535_v49  ;;  %1183 = vmatprep.subr.mxu0 %v468_v50  ;;  %v633_v49 = vld [vmem:[%s3781_s1 + $0x1280] sm:$0xff]  ;;  %v566_v50 = vld [vmem:[%s3781_s1 + $0x1068] sm:$0xff] }
  0xfc   :  { %1252 = vmatprep.subr.mxu1 %v534_v51  ;;  %1184 = vmatpush2.msra.mxu0 %v467_v52  ;;  %v632_v51 = vld [vmem:[%s3781_s1 + $0x1278] sm:$0xff]  ;;  %v565_v52 = vld [vmem:[%s3781_s1 + $0x1060] sm:$0xff] }
  0xfd   :  { %1253 = vmatpush2.msra.mxu1 %v533_v53  ;;  %1185 = vmatprep.subr.mxu0 %v466_v54  ;;  %v631_v53 = vld [vmem:[%s3781_s1 + $0x1270] sm:$0xff]  ;;  %v564_v54 = vld [vmem:[%s3781_s1 + $0x1058] sm:$0xff] }
  0xfe   :  { %1254 = vmatprep.subr.mxu1 %v532_v55  ;;  %1186 = vmatpush2.msra.mxu0 %v465_v56  ;;  %v630_v55 = vld [vmem:[%s3781_s1 + $0x1268] sm:$0xff]  ;;  %v563_v56 = vld [vmem:[%s3781_s1 + $0x1050] sm:$0xff] }
  0xff   :  { %1255 = vmatpush2.msra.mxu1 %v531_v57  ;;  %1187 = vmatprep.subr.mxu0 %v464_v58  ;;  %v629_v57 = vld [vmem:[%s3781_s1 + $0x1260] sm:$0xff]  ;;  %v562_v58 = vld [vmem:[%s3781_s1 + $0x1048] sm:$0xff] }
 0x100   :  { %1256 = vmatprep.subr.mxu1 %v530_v59  ;;  %1188 = vmatpush2.msra.mxu0 %v463_v60  ;;  %v628_v59 = vld [vmem:[%s3781_s1 + $0x1258] sm:$0xff]  ;;  %v561_v60 = vld [vmem:[%s3781_s1 + $0x1040] sm:$0xff] }
 0x101   :  { %1257 = vmatpush2.msra.mxu1 %v529_v61  ;;  %1189 = vmatprep.subr.mxu0 %v462_v62  ;;  %v627_v61 = vld [vmem:[%s3781_s1 + $0x1250] sm:$0xff]  ;;  %v560_v62 = vld [vmem:[%s3781_s1 + $0x1038] sm:$0xff] }
 0x102   :  { %1258 = vmatprep.subr.mxu1 %v528_v63  ;;  %1190 = vmatpush2.msra.mxu0 %v461_v0  ;;  %v626_v63 = vld [vmem:[%s3781_s1 + $0x1248] sm:$0xff]  ;;  %v559_v0 = vld [vmem:[%s3781_s1 + $0x1030] sm:$0xff] }
 0x103   :  { %1259 = vmatpush2.msra.mxu1 %v527_v1  ;;  %1191 = vmatprep.subr.mxu0 %v460_v2  ;;  %v625_v1 = vld [vmem:[%s3781_s1 + $0x1240] sm:$0xff]  ;;  %v558_v2 = vld [vmem:[%s3781_s1 + $0x1028] sm:$0xff] }
 0x104   :  { %1260 = vmatprep.subr.mxu1 %v526_v3  ;;  %1192 = vmatpush2.msra.mxu0 %v459_v4  ;;  %v624_v3 = vld [vmem:[%s3781_s1 + $0x1238] sm:$0xff]  ;;  %v557_v4 = vld [vmem:[%s3781_s1 + $0x1020] sm:$0xff] }
 0x105   :  { %1261 = vmatpush2.msra.mxu1 %v525_v5  ;;  %1193 = vmatprep.subr.mxu0 %v458_v6  ;;  %v623_v5 = vld [vmem:[%s3781_s1 + $0x1230] sm:$0xff]  ;;  %v556_v6 = vld [vmem:[%s3781_s1 + $0x1018] sm:$0xff] }
 0x106   :  { %1262 = vmatprep.subr.mxu1 %v524_v7  ;;  %1194 = vmatpush2.msra.mxu0 %v457_v8  ;;  %v622_v7 = vld [vmem:[%s3781_s1 + $0x1228] sm:$0xff]  ;;  %v555_v8 = vld [vmem:[%s3781_s1 + $0x1010] sm:$0xff] }
 0x107   :  { %1195 = vmatprep.mubr.f32.mxu0 %v33_v9  ;;  %1263 = vmatpush2.msra.mxu1 %v523_v10  ;;  %v621_v9 = vld [vmem:[%s3781_s1 + $0x1220] sm:$0xff]  ;;  %v554_v10 = vld [vmem:[%s3781_s1 + $0x1008] sm:$0xff] }
 0x108   :  { %1196 = vmatmul.mubr.f32.vlgmr.msra.gmra.mxu0 %v32_v11  ;;  %1264 = vmatprep.subr.mxu1 %v522_v12  ;;  %v620_v11 = vld [vmem:[%s3781_s1 + $0x1218] sm:$0xff]  ;;  %v553_v12 = vld [vmem:[%s3781_s1 + $0x1000] sm:$0xff] }
 0x109   :  { %1273 = vmatprep.subr.mxu0 %v584_v13  ;;  %1265 = vmatpush2.msra.mxu1 %v521_v14  ;;  %v619_v13 = vld [vmem:[%s3781_s1 + $0x1210] sm:$0xff]  ;;  %v616_v14 = vld [vmem:[%s3781_s1 + $0x11f8] sm:$0xff] }
 0x10a   :  { %1266 = vmatprep.mubr.f32.mxu1 %v35_v15  ;;  %1274 = vmatpush1.msra.mxu0 %v583_v16  ;;  %v618_v15 = vld [vmem:[%s3781_s1 + $0x1208] sm:$0xff]  ;;  %v615_v16 = vld [vmem:[%s3781_s1 + $0x11f0] sm:$0xff] }
 0x10b   :  { %1267 = vmatmul.mubr.f32.vlgmr.msra.gmra.mxu1 %v34_v17  ;;  %1275 = vmatprep.subr.mxu0 %v582_v18  ;;  %v617_v17 = vld [vmem:[%s3781_s1 + $0x1200] sm:$0xff]  ;;  %v614_v18 = vld [vmem:[%s3781_s1 + $0x11e8] sm:$0xff] }
 0x10c   :  { %1344 = vmatprep.subr.mxu1 %v648_v19  ;;  %1276 = vmatpush1.msra.mxu0 %v581_v20  ;;  %v680_v19 = vld [vmem:[%s3781_s1 + $0x13f8] sm:$0xff]  ;;  %v613_v20 = vld [vmem:[%s3781_s1 + $0x11e0] sm:$0xff] }
 0x10d   :  { %1345 = vmatpush1.msra.mxu1 %v647_v21  ;;  %1277 = vmatprep.subr.mxu0 %v580_v22  ;;  %v679_v21 = vld [vmem:[%s3781_s1 + $0x13f0] sm:$0xff]  ;;  %v612_v22 = vld [vmem:[%s3781_s1 + $0x11d8] sm:$0xff] }
 0x10e   :  { %1346 = vmatprep.subr.mxu1 %v646_v23  ;;  %1278 = vmatpush1.msra.mxu0 %v579_v24  ;;  %v678_v23 = vld [vmem:[%s3781_s1 + $0x13e8] sm:$0xff]  ;;  %v611_v24 = vld [vmem:[%s3781_s1 + $0x11d0] sm:$0xff] }
 0x10f   :  { %1347 = vmatpush1.msra.mxu1 %v645_v25  ;;  %1279 = vmatprep.subr.mxu0 %v578_v26  ;;  %v677_v25 = vld [vmem:[%s3781_s1 + $0x13e0] sm:$0xff]  ;;  %v610_v26 = vld [vmem:[%s3781_s1 + $0x11c8] sm:$0xff] }
 0x110   :  { %1348 = vmatprep.subr.mxu1 %v644_v27  ;;  %1280 = vmatpush1.msra.mxu0 %v577_v28  ;;  %v676_v27 = vld [vmem:[%s3781_s1 + $0x13d8] sm:$0xff]  ;;  %v609_v28 = vld [vmem:[%s3781_s1 + $0x11c0] sm:$0xff] }
 0x111   :  { %1349 = vmatpush1.msra.mxu1 %v643_v29  ;;  %1281 = vmatprep.subr.mxu0 %v576_v30  ;;  %v675_v29 = vld [vmem:[%s3781_s1 + $0x13d0] sm:$0xff]  ;;  %v608_v30 = vld [vmem:[%s3781_s1 + $0x11b8] sm:$0xff] }
 0x112   :  { %1350 = vmatprep.subr.mxu1 %v642_v31  ;;  %1282 = vmatpush1.msra.mxu0 %v575_v32  ;;  %v674_v31 = vld [vmem:[%s3781_s1 + $0x13c8] sm:$0xff]  ;;  %v607_v32 = vld [vmem:[%s3781_s1 + $0x11b0] sm:$0xff] }
 0x113   :  { %1351 = vmatpush1.msra.mxu1 %v641_v33  ;;  %1283 = vmatprep.subr.mxu0 %v574_v34  ;;  %v673_v33 = vld [vmem:[%s3781_s1 + $0x13c0] sm:$0xff]  ;;  %v606_v34 = vld [vmem:[%s3781_s1 + $0x11a8] sm:$0xff] }
 0x114   :  { %1352 = vmatprep.subr.mxu1 %v640_v35  ;;  %1284 = vmatpush1.msra.mxu0 %v573_v36  ;;  %v672_v35 = vld [vmem:[%s3781_s1 + $0x13b8] sm:$0xff]  ;;  %v605_v36 = vld [vmem:[%s3781_s1 + $0x11a0] sm:$0xff] }
 0x115   :  { %1353 = vmatpush1.msra.mxu1 %v639_v37  ;;  %1285 = vmatprep.subr.mxu0 %v572_v38  ;;  %v671_v37 = vld [vmem:[%s3781_s1 + $0x13b0] sm:$0xff]  ;;  %v604_v38 = vld [vmem:[%s3781_s1 + $0x1198] sm:$0xff] }
 0x116   :  { %1354 = vmatprep.subr.mxu1 %v638_v39  ;;  %1286 = vmatpush1.msra.mxu0 %v571_v40  ;;  %v670_v39 = vld [vmem:[%s3781_s1 + $0x13a8] sm:$0xff]  ;;  %v603_v40 = vld [vmem:[%s3781_s1 + $0x1190] sm:$0xff] }
 0x117   :  { %1355 = vmatpush1.msra.mxu1 %v637_v41  ;;  %1287 = vmatprep.subr.mxu0 %v570_v42  ;;  %v669_v41 = vld [vmem:[%s3781_s1 + $0x13a0] sm:$0xff]  ;;  %v602_v42 = vld [vmem:[%s3781_s1 + $0x1188] sm:$0xff] }
 0x118   :  { %1356 = vmatprep.subr.mxu1 %v636_v43  ;;  %1288 = vmatpush1.msra.mxu0 %v569_v44  ;;  %v668_v43 = vld [vmem:[%s3781_s1 + $0x1398] sm:$0xff]  ;;  %v601_v44 = vld [vmem:[%s3781_s1 + $0x1180] sm:$0xff] }
 0x119   :  { %1357 = vmatpush1.msra.mxu1 %v635_v45  ;;  %1289 = vmatprep.subr.mxu0 %v568_v46  ;;  %v667_v45 = vld [vmem:[%s3781_s1 + $0x1390] sm:$0xff]  ;;  %v600_v46 = vld [vmem:[%s3781_s1 + $0x1178] sm:$0xff] }
 0x11a   :  { %1358 = vmatprep.subr.mxu1 %v634_v47  ;;  %1290 = vmatpush1.msra.mxu0 %v567_v48  ;;  %v666_v47 = vld [vmem:[%s3781_s1 + $0x1388] sm:$0xff]  ;;  %v599_v48 = vld [vmem:[%s3781_s1 + $0x1170] sm:$0xff] }
 0x11b   :  { %1359 = vmatpush1.msra.mxu1 %v633_v49  ;;  %1291 = vmatprep.subr.mxu0 %v566_v50  ;;  %v665_v49 = vld [vmem:[%s3781_s1 + $0x1380] sm:$0xff]  ;;  %v598_v50 = vld [vmem:[%s3781_s1 + $0x1168] sm:$0xff] }
 0x11c   :  { %1360 = vmatprep.subr.mxu1 %v632_v51  ;;  %1292 = vmatpush1.msra.mxu0 %v565_v52  ;;  %v664_v51 = vld [vmem:[%s3781_s1 + $0x1378] sm:$0xff]  ;;  %v597_v52 = vld [vmem:[%s3781_s1 + $0x1160] sm:$0xff] }
 0x11d   :  { %1361 = vmatpush1.msra.mxu1 %v631_v53  ;;  %1293 = vmatprep.subr.mxu0 %v564_v54  ;;  %v663_v53 = vld [vmem:[%s3781_s1 + $0x1370] sm:$0xff]  ;;  %v596_v54 = vld [vmem:[%s3781_s1 + $0x1158] sm:$0xff] }
 0x11e   :  { %1362 = vmatprep.subr.mxu1 %v630_v55  ;;  %1294 = vmatpush1.msra.mxu0 %v563_v56  ;;  %v662_v55 = vld [vmem:[%s3781_s1 + $0x1368] sm:$0xff]  ;;  %v595_v56 = vld [vmem:[%s3781_s1 + $0x1150] sm:$0xff] }
 0x11f   :  { %1363 = vmatpush1.msra.mxu1 %v629_v57  ;;  %1295 = vmatprep.subr.mxu0 %v562_v58  ;;  %v661_v57 = vld [vmem:[%s3781_s1 + $0x1360] sm:$0xff]  ;;  %v594_v58 = vld [vmem:[%s3781_s1 + $0x1148] sm:$0xff] }
 0x120   :  { %1364 = vmatprep.subr.mxu1 %v628_v59  ;;  %1296 = vmatpush1.msra.mxu0 %v561_v60  ;;  %v660_v59 = vld [vmem:[%s3781_s1 + $0x1358] sm:$0xff]  ;;  %v593_v60 = vld [vmem:[%s3781_s1 + $0x1140] sm:$0xff] }
 0x121   :  { %1365 = vmatpush1.msra.mxu1 %v627_v61  ;;  %1297 = vmatprep.subr.mxu0 %v560_v62  ;;  %v659_v61 = vld [vmem:[%s3781_s1 + $0x1350] sm:$0xff]  ;;  %v592_v62 = vld [vmem:[%s3781_s1 + $0x1138] sm:$0xff] }
 0x122   :  { %1366 = vmatprep.subr.mxu1 %v626_v63  ;;  %1298 = vmatpush1.msra.mxu0 %v559_v0  ;;  %v658_v63 = vld [vmem:[%s3781_s1 + $0x1348] sm:$0xff]  ;;  %v591_v0 = vld [vmem:[%s3781_s1 + $0x1130] sm:$0xff] }
 0x123   :  { %1367 = vmatpush1.msra.mxu1 %v625_v1  ;;  %1299 = vmatprep.subr.mxu0 %v558_v2  ;;  %v657_v1 = vld [vmem:[%s3781_s1 + $0x1340] sm:$0xff]  ;;  %v590_v2 = vld [vmem:[%s3781_s1 + $0x1128] sm:$0xff] }
 0x124   :  { %1368 = vmatprep.subr.mxu1 %v624_v3  ;;  %1300 = vmatpush1.msra.mxu0 %v557_v4  ;;  %v656_v3 = vld [vmem:[%s3781_s1 + $0x1338] sm:$0xff]  ;;  %v589_v4 = vld [vmem:[%s3781_s1 + $0x1120] sm:$0xff] }
 0x125   :  { %1369 = vmatpush1.msra.mxu1 %v623_v5  ;;  %1301 = vmatprep.subr.mxu0 %v556_v6  ;;  %v655_v5 = vld [vmem:[%s3781_s1 + $0x1330] sm:$0xff]  ;;  %v588_v6 = vld [vmem:[%s3781_s1 + $0x1118] sm:$0xff] }
 0x126   :  { %1370 = vmatprep.subr.mxu1 %v622_v7  ;;  %1302 = vmatpush1.msra.mxu0 %v555_v8  ;;  %v654_v7 = vld [vmem:[%s3781_s1 + $0x1328] sm:$0xff]  ;;  %v587_v8 = vld [vmem:[%s3781_s1 + $0x1110] sm:$0xff] }
 0x127   :  { %1371 = vmatpush1.msra.mxu1 %v621_v9  ;;  %1303 = vmatprep.subr.mxu0 %v554_v10  ;;  %v653_v9 = vld [vmem:[%s3781_s1 + $0x1320] sm:$0xff]  ;;  %v586_v10 = vld [vmem:[%s3781_s1 + $0x1108] sm:$0xff] }
 0x128   :  { %1372 = vmatprep.subr.mxu1 %v620_v11  ;;  %1304 = vmatpush1.msra.mxu0 %v553_v12  ;;  %v652_v11 = vld [vmem:[%s3781_s1 + $0x1318] sm:$0xff]  ;;  %v585_v12 = vld [vmem:[%s3781_s1 + $0x1100] sm:$0xff] }
 0x129   :  { %1373 = vmatpush1.msra.mxu1 %v619_v13  ;;  %1305 = vmatprep.subr.mxu0 %v616_v14  ;;  %v37_v13 = vld [vmem:[%s3782_s0 + $0x88] sm:$0xff]  ;;  %v651_v14 = vld [vmem:[%s3781_s1 + $0x1310] sm:$0xff] }
 0x12a   :  { %1374 = vmatprep.subr.mxu1 %v618_v15  ;;  %1306 = vmatpush2.msra.mxu0 %v615_v16  ;;  %v36_v15 = vld [vmem:[%s3782_s0 + $0x80] sm:$0xff]  ;;  %v650_v16 = vld [vmem:[%s3781_s1 + $0x1308] sm:$0xff] }
 0x12b   :  { %1375 = vmatpush1.msra.mxu1 %v617_v17  ;;  %1307 = vmatprep.subr.mxu0 %v614_v18  ;;  %v688_v17 = vld [vmem:[%s3781_s1 + $0x1438] sm:$0xff]  ;;  %v649_v18 = vld [vmem:[%s3781_s1 + $0x1300] sm:$0xff] }
 0x12c   :  { %1376 = vmatprep.subr.mxu1 %v680_v19  ;;  %1308 = vmatpush2.msra.mxu0 %v613_v20  ;;  %v39_v19 = vld [vmem:[%s3782_s0 + $0x98] sm:$0xff]  ;;  %v687_v20 = vld [vmem:[%s3781_s1 + $0x1430] sm:$0xff] }
 0x12d   :  { %1377 = vmatpush2.msra.mxu1 %v679_v21  ;;  %1309 = vmatprep.subr.mxu0 %v612_v22  ;;  %v38_v21 = vld [vmem:[%s3782_s0 + $0x90] sm:$0xff]  ;;  %v686_v22 = vld [vmem:[%s3781_s1 + $0x1428] sm:$0xff] }
 0x12e   :  { %1378 = vmatprep.subr.mxu1 %v678_v23  ;;  %1310 = vmatpush2.msra.mxu0 %v611_v24  ;;  %v685_v23 = vld [vmem:[%s3781_s1 + $0x1420] sm:$0xff]  ;;  %v684_v24 = vld [vmem:[%s3781_s1 + $0x1418] sm:$0xff] }
 0x12f   :  { %1379 = vmatpush2.msra.mxu1 %v677_v25  ;;  %1311 = vmatprep.subr.mxu0 %v610_v26  ;;  %v683_v25 = vld [vmem:[%s3781_s1 + $0x1410] sm:$0xff]  ;;  %v682_v26 = vld [vmem:[%s3781_s1 + $0x1408] sm:$0xff] }
 0x130   :  { %1380 = vmatprep.subr.mxu1 %v676_v27  ;;  %1312 = vmatpush2.msra.mxu0 %v609_v28  ;;  %v681_v27 = vld [vmem:[%s3781_s1 + $0x1400] sm:$0xff]  ;;  %v1638_v28 = vmov 0.0  }
 0x131   :  { %1381 = vmatpush2.msra.mxu1 %v675_v29  ;;  %1313 = vmatprep.subr.mxu0 %v608_v30  ;;  %v1517_v29 = vld [vmem:[%s3783_s3 + $0xf8] sm:$0xff] }
 0x132   :  { %1382 = vmatprep.subr.mxu1 %v674_v31  ;;  %1314 = vmatpush2.msra.mxu0 %v607_v32  ;;  %v1501_v30 = vld [vmem:[%s3783_s3 + $0x78] sm:$0xff]  ;;  %v1516_v31 = vld [vmem:[%s3783_s3 + $0xf0] sm:$0xff]  ;;  %v40_v32 = vld [vmem:[%s3782_s0 + $0xa0] sm:$0xff] }
 0x133   :  { %1383 = vmatpush2.msra.mxu1 %v673_v33  ;;  %1315 = vmatprep.subr.mxu0 %v606_v34  ;;  %v1500_v33 = vld [vmem:[%s3783_s3 + $0x70] sm:$0xff]  ;;  %v1515_v34 = vld [vmem:[%s3783_s3 + $0xe8] sm:$0xff] }
 0x134   :  { %1384 = vmatprep.subr.mxu1 %v672_v35  ;;  %1316 = vmatpush2.msra.mxu0 %v605_v36  ;;  %v1499_v35 = vld [vmem:[%s3783_s3 + $0x68] sm:$0xff]  ;;  %v1514_v36 = vld [vmem:[%s3783_s3 + $0xe0] sm:$0xff] }
 0x135   :  { %1385 = vmatpush2.msra.mxu1 %v671_v37  ;;  %1317 = vmatprep.subr.mxu0 %v604_v38  ;;  %v1498_v37 = vld [vmem:[%s3783_s3 + $0x60] sm:$0xff]  ;;  %v1513_v38 = vld [vmem:[%s3783_s3 + $0xd8] sm:$0xff] }
 0x136   :  { %1386 = vmatprep.subr.mxu1 %v670_v39  ;;  %1318 = vmatpush2.msra.mxu0 %v603_v40  ;;  %v1497_v39 = vld [vmem:[%s3783_s3 + $0x58] sm:$0xff]  ;;  %v1512_v40 = vld [vmem:[%s3783_s3 + $0xd0] sm:$0xff] }
 0x137   :  { %1387 = vmatpush2.msra.mxu1 %v669_v41  ;;  %1319 = vmatprep.subr.mxu0 %v602_v42  ;;  %v1496_v41 = vld [vmem:[%s3783_s3 + $0x50] sm:$0xff]  ;;  %v1511_v42 = vld [vmem:[%s3783_s3 + $0xc8] sm:$0xff] }
 0x138   :  { %1388 = vmatprep.subr.mxu1 %v668_v43  ;;  %1320 = vmatpush2.msra.mxu0 %v601_v44  ;;  %v1495_v43 = vld [vmem:[%s3783_s3 + $0x48] sm:$0xff]  ;;  %v1510_v44 = vld [vmem:[%s3783_s3 + $0xc0] sm:$0xff] }
 0x139   :  { %1389 = vmatpush2.msra.mxu1 %v667_v45  ;;  %1321 = vmatprep.subr.mxu0 %v600_v46  ;;  %v1494_v45 = vld [vmem:[%s3783_s3 + $0x40] sm:$0xff]  ;;  %v1509_v46 = vld [vmem:[%s3783_s3 + $0xb8] sm:$0xff] }
 0x13a   :  { %1390 = vmatprep.subr.mxu1 %v666_v47  ;;  %1322 = vmatpush2.msra.mxu0 %v599_v48  ;;  %v1493_v47 = vld [vmem:[%s3783_s3 + $0x38] sm:$0xff]  ;;  %v1508_v48 = vld [vmem:[%s3783_s3 + $0xb0] sm:$0xff] }
 0x13b   :  { %1391 = vmatpush2.msra.mxu1 %v665_v49  ;;  %1323 = vmatprep.subr.mxu0 %v598_v50  ;;  %v1492_v49 = vld [vmem:[%s3783_s3 + $0x30] sm:$0xff]  ;;  %v1507_v50 = vld [vmem:[%s3783_s3 + $0xa8] sm:$0xff] }
 0x13c   :  { %1392 = vmatprep.subr.mxu1 %v664_v51  ;;  %1324 = vmatpush2.msra.mxu0 %v597_v52  ;;  %v1491_v51 = vld [vmem:[%s3783_s3 + $0x28] sm:$0xff]  ;;  %v1506_v52 = vld [vmem:[%s3783_s3 + $0xa0] sm:$0xff] }
 0x13d   :  { %1393 = vmatpush2.msra.mxu1 %v663_v53  ;;  %1325 = vmatprep.subr.mxu0 %v596_v54  ;;  %v1490_v53 = vld [vmem:[%s3783_s3 + $0x20] sm:$0xff]  ;;  %v1505_v54 = vld [vmem:[%s3783_s3 + $0x98] sm:$0xff] }
 0x13e   :  { %1394 = vmatprep.subr.mxu1 %v662_v55  ;;  %1326 = vmatpush2.msra.mxu0 %v595_v56  ;;  %v1489_v55 = vld [vmem:[%s3783_s3 + $0x18] sm:$0xff]  ;;  %v1504_v56 = vld [vmem:[%s3783_s3 + $0x90] sm:$0xff] }
 0x13f   :  { %1395 = vmatpush2.msra.mxu1 %v661_v57  ;;  %1327 = vmatprep.subr.mxu0 %v594_v58  ;;  %v1488_v57 = vld [vmem:[%s3783_s3 + $0x10] sm:$0xff]  ;;  %v1503_v58 = vld [vmem:[%s3783_s3 + $0x88] sm:$0xff] }
 0x140   :  { %1396 = vmatprep.subr.mxu1 %v660_v59  ;;  %1328 = vmatpush2.msra.mxu0 %v593_v60  ;;  %v1487_v59 = vld [vmem:[%s3783_s3 + $0x8] sm:$0xff]  ;;  %v1502_v60 = vld [vmem:[%s3783_s3 + $0x80] sm:$0xff] }
 0x141   :  { %1397 = vmatpush2.msra.mxu1 %v659_v61  ;;  %1329 = vmatprep.subr.mxu0 %v592_v62  ;;  %v1486_v61 = vld [vmem:[%s3783_s3] sm:$0xff]  ;;  %v691_v62 = vlaneseq }
 0x142   :  { %1398 = vmatprep.subr.mxu1 %v658_v63  ;;  %1330 = vmatpush2.msra.mxu0 %v591_v0 }
 0x143   :  { %1399 = vmatpush2.msra.mxu1 %v657_v1  ;;  %1331 = vmatprep.subr.mxu0 %v590_v2  ;;  %v692_v63 = vshrl.u32 %v691_v62, 7  ;;  %v689_v1 = vld [vmem:[%s3784_s2] sm:$0x3] }
 0x144   :  { %1400 = vmatprep.subr.mxu1 %v656_v3  ;;  %1332 = vmatpush2.msra.mxu0 %v589_v4  ;;  %v771_v3 = vpop.f32.mrf.mxu0 }
 0x145   :  { %1401 = vmatpush2.msra.mxu1 %v655_v5  ;;  %1333 = vmatprep.subr.mxu0 %v588_v6  ;;  %v697_v0 = vsub.s32 1, %v692_v63  ;;  %v693_v2 = vsub.s32 0, %v692_v63 }
 0x146   :  { %1402 = vmatprep.subr.mxu1 %v654_v7  ;;  %1334 = vmatpush2.msra.mxu0 %v587_v8  ;;  %v773_v6 = vpop.f32.mrf.mxu0  ;;  %v842_v7 = vpop.f32.mrf.mxu1 }
 0x147   :  { %1403 = vmatpush2.msra.mxu1 %v653_v9  ;;  %1335 = vmatprep.subr.mxu0 %v586_v10  ;;  %v698_v4 = vrot.slane %v689_v1, %v697_v0  ;;  %v694_v5 = vrot.slane %v689_v1, %v693_v2 }
 0x148   :  { %1404 = vmatprep.subr.mxu1 %v652_v11  ;;  %1336 = vmatpush2.msra.mxu0 %v585_v12  ;;  %v913_v8 = vpop.f32.mrf.mxu0  ;;  %v844_v11 = vpop.f32.mrf.mxu1 }
 0x149   :  { %1337 = vmatprep.mubr.f32.mxu0 %v37_v13  ;;  %1405 = vmatpush2.msra.mxu1 %v651_v14  ;;  %v774_v9 = vadd.f32 %v773_v6, %v698_v4  ;;  %v772_v10 = vadd.f32 %v771_v3, %v694_v5 }
 0x14a   :  { %1338 = vmatmul.mubr.f32.vlgmr.msra.gmra.mxu0 %v36_v15  ;;  %1406 = vmatprep.subr.mxu1 %v650_v16  ;;  %v915_v12 = vpop.f32.mrf.mxu0  ;;  %v984_v13 = vpop.f32.mrf.mxu1 }
 0x14b   :  { %1439 = vmatprep.subr.mxu0 %v688_v17  ;;  %1407 = vmatpush2.msra.mxu1 %v649_v18  ;;  %v845_v14 = vadd.f32 %v844_v11, %v774_v9  ;;  %v843_v15 = vadd.f32 %v842_v7, %v772_v10 }
 0x14c   :  { %1408 = vmatprep.mubr.f32.mxu1 %v39_v19  ;;  %1440 = vmatpush1.msra.mxu0 %v687_v20  ;;  %v986_v19 = vpop.f32.mrf.mxu1 }
 0x14d   :  { %1409 = vmatmul.mubr.f32.vlgmr.msra.gmra.mxu1 %v38_v21  ;;  %1441 = vmatprep.subr.mxu0 %v686_v22  ;;  %v916_v17 = vadd.f32 %v915_v12, %v845_v14  ;;  %v914_v18 = vadd.f32 %v913_v8, %v843_v15 }
 0x14e   :  { %1442 = vmatpush1.msra.mxu0 %v685_v23  ;;  %1479 = vmatprep.mubr.f32.mxu0 %v1638_v28 }
 0x14f   :  { %1443 = vmatprep.subr.mxu0 %v684_v24  ;;  %1602 = vmatprep.subr.mxu1 %v1517_v29  ;;  %v987_v22 = vadd.f32 %v986_v19, %v916_v17  ;;  %v985_v23 = vadd.f32 %v984_v13, %v914_v18 }
 0x150   :  { %1444 = vmatpush1.msra.mxu0 %v683_v25  ;;  %1603 = vmatpush3.msra.mxu1 %v1501_v30 }
 0x151   :  { %1445 = vmatprep.subr.mxu0 %v682_v26  ;;  %1604 = vmatprep.subr.mxu1 %v1516_v31 }
 0x152   :  { %1446 = vmatpush1.msra.mxu0 %v681_v27  ;;  %1605 = vmatpush3.msra.mxu1 %v1500_v33 }
 0x153   :  { %1600 = vmatmul.mubr.msk.f32.vlgmr.msra.gmra.mxu0 %vm701_vm0, %v40_v32  ;;  %1606 = vmatprep.subr.mxu1 %v1515_v34 }
 0x154   :  { %1607 = vmatpush3.msra.mxu1 %v1499_v35 }
 0x155   :  { %1608 = vmatprep.subr.mxu1 %v1514_v36 }
 0x156   :  { %1609 = vmatpush3.msra.mxu1 %v1498_v37 }
 0x157   :  { %1610 = vmatprep.subr.mxu1 %v1513_v38 }
 0x158   :  { %1611 = vmatpush3.msra.mxu1 %v1497_v39 }
 0x159   :  { %1612 = vmatprep.subr.mxu1 %v1512_v40 }
 0x15a   :  { %1613 = vmatpush3.msra.mxu1 %v1496_v41 }
 0x15b   :  { %1614 = vmatprep.subr.mxu1 %v1511_v42 }
 0x15c   :  { %1615 = vmatpush3.msra.mxu1 %v1495_v43 }
 0x15d   :  { %1616 = vmatprep.subr.mxu1 %v1510_v44 }
 0x15e   :  { %1617 = vmatpush3.msra.mxu1 %v1494_v45 }
 0x15f   :  { %1618 = vmatprep.subr.mxu1 %v1509_v46 }
 0x160   :  { %1619 = vmatpush3.msra.mxu1 %v1493_v47 }
 0x161   :  { %1620 = vmatprep.subr.mxu1 %v1508_v48 }
 0x162   :  { %1621 = vmatpush3.msra.mxu1 %v1492_v49 }
 0x163   :  { %1622 = vmatprep.subr.mxu1 %v1507_v50  ;;  %v1601_v50 = vld [vmem:[%s3785_s4] ss:$0 sm:$0xff] }
 0x164   :  { %1623 = vmatpush3.msra.mxu1 %v1491_v51 }
 0x165   :  { %1624 = vmatprep.subr.mxu1 %v1506_v52 }
 0x166   :  { %1625 = vmatpush3.msra.mxu1 %v1490_v53 }
 0x167   :  { %1626 = vmatprep.subr.mxu1 %v1505_v54 }
 0x168   :  { %1627 = vmatpush3.msra.mxu1 %v1489_v55 }
 0x169   :  { %1628 = vmatprep.subr.mxu1 %v1504_v56 }
 0x16a   :  { %1629 = vmatpush3.msra.mxu1 %v1488_v57 }
 0x16b   :  { %1630 = vmatprep.subr.mxu1 %v1503_v58 }
 0x16c   :  { %1631 = vmatpush3.msra.mxu1 %v1487_v59 }
 0x16d   :  { %1632 = vmatprep.subr.mxu1 %v1502_v60 }
 0x16e   :  { %1633 = vmatpush3.msra.mxu1 %v1486_v61 }
 0x186   :  { %v1055_v16 = vpop.f32.mrf.mxu0 }
 0x187   :  { %v1056_v26 = vadd.f32 %v1055_v16, %v985_v23 }
 0x188   :  { %v1057_v20 = vpop.f32.mrf.mxu0 }
 0x189   :  { %v1126_v21 = vpop.f32.mrf.mxu1  ;;  %v1058_v25 = vadd.f32 %v1057_v20, %v987_v22 }
 0x18a   :  { %v1127_v31 = vadd.f32 %v1126_v21, %v1056_v26 }
 0x18b   :  { %v1128_v27 = vpop.f32.mrf.mxu1 }
 0x18c   :  { %v1129_v30 = vadd.f32 %v1128_v27, %v1058_v25 }
 0x1c8   :  { %v1197_v24 = vpop.f32.mrf.mxu0 }
 0x1c9   :  { %v1198_v34 = vadd.f32 %v1197_v24, %v1127_v31 }
 0x1ca   :  { %v1199_v28 = vpop.f32.mrf.mxu0 }
 0x1cb   :  { %v1268_v29 = vpop.f32.mrf.mxu1  ;;  %v1200_v32 = vadd.f32 %v1199_v28, %v1129_v30 }
 0x1cc   :  { %v1269_v39 = vadd.f32 %v1268_v29, %v1198_v34 }
 0x1cd   :  { %v1270_v35 = vpop.f32.mrf.mxu1 }
 0x1ce   :  { %v1271_v38 = vadd.f32 %v1270_v35, %v1200_v32 }
 0x20a   :  { %v1339_v33 = vpop.f32.mrf.mxu0 }
 0x20b   :  { %v1340_v41 = vadd.f32 %v1339_v33, %v1269_v39 }
 0x20c   :  { %v1341_v36 = vpop.f32.mrf.mxu0 }
 0x20d   :  { %v1410_v37 = vpop.f32.mrf.mxu1  ;;  %v1342_v40 = vadd.f32 %v1341_v36, %v1271_v38 }
 0x20e   :  { %v1411_v45 = vadd.f32 %v1410_v37, %v1340_v41 }
 0x20f   :  { %v1412_v42 = vpop.f32.mrf.mxu1 }
 0x210   :  { %v1413_v44 = vadd.f32 %v1412_v42, %v1342_v40 }
 0x213   :  { %v1481_v43 = vpop.f32.mrf.mxu0 }
 0x214   :  { %v1482_v48 = vadd.f32 %v1481_v43, %v1411_v45 }
 0x215   :  { %v1483_v46 = vpop.f32.mrf.mxu0 }
 0x216   :  { %v1484_v47 = vadd.f32 %v1483_v46, %v1413_v44 }
 0x218   :  { %1589 = vmatprep.mubr.f32.mxu1 %v1484_v47 }
 0x219   :  { %1590 = vmatmul.mubr.f32.vlgmr.msra.gmra.mxu1 %v1482_v48 }
 0x2d9   :  { %v1634_v49 = vpop.f32.mrf.mxu1 }
 0x2db   :  { %v1635_v51 = vpop.f32.mrf.mxu1 }
 0x2dc   :  { %v1636_v52 = vadd.f32 %v1635_v51, %v1634_v49 }
 0x2de   :  { %v1592_v53 = vadd.f32 %v1636_v52, %v1601_v50 }
 0x2e0   :  { %1595 = vst [vmem:[%s3786_s5] sm:$0xff] %v1592_v53 }

</bundles_post_ra>
